<compile_context>
chip_gen: v5e
topology: v5e:2x2
jax: 0.10.0
libtpu: 0.0.40
codegen_flags: <defaults>
</compile_context>

<pallas_src>
import functools

import jax
import jax.numpy as jnp
from jax.experimental import pallas as pl
from jax.experimental.pallas import tpu as pltpu


# ----------------------------------------------------------------------------
# Fused kernel: all LSTM layers + both directions + FC epilogue
# ----------------------------------------------------------------------------
def _bert_lstm_kernel(*refs, n_layers, seq_len, batch, hidden):
    H = hidden
    it = iter(refs)
    x_ref = next(it)              # (seq*batch, 768) bf16, time-major rows
    h0_ref = next(it)             # (2*n_layers, batch, H) f32
    c0_ref = next(it)             # (2*n_layers, batch, H) f32
    layer_w = [tuple(next(it) for _ in range(4)) for _ in range(n_layers)]
    #   per layer: w_ih_both (in, 8H), b_both (1, 8H), w_hh_f (H, 4H), w_hh_b (H, 4H)
    wfc_ref = next(it)            # (2H, out_dim) f32
    bfc_ref = next(it)            # (1, out_dim) f32
    o_ref = next(it)              # output (batch, out_dim) f32
    outf_ref = next(it)           # scratch (seq, batch, H) f32  (fwd outputs)
    outb_ref = next(it)           # scratch (seq, batch, H) f32  (bwd outputs)

    def cell(gates, c):
        # packed gate order (i, f, o, g): one sigmoid slab + one tanh slab
        sig = jax.nn.sigmoid(gates[:, :3 * H])
        g_t = jnp.tanh(gates[:, 3 * H:4 * H])
        i_g = sig[:, 0:H]
        f_g = sig[:, H:2 * H]
        o_g = sig[:, 2 * H:3 * H]
        c_new = f_g * c + i_g * g_t
        h_new = o_g * jnp.tanh(c_new)
        return h_new, c_new

    h_f = h_b = None
    for l in range(n_layers):
        wih_ref, b_ref, whhf_ref, whhb_ref = layer_w[l]
        last = (l == n_layers - 1)

        # ---- hoisted input projection (off the serial recurrence path) -----
        if l == 0:
            x_in = x_ref[...]                              # (S*B, 768) bf16
        else:
            # assemble lane-dense (S*B, 2H) input from the previous layer
            x_in = jnp.concatenate(
                [jnp.concatenate([outf_ref[t], outb_ref[t]], axis=-1)
                 for t in range(seq_len)], axis=0)         # (S*B, 2H) f32
        # one MXU matmul gives the x-gates of BOTH directions for all steps
        gx = (jnp.dot(x_in, wih_ref[...],
                      preferred_element_type=jnp.float32)
              + b_ref[...])                                # (S*B, 8H) f32

        whh_f = whhf_ref[...]
        whh_b = whhb_ref[...]
        h_f, c_f = h0_ref[2 * l], c0_ref[2 * l]
        h_b, c_b = h0_ref[2 * l + 1], c0_ref[2 * l + 1]

        # ---- interleaved fwd/bwd recurrence, fully unrolled (seq<=16) ------
        for t in range(seq_len):
            tb = seq_len - 1 - t
            g_f = (gx[t * batch:(t + 1) * batch, 0:4 * H]
                   + jnp.dot(h_f, whh_f, preferred_element_type=jnp.float32))
            g_b = (gx[tb * batch:(tb + 1) * batch, 4 * H:8 * H]
                   + jnp.dot(h_b, whh_b, preferred_element_type=jnp.float32))
            h_f, c_f = cell(g_f, c_f)
            h_b, c_b = cell(g_b, c_b)
            if not last:                  # last layer: only h_n is needed
                outf_ref[t] = h_f
                outb_ref[tb] = h_b

    # ---- FC epilogue (dropout == identity at inference) --------------------
    h_cat = jnp.concatenate([h_f, h_b], axis=-1)           # (B, 2H)
    o_ref[...] = (jnp.dot(h_cat, wfc_ref[...],
                          preferred_element_type=jnp.float32) + bfc_ref[...])


# ----------------------------------------------------------------------------
# Wrapper
# ----------------------------------------------------------------------------
def bert_lstm_forward(x_bert, hidden, params, *, hidden_dim, n_layers,
                      bidirectional=True):
    """Forward pass matching bert_lstm.forward after the BERT encoder.

    x_bert : (batch, seq, 768)   -- stand-in for self.bert(x)[0]
    hidden : (h0, c0), each (n_layers * 2, batch, hidden_dim)
    """
    assert bidirectional, "fused kernel implements the bidirectional config"
    h0, c0 = hidden
    batch, seq_len, bert_dim = x_bert.shape
    H = hidden_dim

    # time-major, flattened rows (t*batch + b), bf16 for the big MXU matmul
    x2d = jnp.transpose(x_bert, (1, 0, 2)).reshape(seq_len * batch, bert_dim)
    x2d = x2d.astype(jnp.bfloat16)

    inputs = [x2d, h0.astype(jnp.float32), c0.astype(jnp.float32)]
    for l in range(n_layers):
        lp = params['layers'][l]
        inputs += [lp['w_ih_both'], lp['b_both'], lp['w_hh_f'], lp['w_hh_b']]
    inputs += [params['fc']['w_t'], params['fc']['b']]
    out_dim = params['fc']['w_t'].shape[1]

    kernel = functools.partial(_bert_lstm_kernel, n_layers=n_layers,
                               seq_len=seq_len, batch=batch, hidden=H)
    vmem_spec = lambda: pl.BlockSpec(memory_space=pltpu.MemorySpace.VMEM)

    return pl.pallas_call(
        kernel,
        out_shape=jax.ShapeDtypeStruct((batch, out_dim), jnp.float32),
        in_specs=[vmem_spec() for _ in range(len(inputs))],
        out_specs=vmem_spec(),
        scratch_shapes=[pltpu.VMEM((seq_len, batch, H), jnp.float32),
                        pltpu.VMEM((seq_len, batch, H), jnp.float32)],
    )(*inputs)


# ----------------------------------------------------------------------------
# Parameters: raw PyTorch-layout init + kernel-layout packing
# ----------------------------------------------------------------------------
def init_raw_params(key, hidden_dim, output_size, n_layers, bert_dim=768):
    """Raw weights with nn.LSTM / nn.Linear shapes, gate row order (i,f,g,o)."""
    num_dir = 2
    k = 1.0 / (hidden_dim ** 0.5)
    raw = {'lstm': {}}
    keys = jax.random.split(key, n_layers * num_dir * 4 + 2)
    ki = 0
    for layer in range(n_layers):
        in_dim = bert_dim if layer == 0 else hidden_dim * num_dir
        for d in range(num_dir):
            w_ih = jax.random.uniform(keys[ki], (4 * hidden_dim, in_dim),
                                      minval=-k, maxval=k); ki += 1
            w_hh = jax.random.uniform(keys[ki], (4 * hidden_dim, hidden_dim),
                                      minval=-k, maxval=k); ki += 1
            b_ih = jax.random.uniform(keys[ki], (4 * hidden_dim,),
                                      minval=-k, maxval=k); ki += 1
            b_hh = jax.random.uniform(keys[ki], (4 * hidden_dim,),
                                      minval=-k, maxval=k); ki += 1
            raw['lstm'][(layer, d)] = {
                'w_ih': w_ih.astype(jnp.float32),
                'w_hh': w_hh.astype(jnp.float32),
                'b_ih': b_ih.astype(jnp.float32),
                'b_hh': b_hh.astype(jnp.float32),
            }
    fc_in = hidden_dim * num_dir
    kf = 1.0 / (fc_in ** 0.5)
    w_fc = jax.random.uniform(keys[ki], (output_size, fc_in),
                              minval=-kf, maxval=kf); ki += 1
    b_fc = jax.random.uniform(keys[ki], (output_size,), minval=-kf, maxval=kf)
    raw['fc'] = {'w': w_fc.astype(jnp.float32), 'b': b_fc.astype(jnp.float32)}
    return raw


def _repack_gates_cols(w_t, H):
    """Reorder gate column blocks (i,f,g,o) -> (i,f,o,g)."""
    return jnp.concatenate([w_t[:, :2 * H], w_t[:, 3 * H:4 * H],
                            w_t[:, 2 * H:3 * H]], axis=1)


def pack_params(raw, hidden_dim, n_layers):
    """Kernel layout: both directions' W_ih/bias packed side by side (8H cols),
    gate order (i,f,o,g), layer-0 input weights cast to bf16."""
    H = hidden_dim
    packed = {'layers': []}
    for l in range(n_layers):
        per_dir = []
        for d in range(2):
            p = raw['lstm'][(l, d)]
            w_ih_t = _repack_gates_cols(p['w_ih'].T, H)                # (in, 4H)
            w_hh_t = _repack_gates_cols(p['w_hh'].T, H)                # (H, 4H)
            b = _repack_gates_cols((p['b_ih'] + p['b_hh']).reshape(1, -1), H)
            per_dir.append((w_ih_t, w_hh_t, b))
        w_ih_both = jnp.concatenate([per_dir[0][0], per_dir[1][0]], axis=1)
        b_both = jnp.concatenate([per_dir[0][2], per_dir[1][2]], axis=1)
        w_ih_both = w_ih_both.astype(jnp.bfloat16 if l == 0 else jnp.float32)
        packed['layers'].append({
            'w_ih_both': w_ih_both,                       # (in, 8H)
            'b_both': b_both.astype(jnp.float32),         # (1, 8H)
            'w_hh_f': per_dir[0][1].astype(jnp.float32),  # (H, 4H)
            'w_hh_b': per_dir[1][1].astype(jnp.float32),  # (H, 4H)
        })
    packed['fc'] = {'w_t': raw['fc']['w'].T.astype(jnp.float32),
                    'b': raw['fc']['b'].reshape(1, -1).astype(jnp.float32)}
    return packed


# ----------------------------------------------------------------------------
# Pure-JAX f32 reference (no Pallas) for correctness
# ----------------------------------------------------------------------------
def ref_forward(x_bert, hidden, raw, hidden_dim, n_layers):
    h0_all, c0_all = hidden
    H = hidden_dim
    x = x_bert
    h_fin = {}
    for layer in range(n_layers):
        outs = []
        seq = x.shape[1]
        for d in range(2):
            p = raw['lstm'][(layer, d)]
            w_ih_t = p['w_ih'].T
            w_hh_t = p['w_hh'].T
            b = (p['b_ih'] + p['b_hh']).reshape(1, -1)
            order = range(seq - 1, -1, -1) if d == 1 else range(seq)
            h = h0_all[2 * layer + d]
            c = c0_all[2 * layer + d]
            out_t = [None] * seq
            for t in order:
                g = x[:, t] @ w_ih_t + h @ w_hh_t + b
                i = jax.nn.sigmoid(g[:, :H])
                f = jax.nn.sigmoid(g[:, H:2 * H])
                gg = jnp.tanh(g[:, 2 * H:3 * H])
                o = jax.nn.sigmoid(g[:, 3 * H:])
                c = f * c + i * gg
                h = o * jnp.tanh(c)
                out_t[t] = h
            outs.append(jnp.stack(out_t, axis=1))
            h_fin[(layer, d)] = h
        x = jnp.concatenate(outs, axis=-1)
    hl = jnp.concatenate([h_fin[(n_layers - 1, 0)],
                          h_fin[(n_layers - 1, 1)]], axis=-1)
    return hl @ raw['fc']['w'].T + raw['fc']['b'].reshape(1, -1)


# ----------------------------------------------------------------------------
if __name__ == "__main__":
    hidden_dim, output_size, n_layers = 32, 4, 2
    batch, seq, bert_dim = 2, 8, 768

    key = jax.random.PRNGKey(0)
    k_p, k_x, k_h, k_c = jax.random.split(key, 4)
    raw = init_raw_params(k_p, hidden_dim, output_size, n_layers, bert_dim)
    params = pack_params(raw, hidden_dim, n_layers)

    # x_bert plays the role of self.bert(x)[0] (last_hidden_state).
    x_bert = jax.random.normal(k_x, (batch, seq, bert_dim), dtype=jnp.float32)
    h0 = 0.1 * jax.random.normal(k_h, (n_layers * 2, batch, hidden_dim),
                                 dtype=jnp.float32)
    c0 = 0.1 * jax.random.normal(k_c, (n_layers * 2, batch, hidden_dim),
                                 dtype=jnp.float32)

    fwd = jax.jit(functools.partial(bert_lstm_forward, hidden_dim=hidden_dim,
                                    n_layers=n_layers))
    out = fwd(x_bert, (h0, c0), params)
    out = jax.block_until_ready(out)

    ref = ref_forward(x_bert, (h0, c0), raw, hidden_dim, n_layers)
    assert out.shape == (batch, output_size)
    # layer-0 matmul runs in bf16 (f32 accumulation) -> slightly looser tol
    assert jnp.allclose(out, ref, rtol=2e-2, atol=2e-2), "mismatch vs reference"
    print("KERNEL_OK")
</pallas_src>

<mosaic_0001>
module attributes {stable_mosaic.version = 11 : i64} {
  func.func @_bert_lstm_kernel(%arg0: memref<16x768xbf16, #tpu.memory_space<vmem>>, %arg1: memref<4x2x32xf32, #tpu.memory_space<vmem>>, %arg2: memref<4x2x32xf32, #tpu.memory_space<vmem>>, %arg3: memref<768x256xbf16, #tpu.memory_space<vmem>>, %arg4: memref<1x256xf32, #tpu.memory_space<vmem>>, %arg5: memref<32x128xf32, #tpu.memory_space<vmem>>, %arg6: memref<32x128xf32, #tpu.memory_space<vmem>>, %arg7: memref<64x256xf32, #tpu.memory_space<vmem>>, %arg8: memref<1x256xf32, #tpu.memory_space<vmem>>, %arg9: memref<32x128xf32, #tpu.memory_space<vmem>>, %arg10: memref<32x128xf32, #tpu.memory_space<vmem>>, %arg11: memref<64x4xf32, #tpu.memory_space<vmem>>, %arg12: memref<1x4xf32, #tpu.memory_space<vmem>>, %arg13: memref<2x4xf32, #tpu.memory_space<vmem>>, %arg14: memref<8x2x32xf32, #tpu.memory_space<vmem>>, %arg15: memref<8x2x32xf32, #tpu.memory_space<vmem>>) attributes {dimension_semantics = [], scalar_prefetch = 0 : i64, scratch_operands = 2 : i64, tpu.core_type = #tpu.core_type<tc>} {
    %c0 = arith.constant 0 : index
    %c0_0 = arith.constant 0 : index
    %0 = vector.load %arg0[%c0, %c0_0] : memref<16x768xbf16, #tpu.memory_space<vmem>>, vector<16x768xbf16>
    %c0_1 = arith.constant 0 : index
    %c0_2 = arith.constant 0 : index
    %1 = vector.load %arg3[%c0_1, %c0_2] : memref<768x256xbf16, #tpu.memory_space<vmem>>, vector<768x256xbf16>
    %cst = arith.constant dense<0.000000e+00> : vector<16x256xf32>
    %2 = tpu.matmul %0, %1, %cst {dimension_numbers = #tpu.dot_dimension_numbers<[1], [0], [0], [1], [0, 0, 1, 1], [], []>} : vector<16x768xbf16>, vector<768x256xbf16>, vector<16x256xf32> -> vector<16x256xf32>
    %c0_3 = arith.constant 0 : index
    %c0_4 = arith.constant 0 : index
    %3 = vector.load %arg4[%c0_3, %c0_4] : memref<1x256xf32, #tpu.memory_space<vmem>>, vector<1x256xf32>
    %4 = vector.broadcast %3 : vector<1x256xf32> to vector<16x256xf32>
    %5 = arith.addf %2, %4 : vector<16x256xf32>
    %c0_5 = arith.constant 0 : index
    %c0_6 = arith.constant 0 : index
    %6 = vector.load %arg5[%c0_5, %c0_6] : memref<32x128xf32, #tpu.memory_space<vmem>>, vector<32x128xf32>
    %c0_7 = arith.constant 0 : index
    %c0_8 = arith.constant 0 : index
    %7 = vector.load %arg6[%c0_7, %c0_8] : memref<32x128xf32, #tpu.memory_space<vmem>>, vector<32x128xf32>
    %c0_9 = arith.constant 0 : index
    %c0_10 = arith.constant 0 : index
    %c0_11 = arith.constant 0 : index
    %8 = vector.load %arg1[%c0_9, %c0_10, %c0_11] : memref<4x2x32xf32, #tpu.memory_space<vmem>>, vector<1x2x32xf32>
    %9 = vector.shape_cast %8 : vector<1x2x32xf32> to vector<2x32xf32>
    %c0_12 = arith.constant 0 : index
    %c0_13 = arith.constant 0 : index
    %c0_14 = arith.constant 0 : index
    %10 = vector.load %arg2[%c0_12, %c0_13, %c0_14] : memref<4x2x32xf32, #tpu.memory_space<vmem>>, vector<1x2x32xf32>
    %11 = vector.shape_cast %10 : vector<1x2x32xf32> to vector<2x32xf32>
    %c1 = arith.constant 1 : index
    %c0_15 = arith.constant 0 : index
    %c0_16 = arith.constant 0 : index
    %12 = vector.load %arg1[%c1, %c0_15, %c0_16] : memref<4x2x32xf32, #tpu.memory_space<vmem>>, vector<1x2x32xf32>
    %13 = vector.shape_cast %12 : vector<1x2x32xf32> to vector<2x32xf32>
    %c1_17 = arith.constant 1 : index
    %c0_18 = arith.constant 0 : index
    %c0_19 = arith.constant 0 : index
    %14 = vector.load %arg2[%c1_17, %c0_18, %c0_19] : memref<4x2x32xf32, #tpu.memory_space<vmem>>, vector<1x2x32xf32>
    %15 = vector.shape_cast %14 : vector<1x2x32xf32> to vector<2x32xf32>
    %16 = vector.extract_strided_slice %5 {offsets = [0, 0], sizes = [2, 128], strides = [1, 1]} : vector<16x256xf32> to vector<2x128xf32>
    %cst_20 = arith.constant dense<0.000000e+00> : vector<2x128xf32>
    %17 = tpu.matmul %9, %6, %cst_20 {dimension_numbers = #tpu.dot_dimension_numbers<[1], [0], [0], [1], [0, 0, 1, 1], [], []>} : vector<2x32xf32>, vector<32x128xf32>, vector<2x128xf32> -> vector<2x128xf32>
    %18 = arith.addf %16, %17 : vector<2x128xf32>
    %19 = vector.extract_strided_slice %5 {offsets = [14, 128], sizes = [2, 128], strides = [1, 1]} : vector<16x256xf32> to vector<2x128xf32>
    %cst_21 = arith.constant dense<0.000000e+00> : vector<2x128xf32>
    %20 = tpu.matmul %13, %7, %cst_21 {dimension_numbers = #tpu.dot_dimension_numbers<[1], [0], [0], [1], [0, 0, 1, 1], [], []>} : vector<2x32xf32>, vector<32x128xf32>, vector<2x128xf32> -> vector<2x128xf32>
    %21 = arith.addf %19, %20 : vector<2x128xf32>
    %22 = vector.extract_strided_slice %18 {offsets = [0, 0], sizes = [2, 96], strides = [1, 1]} : vector<2x128xf32> to vector<2x96xf32>
    %23 = arith.negf %22 : vector<2x96xf32>
    %24 = math.exp %23 : vector<2x96xf32>
    %cst_22 = arith.constant 1.000000e+00 : f32
    %25 = vector.broadcast %cst_22 : f32 to vector<2x96xf32>
    %26 = arith.addf %25, %24 : vector<2x96xf32>
    %27 = arith.divf %25, %26 : vector<2x96xf32>
    %28 = vector.extract_strided_slice %18 {offsets = [0, 96], sizes = [2, 32], strides = [1, 1]} : vector<2x128xf32> to vector<2x32xf32>
    %29 = math.tanh %28 : vector<2x32xf32>
    %30 = vector.extract_strided_slice %27 {offsets = [0, 0], sizes = [2, 32], strides = [1, 1]} : vector<2x96xf32> to vector<2x32xf32>
    %31 = vector.extract_strided_slice %27 {offsets = [0, 32], sizes = [2, 32], strides = [1, 1]} : vector<2x96xf32> to vector<2x32xf32>
    %32 = vector.extract_strided_slice %27 {offsets = [0, 64], sizes = [2, 32], strides = [1, 1]} : vector<2x96xf32> to vector<2x32xf32>
    %33 = arith.mulf %31, %11 : vector<2x32xf32>
    %34 = arith.mulf %30, %29 : vector<2x32xf32>
    %35 = arith.addf %33, %34 : vector<2x32xf32>
    %36 = math.tanh %35 : vector<2x32xf32>
    %37 = arith.mulf %32, %36 : vector<2x32xf32>
    %38 = vector.extract_strided_slice %21 {offsets = [0, 0], sizes = [2, 96], strides = [1, 1]} : vector<2x128xf32> to vector<2x96xf32>
    %39 = arith.negf %38 : vector<2x96xf32>
    %40 = math.exp %39 : vector<2x96xf32>
    %cst_23 = arith.constant 1.000000e+00 : f32
    %41 = vector.broadcast %cst_23 : f32 to vector<2x96xf32>
    %42 = arith.addf %41, %40 : vector<2x96xf32>
    %43 = arith.divf %41, %42 : vector<2x96xf32>
    %44 = vector.extract_strided_slice %21 {offsets = [0, 96], sizes = [2, 32], strides = [1, 1]} : vector<2x128xf32> to vector<2x32xf32>
    %45 = math.tanh %44 : vector<2x32xf32>
    %46 = vector.extract_strided_slice %43 {offsets = [0, 0], sizes = [2, 32], strides = [1, 1]} : vector<2x96xf32> to vector<2x32xf32>
    %47 = vector.extract_strided_slice %43 {offsets = [0, 32], sizes = [2, 32], strides = [1, 1]} : vector<2x96xf32> to vector<2x32xf32>
    %48 = vector.extract_strided_slice %43 {offsets = [0, 64], sizes = [2, 32], strides = [1, 1]} : vector<2x96xf32> to vector<2x32xf32>
    %49 = arith.mulf %47, %15 : vector<2x32xf32>
    %50 = arith.mulf %46, %45 : vector<2x32xf32>
    %51 = arith.addf %49, %50 : vector<2x32xf32>
    %52 = math.tanh %51 : vector<2x32xf32>
    %53 = arith.mulf %48, %52 : vector<2x32xf32>
    %c0_24 = arith.constant 0 : index
    %c0_25 = arith.constant 0 : index
    %c0_26 = arith.constant 0 : index
    %54 = vector.load %arg14[%c0_24, %c0_25, %c0_26] : memref<8x2x32xf32, #tpu.memory_space<vmem>>, vector<1x2x32xf32>
    %55 = vector.shape_cast %54 : vector<1x2x32xf32> to vector<2x32xf32>
    %56 = vector.shape_cast %37 : vector<2x32xf32> to vector<1x2x32xf32>
    tpu.vector_store %arg14[%c0_24, %c0_25, %c0_26], %56 {strides = array<i32>} : memref<8x2x32xf32, #tpu.memory_space<vmem>>, vector<1x2x32xf32>,
    %c7 = arith.constant 7 : index
    %c0_27 = arith.constant 0 : index
    %c0_28 = arith.constant 0 : index
    %57 = vector.load %arg15[%c7, %c0_27, %c0_28] : memref<8x2x32xf32, #tpu.memory_space<vmem>>, vector<1x2x32xf32>
    %58 = vector.shape_cast %57 : vector<1x2x32xf32> to vector<2x32xf32>
    %59 = vector.shape_cast %53 : vector<2x32xf32> to vector<1x2x32xf32>
    tpu.vector_store %arg15[%c7, %c0_27, %c0_28], %59 {strides = array<i32>} : memref<8x2x32xf32, #tpu.memory_space<vmem>>, vector<1x2x32xf32>,
    %60 = vector.extract_strided_slice %5 {offsets = [2, 0], sizes = [2, 128], strides = [1, 1]} : vector<16x256xf32> to vector<2x128xf32>
    %cst_29 = arith.constant dense<0.000000e+00> : vector<2x128xf32>
    %61 = tpu.matmul %37, %6, %cst_29 {dimension_numbers = #tpu.dot_dimension_numbers<[1], [0], [0], [1], [0, 0, 1, 1], [], []>} : vector<2x32xf32>, vector<32x128xf32>, vector<2x128xf32> -> vector<2x128xf32>
    %62 = arith.addf %60, %61 : vector<2x128xf32>
    %63 = vector.extract_strided_slice %5 {offsets = [12, 128], sizes = [2, 128], strides = [1, 1]} : vector<16x256xf32> to vector<2x128xf32>
    %cst_30 = arith.constant dense<0.000000e+00> : vector<2x128xf32>
    %64 = tpu.matmul %53, %7, %cst_30 {dimension_numbers = #tpu.dot_dimension_numbers<[1], [0], [0], [1], [0, 0, 1, 1], [], []>} : vector<2x32xf32>, vector<32x128xf32>, vector<2x128xf32> -> vector<2x128xf32>
    %65 = arith.addf %63, %64 : vector<2x128xf32>
    %66 = vector.extract_strided_slice %62 {offsets = [0, 0], sizes = [2, 96], strides = [1, 1]} : vector<2x128xf32> to vector<2x96xf32>
    %67 = arith.negf %66 : vector<2x96xf32>
    %68 = math.exp %67 : vector<2x96xf32>
    %cst_31 = arith.constant 1.000000e+00 : f32
    %69 = vector.broadcast %cst_31 : f32 to vector<2x96xf32>
    %70 = arith.addf %69, %68 : vector<2x96xf32>
    %71 = arith.divf %69, %70 : vector<2x96xf32>
    %72 = vector.extract_strided_slice %62 {offsets = [0, 96], sizes = [2, 32], strides = [1, 1]} : vector<2x128xf32> to vector<2x32xf32>
    %73 = math.tanh %72 : vector<2x32xf32>
    %74 = vector.extract_strided_slice %71 {offsets = [0, 0], sizes = [2, 32], strides = [1, 1]} : vector<2x96xf32> to vector<2x32xf32>
    %75 = vector.extract_strided_slice %71 {offsets = [0, 32], sizes = [2, 32], strides = [1, 1]} : vector<2x96xf32> to vector<2x32xf32>
    %76 = vector.extract_strided_slice %71 {offsets = [0, 64], sizes = [2, 32], strides = [1, 1]} : vector<2x96xf32> to vector<2x32xf32>
    %77 = arith.mulf %75, %35 : vector<2x32xf32>
    %78 = arith.mulf %74, %73 : vector<2x32xf32>
    %79 = arith.addf %77, %78 : vector<2x32xf32>
    %80 = math.tanh %79 : vector<2x32xf32>
    %81 = arith.mulf %76, %80 : vector<2x32xf32>
    %82 = vector.extract_strided_slice %65 {offsets = [0, 0], sizes = [2, 96], strides = [1, 1]} : vector<2x128xf32> to vector<2x96xf32>
    %83 = arith.negf %82 : vector<2x96xf32>
    %84 = math.exp %83 : vector<2x96xf32>
    %cst_32 = arith.constant 1.000000e+00 : f32
    %85 = vector.broadcast %cst_32 : f32 to vector<2x96xf32>
    %86 = arith.addf %85, %84 : vector<2x96xf32>
    %87 = arith.divf %85, %86 : vector<2x96xf32>
    %88 = vector.extract_strided_slice %65 {offsets = [0, 96], sizes = [2, 32], strides = [1, 1]} : vector<2x128xf32> to vector<2x32xf32>
    %89 = math.tanh %88 : vector<2x32xf32>
    %90 = vector.extract_strided_slice %87 {offsets = [0, 0], sizes = [2, 32], strides = [1, 1]} : vector<2x96xf32> to vector<2x32xf32>
    %91 = vector.extract_strided_slice %87 {offsets = [0, 32], sizes = [2, 32], strides = [1, 1]} : vector<2x96xf32> to vector<2x32xf32>
    %92 = vector.extract_strided_slice %87 {offsets = [0, 64], sizes = [2, 32], strides = [1, 1]} : vector<2x96xf32> to vector<2x32xf32>
    %93 = arith.mulf %91, %51 : vector<2x32xf32>
    %94 = arith.mulf %90, %89 : vector<2x32xf32>
    %95 = arith.addf %93, %94 : vector<2x32xf32>
    %96 = math.tanh %95 : vector<2x32xf32>
    %97 = arith.mulf %92, %96 : vector<2x32xf32>
    %c1_33 = arith.constant 1 : index
    %c0_34 = arith.constant 0 : index
    %c0_35 = arith.constant 0 : index
    %98 = vector.load %arg14[%c1_33, %c0_34, %c0_35] : memref<8x2x32xf32, #tpu.memory_space<vmem>>, vector<1x2x32xf32>
    %99 = vector.shape_cast %98 : vector<1x2x32xf32> to vector<2x32xf32>
    %100 = vector.shape_cast %81 : vector<2x32xf32> to vector<1x2x32xf32>
    tpu.vector_store %arg14[%c1_33, %c0_34, %c0_35], %100 {strides = array<i32>} : memref<8x2x32xf32, #tpu.memory_space<vmem>>, vector<1x2x32xf32>,
    %c6 = arith.constant 6 : index
    %c0_36 = arith.constant 0 : index
    %c0_37 = arith.constant 0 : index
    %101 = vector.load %arg15[%c6, %c0_36, %c0_37] : memref<8x2x32xf32, #tpu.memory_space<vmem>>, vector<1x2x32xf32>
    %102 = vector.shape_cast %101 : vector<1x2x32xf32> to vector<2x32xf32>
    %103 = vector.shape_cast %97 : vector<2x32xf32> to vector<1x2x32xf32>
    tpu.vector_store %arg15[%c6, %c0_36, %c0_37], %103 {strides = array<i32>} : memref<8x2x32xf32, #tpu.memory_space<vmem>>, vector<1x2x32xf32>,
    %104 = vector.extract_strided_slice %5 {offsets = [4, 0], sizes = [2, 128], strides = [1, 1]} : vector<16x256xf32> to vector<2x128xf32>
    %cst_38 = arith.constant dense<0.000000e+00> : vector<2x128xf32>
    %105 = tpu.matmul %81, %6, %cst_38 {dimension_numbers = #tpu.dot_dimension_numbers<[1], [0], [0], [1], [0, 0, 1, 1], [], []>} : vector<2x32xf32>, vector<32x128xf32>, vector<2x128xf32> -> vector<2x128xf32>
    %106 = arith.addf %104, %105 : vector<2x128xf32>
    %107 = vector.extract_strided_slice %5 {offsets = [10, 128], sizes = [2, 128], strides = [1, 1]} : vector<16x256xf32> to vector<2x128xf32>
    %cst_39 = arith.constant dense<0.000000e+00> : vector<2x128xf32>
    %108 = tpu.matmul %97, %7, %cst_39 {dimension_numbers = #tpu.dot_dimension_numbers<[1], [0], [0], [1], [0, 0, 1, 1], [], []>} : vector<2x32xf32>, vector<32x128xf32>, vector<2x128xf32> -> vector<2x128xf32>
    %109 = arith.addf %107, %108 : vector<2x128xf32>
    %110 = vector.extract_strided_slice %106 {offsets = [0, 0], sizes = [2, 96], strides = [1, 1]} : vector<2x128xf32> to vector<2x96xf32>
    %111 = arith.negf %110 : vector<2x96xf32>
    %112 = math.exp %111 : vector<2x96xf32>
    %cst_40 = arith.constant 1.000000e+00 : f32
    %113 = vector.broadcast %cst_40 : f32 to vector<2x96xf32>
    %114 = arith.addf %113, %112 : vector<2x96xf32>
    %115 = arith.divf %113, %114 : vector<2x96xf32>
    %116 = vector.extract_strided_slice %106 {offsets = [0, 96], sizes = [2, 32], strides = [1, 1]} : vector<2x128xf32> to vector<2x32xf32>
    %117 = math.tanh %116 : vector<2x32xf32>
    %118 = vector.extract_strided_slice %115 {offsets = [0, 0], sizes = [2, 32], strides = [1, 1]} : vector<2x96xf32> to vector<2x32xf32>
    %119 = vector.extract_strided_slice %115 {offsets = [0, 32], sizes = [2, 32], strides = [1, 1]} : vector<2x96xf32> to vector<2x32xf32>
    %120 = vector.extract_strided_slice %115 {offsets = [0, 64], sizes = [2, 32], strides = [1, 1]} : vector<2x96xf32> to vector<2x32xf32>
    %121 = arith.mulf %119, %79 : vector<2x32xf32>
    %122 = arith.mulf %118, %117 : vector<2x32xf32>
    %123 = arith.addf %121, %122 : vector<2x32xf32>
    %124 = math.tanh %123 : vector<2x32xf32>
    %125 = arith.mulf %120, %124 : vector<2x32xf32>
    %126 = vector.extract_strided_slice %109 {offsets = [0, 0], sizes = [2, 96], strides = [1, 1]} : vector<2x128xf32> to vector<2x96xf32>
    %127 = arith.negf %126 : vector<2x96xf32>
    %128 = math.exp %127 : vector<2x96xf32>
    %cst_41 = arith.constant 1.000000e+00 : f32
    %129 = vector.broadcast %cst_41 : f32 to vector<2x96xf32>
    %130 = arith.addf %129, %128 : vector<2x96xf32>
    %131 = arith.divf %129, %130 : vector<2x96xf32>
    %132 = vector.extract_strided_slice %109 {offsets = [0, 96], sizes = [2, 32], strides = [1, 1]} : vector<2x128xf32> to vector<2x32xf32>
    %133 = math.tanh %132 : vector<2x32xf32>
    %134 = vector.extract_strided_slice %131 {offsets = [0, 0], sizes = [2, 32], strides = [1, 1]} : vector<2x96xf32> to vector<2x32xf32>
    %135 = vector.extract_strided_slice %131 {offsets = [0, 32], sizes = [2, 32], strides = [1, 1]} : vector<2x96xf32> to vector<2x32xf32>
    %136 = vector.extract_strided_slice %131 {offsets = [0, 64], sizes = [2, 32], strides = [1, 1]} : vector<2x96xf32> to vector<2x32xf32>
    %137 = arith.mulf %135, %95 : vector<2x32xf32>
    %138 = arith.mulf %134, %133 : vector<2x32xf32>
    %139 = arith.addf %137, %138 : vector<2x32xf32>
    %140 = math.tanh %139 : vector<2x32xf32>
    %141 = arith.mulf %136, %140 : vector<2x32xf32>
    %c2 = arith.constant 2 : index
    %c0_42 = arith.constant 0 : index
    %c0_43 = arith.constant 0 : index
    %142 = vector.load %arg14[%c2, %c0_42, %c0_43] : memref<8x2x32xf32, #tpu.memory_space<vmem>>, vector<1x2x32xf32>
    %143 = vector.shape_cast %142 : vector<1x2x32xf32> to vector<2x32xf32>
    %144 = vector.shape_cast %125 : vector<2x32xf32> to vector<1x2x32xf32>
    tpu.vector_store %arg14[%c2, %c0_42, %c0_43], %144 {strides = array<i32>} : memref<8x2x32xf32, #tpu.memory_space<vmem>>, vector<1x2x32xf32>,
    %c5 = arith.constant 5 : index
    %c0_44 = arith.constant 0 : index
    %c0_45 = arith.constant 0 : index
    %145 = vector.load %arg15[%c5, %c0_44, %c0_45] : memref<8x2x32xf32, #tpu.memory_space<vmem>>, vector<1x2x32xf32>
    %146 = vector.shape_cast %145 : vector<1x2x32xf32> to vector<2x32xf32>
    %147 = vector.shape_cast %141 : vector<2x32xf32> to vector<1x2x32xf32>
    tpu.vector_store %arg15[%c5, %c0_44, %c0_45], %147 {strides = array<i32>} : memref<8x2x32xf32, #tpu.memory_space<vmem>>, vector<1x2x32xf32>,
    %148 = vector.extract_strided_slice %5 {offsets = [6, 0], sizes = [2, 128], strides = [1, 1]} : vector<16x256xf32> to vector<2x128xf32>
    %cst_46 = arith.constant dense<0.000000e+00> : vector<2x128xf32>
    %149 = tpu.matmul %125, %6, %cst_46 {dimension_numbers = #tpu.dot_dimension_numbers<[1], [0], [0], [1], [0, 0, 1, 1], [], []>} : vector<2x32xf32>, vector<32x128xf32>, vector<2x128xf32> -> vector<2x128xf32>
    %150 = arith.addf %148, %149 : vector<2x128xf32>
    %151 = vector.extract_strided_slice %5 {offsets = [8, 128], sizes = [2, 128], strides = [1, 1]} : vector<16x256xf32> to vector<2x128xf32>
    %cst_47 = arith.constant dense<0.000000e+00> : vector<2x128xf32>
    %152 = tpu.matmul %141, %7, %cst_47 {dimension_numbers = #tpu.dot_dimension_numbers<[1], [0], [0], [1], [0, 0, 1, 1], [], []>} : vector<2x32xf32>, vector<32x128xf32>, vector<2x128xf32> -> vector<2x128xf32>
    %153 = arith.addf %151, %152 : vector<2x128xf32>
    %154 = vector.extract_strided_slice %150 {offsets = [0, 0], sizes = [2, 96], strides = [1, 1]} : vector<2x128xf32> to vector<2x96xf32>
    %155 = arith.negf %154 : vector<2x96xf32>
    %156 = math.exp %155 : vector<2x96xf32>
    %cst_48 = arith.constant 1.000000e+00 : f32
    %157 = vector.broadcast %cst_48 : f32 to vector<2x96xf32>
    %158 = arith.addf %157, %156 : vector<2x96xf32>
    %159 = arith.divf %157, %158 : vector<2x96xf32>
    %160 = vector.extract_strided_slice %150 {offsets = [0, 96], sizes = [2, 32], strides = [1, 1]} : vector<2x128xf32> to vector<2x32xf32>
    %161 = math.tanh %160 : vector<2x32xf32>
    %162 = vector.extract_strided_slice %159 {offsets = [0, 0], sizes = [2, 32], strides = [1, 1]} : vector<2x96xf32> to vector<2x32xf32>
    %163 = vector.extract_strided_slice %159 {offsets = [0, 32], sizes = [2, 32], strides = [1, 1]} : vector<2x96xf32> to vector<2x32xf32>
    %164 = vector.extract_strided_slice %159 {offsets = [0, 64], sizes = [2, 32], strides = [1, 1]} : vector<2x96xf32> to vector<2x32xf32>
    %165 = arith.mulf %163, %123 : vector<2x32xf32>
    %166 = arith.mulf %162, %161 : vector<2x32xf32>
    %167 = arith.addf %165, %166 : vector<2x32xf32>
    %168 = math.tanh %167 : vector<2x32xf32>
    %169 = arith.mulf %164, %168 : vector<2x32xf32>
    %170 = vector.extract_strided_slice %153 {offsets = [0, 0], sizes = [2, 96], strides = [1, 1]} : vector<2x128xf32> to vector<2x96xf32>
    %171 = arith.negf %170 : vector<2x96xf32>
    %172 = math.exp %171 : vector<2x96xf32>
    %cst_49 = arith.constant 1.000000e+00 : f32
    %173 = vector.broadcast %cst_49 : f32 to vector<2x96xf32>
    %174 = arith.addf %173, %172 : vector<2x96xf32>
    %175 = arith.divf %173, %174 : vector<2x96xf32>
    %176 = vector.extract_strided_slice %153 {offsets = [0, 96], sizes = [2, 32], strides = [1, 1]} : vector<2x128xf32> to vector<2x32xf32>
    %177 = math.tanh %176 : vector<2x32xf32>
    %178 = vector.extract_strided_slice %175 {offsets = [0, 0], sizes = [2, 32], strides = [1, 1]} : vector<2x96xf32> to vector<2x32xf32>
    %179 = vector.extract_strided_slice %175 {offsets = [0, 32], sizes = [2, 32], strides = [1, 1]} : vector<2x96xf32> to vector<2x32xf32>
    %180 = vector.extract_strided_slice %175 {offsets = [0, 64], sizes = [2, 32], strides = [1, 1]} : vector<2x96xf32> to vector<2x32xf32>
    %181 = arith.mulf %179, %139 : vector<2x32xf32>
    %182 = arith.mulf %178, %177 : vector<2x32xf32>
    %183 = arith.addf %181, %182 : vector<2x32xf32>
    %184 = math.tanh %183 : vector<2x32xf32>
    %185 = arith.mulf %180, %184 : vector<2x32xf32>
    %c3 = arith.constant 3 : index
    %c0_50 = arith.constant 0 : index
    %c0_51 = arith.constant 0 : index
    %186 = vector.load %arg14[%c3, %c0_50, %c0_51] : memref<8x2x32xf32, #tpu.memory_space<vmem>>, vector<1x2x32xf32>
    %187 = vector.shape_cast %186 : vector<1x2x32xf32> to vector<2x32xf32>
    %188 = vector.shape_cast %169 : vector<2x32xf32> to vector<1x2x32xf32>
    tpu.vector_store %arg14[%c3, %c0_50, %c0_51], %188 {strides = array<i32>} : memref<8x2x32xf32, #tpu.memory_space<vmem>>, vector<1x2x32xf32>,
    %c4 = arith.constant 4 : index
    %c0_52 = arith.constant 0 : index
    %c0_53 = arith.constant 0 : index
    %189 = vector.load %arg15[%c4, %c0_52, %c0_53] : memref<8x2x32xf32, #tpu.memory_space<vmem>>, vector<1x2x32xf32>
    %190 = vector.shape_cast %189 : vector<1x2x32xf32> to vector<2x32xf32>
    %191 = vector.shape_cast %185 : vector<2x32xf32> to vector<1x2x32xf32>
    tpu.vector_store %arg15[%c4, %c0_52, %c0_53], %191 {strides = array<i32>} : memref<8x2x32xf32, #tpu.memory_space<vmem>>, vector<1x2x32xf32>,
    %192 = vector.extract_strided_slice %5 {offsets = [8, 0], sizes = [2, 128], strides = [1, 1]} : vector<16x256xf32> to vector<2x128xf32>
    %cst_54 = arith.constant dense<0.000000e+00> : vector<2x128xf32>
    %193 = tpu.matmul %169, %6, %cst_54 {dimension_numbers = #tpu.dot_dimension_numbers<[1], [0], [0], [1], [0, 0, 1, 1], [], []>} : vector<2x32xf32>, vector<32x128xf32>, vector<2x128xf32> -> vector<2x128xf32>
    %194 = arith.addf %192, %193 : vector<2x128xf32>
    %195 = vector.extract_strided_slice %5 {offsets = [6, 128], sizes = [2, 128], strides = [1, 1]} : vector<16x256xf32> to vector<2x128xf32>
    %cst_55 = arith.constant dense<0.000000e+00> : vector<2x128xf32>
    %196 = tpu.matmul %185, %7, %cst_55 {dimension_numbers = #tpu.dot_dimension_numbers<[1], [0], [0], [1], [0, 0, 1, 1], [], []>} : vector<2x32xf32>, vector<32x128xf32>, vector<2x128xf32> -> vector<2x128xf32>
    %197 = arith.addf %195, %196 : vector<2x128xf32>
    %198 = vector.extract_strided_slice %194 {offsets = [0, 0], sizes = [2, 96], strides = [1, 1]} : vector<2x128xf32> to vector<2x96xf32>
    %199 = arith.negf %198 : vector<2x96xf32>
    %200 = math.exp %199 : vector<2x96xf32>
    %cst_56 = arith.constant 1.000000e+00 : f32
    %201 = vector.broadcast %cst_56 : f32 to vector<2x96xf32>
    %202 = arith.addf %201, %200 : vector<2x96xf32>
    %203 = arith.divf %201, %202 : vector<2x96xf32>
    %204 = vector.extract_strided_slice %194 {offsets = [0, 96], sizes = [2, 32], strides = [1, 1]} : vector<2x128xf32> to vector<2x32xf32>
    %205 = math.tanh %204 : vector<2x32xf32>
    %206 = vector.extract_strided_slice %203 {offsets = [0, 0], sizes = [2, 32], strides = [1, 1]} : vector<2x96xf32> to vector<2x32xf32>
    %207 = vector.extract_strided_slice %203 {offsets = [0, 32], sizes = [2, 32], strides = [1, 1]} : vector<2x96xf32> to vector<2x32xf32>
    %208 = vector.extract_strided_slice %203 {offsets = [0, 64], sizes = [2, 32], strides = [1, 1]} : vector<2x96xf32> to vector<2x32xf32>
    %209 = arith.mulf %207, %167 : vector<2x32xf32>
    %210 = arith.mulf %206, %205 : vector<2x32xf32>
    %211 = arith.addf %209, %210 : vector<2x32xf32>
    %212 = math.tanh %211 : vector<2x32xf32>
    %213 = arith.mulf %208, %212 : vector<2x32xf32>
    %214 = vector.extract_strided_slice %197 {offsets = [0, 0], sizes = [2, 96], strides = [1, 1]} : vector<2x128xf32> to vector<2x96xf32>
    %215 = arith.negf %214 : vector<2x96xf32>
    %216 = math.exp %215 : vector<2x96xf32>
    %cst_57 = arith.constant 1.000000e+00 : f32
    %217 = vector.broadcast %cst_57 : f32 to vector<2x96xf32>
    %218 = arith.addf %217, %216 : vector<2x96xf32>
    %219 = arith.divf %217, %218 : vector<2x96xf32>
    %220 = vector.extract_strided_slice %197 {offsets = [0, 96], sizes = [2, 32], strides = [1, 1]} : vector<2x128xf32> to vector<2x32xf32>
    %221 = math.tanh %220 : vector<2x32xf32>
    %222 = vector.extract_strided_slice %219 {offsets = [0, 0], sizes = [2, 32], strides = [1, 1]} : vector<2x96xf32> to vector<2x32xf32>
    %223 = vector.extract_strided_slice %219 {offsets = [0, 32], sizes = [2, 32], strides = [1, 1]} : vector<2x96xf32> to vector<2x32xf32>
    %224 = vector.extract_strided_slice %219 {offsets = [0, 64], sizes = [2, 32], strides = [1, 1]} : vector<2x96xf32> to vector<2x32xf32>
    %225 = arith.mulf %223, %183 : vector<2x32xf32>
    %226 = arith.mulf %222, %221 : vector<2x32xf32>
    %227 = arith.addf %225, %226 : vector<2x32xf32>
    %228 = math.tanh %227 : vector<2x32xf32>
    %229 = arith.mulf %224, %228 : vector<2x32xf32>
    %c4_58 = arith.constant 4 : index
    %c0_59 = arith.constant 0 : index
    %c0_60 = arith.constant 0 : index
    %230 = vector.load %arg14[%c4_58, %c0_59, %c0_60] : memref<8x2x32xf32, #tpu.memory_space<vmem>>, vector<1x2x32xf32>
    %231 = vector.shape_cast %230 : vector<1x2x32xf32> to vector<2x32xf32>
    %232 = vector.shape_cast %213 : vector<2x32xf32> to vector<1x2x32xf32>
    tpu.vector_store %arg14[%c4_58, %c0_59, %c0_60], %232 {strides = array<i32>} : memref<8x2x32xf32, #tpu.memory_space<vmem>>, vector<1x2x32xf32>,
    %c3_61 = arith.constant 3 : index
    %c0_62 = arith.constant 0 : index
    %c0_63 = arith.constant 0 : index
    %233 = vector.load %arg15[%c3_61, %c0_62, %c0_63] : memref<8x2x32xf32, #tpu.memory_space<vmem>>, vector<1x2x32xf32>
    %234 = vector.shape_cast %233 : vector<1x2x32xf32> to vector<2x32xf32>
    %235 = vector.shape_cast %229 : vector<2x32xf32> to vector<1x2x32xf32>
    tpu.vector_store %arg15[%c3_61, %c0_62, %c0_63], %235 {strides = array<i32>} : memref<8x2x32xf32, #tpu.memory_space<vmem>>, vector<1x2x32xf32>,
    %236 = vector.extract_strided_slice %5 {offsets = [10, 0], sizes = [2, 128], strides = [1, 1]} : vector<16x256xf32> to vector<2x128xf32>
    %cst_64 = arith.constant dense<0.000000e+00> : vector<2x128xf32>
    %237 = tpu.matmul %213, %6, %cst_64 {dimension_numbers = #tpu.dot_dimension_numbers<[1], [0], [0], [1], [0, 0, 1, 1], [], []>} : vector<2x32xf32>, vector<32x128xf32>, vector<2x128xf32> -> vector<2x128xf32>
    %238 = arith.addf %236, %237 : vector<2x128xf32>
    %239 = vector.extract_strided_slice %5 {offsets = [4, 128], sizes = [2, 128], strides = [1, 1]} : vector<16x256xf32> to vector<2x128xf32>
    %cst_65 = arith.constant dense<0.000000e+00> : vector<2x128xf32>
    %240 = tpu.matmul %229, %7, %cst_65 {dimension_numbers = #tpu.dot_dimension_numbers<[1], [0], [0], [1], [0, 0, 1, 1], [], []>} : vector<2x32xf32>, vector<32x128xf32>, vector<2x128xf32> -> vector<2x128xf32>
    %241 = arith.addf %239, %240 : vector<2x128xf32>
    %242 = vector.extract_strided_slice %238 {offsets = [0, 0], sizes = [2, 96], strides = [1, 1]} : vector<2x128xf32> to vector<2x96xf32>
    %243 = arith.negf %242 : vector<2x96xf32>
    %244 = math.exp %243 : vector<2x96xf32>
    %cst_66 = arith.constant 1.000000e+00 : f32
    %245 = vector.broadcast %cst_66 : f32 to vector<2x96xf32>
    %246 = arith.addf %245, %244 : vector<2x96xf32>
    %247 = arith.divf %245, %246 : vector<2x96xf32>
    %248 = vector.extract_strided_slice %238 {offsets = [0, 96], sizes = [2, 32], strides = [1, 1]} : vector<2x128xf32> to vector<2x32xf32>
    %249 = math.tanh %248 : vector<2x32xf32>
    %250 = vector.extract_strided_slice %247 {offsets = [0, 0], sizes = [2, 32], strides = [1, 1]} : vector<2x96xf32> to vector<2x32xf32>
    %251 = vector.extract_strided_slice %247 {offsets = [0, 32], sizes = [2, 32], strides = [1, 1]} : vector<2x96xf32> to vector<2x32xf32>
    %252 = vector.extract_strided_slice %247 {offsets = [0, 64], sizes = [2, 32], strides = [1, 1]} : vector<2x96xf32> to vector<2x32xf32>
    %253 = arith.mulf %251, %211 : vector<2x32xf32>
    %254 = arith.mulf %250, %249 : vector<2x32xf32>
    %255 = arith.addf %253, %254 : vector<2x32xf32>
    %256 = math.tanh %255 : vector<2x32xf32>
    %257 = arith.mulf %252, %256 : vector<2x32xf32>
    %258 = vector.extract_strided_slice %241 {offsets = [0, 0], sizes = [2, 96], strides = [1, 1]} : vector<2x128xf32> to vector<2x96xf32>
    %259 = arith.negf %258 : vector<2x96xf32>
    %260 = math.exp %259 : vector<2x96xf32>
    %cst_67 = arith.constant 1.000000e+00 : f32
    %261 = vector.broadcast %cst_67 : f32 to vector<2x96xf32>
    %262 = arith.addf %261, %260 : vector<2x96xf32>
    %263 = arith.divf %261, %262 : vector<2x96xf32>
    %264 = vector.extract_strided_slice %241 {offsets = [0, 96], sizes = [2, 32], strides = [1, 1]} : vector<2x128xf32> to vector<2x32xf32>
    %265 = math.tanh %264 : vector<2x32xf32>
    %266 = vector.extract_strided_slice %263 {offsets = [0, 0], sizes = [2, 32], strides = [1, 1]} : vector<2x96xf32> to vector<2x32xf32>
    %267 = vector.extract_strided_slice %263 {offsets = [0, 32], sizes = [2, 32], strides = [1, 1]} : vector<2x96xf32> to vector<2x32xf32>
    %268 = vector.extract_strided_slice %263 {offsets = [0, 64], sizes = [2, 32], strides = [1, 1]} : vector<2x96xf32> to vector<2x32xf32>
    %269 = arith.mulf %267, %227 : vector<2x32xf32>
    %270 = arith.mulf %266, %265 : vector<2x32xf32>
    %271 = arith.addf %269, %270 : vector<2x32xf32>
    %272 = math.tanh %271 : vector<2x32xf32>
    %273 = arith.mulf %268, %272 : vector<2x32xf32>
    %c5_68 = arith.constant 5 : index
    %c0_69 = arith.constant 0 : index
    %c0_70 = arith.constant 0 : index
    %274 = vector.load %arg14[%c5_68, %c0_69, %c0_70] : memref<8x2x32xf32, #tpu.memory_space<vmem>>, vector<1x2x32xf32>
    %275 = vector.shape_cast %274 : vector<1x2x32xf32> to vector<2x32xf32>
    %276 = vector.shape_cast %257 : vector<2x32xf32> to vector<1x2x32xf32>
    tpu.vector_store %arg14[%c5_68, %c0_69, %c0_70], %276 {strides = array<i32>} : memref<8x2x32xf32, #tpu.memory_space<vmem>>, vector<1x2x32xf32>,
    %c2_71 = arith.constant 2 : index
    %c0_72 = arith.constant 0 : index
    %c0_73 = arith.constant 0 : index
    %277 = vector.load %arg15[%c2_71, %c0_72, %c0_73] : memref<8x2x32xf32, #tpu.memory_space<vmem>>, vector<1x2x32xf32>
    %278 = vector.shape_cast %277 : vector<1x2x32xf32> to vector<2x32xf32>
    %279 = vector.shape_cast %273 : vector<2x32xf32> to vector<1x2x32xf32>
    tpu.vector_store %arg15[%c2_71, %c0_72, %c0_73], %279 {strides = array<i32>} : memref<8x2x32xf32, #tpu.memory_space<vmem>>, vector<1x2x32xf32>,
    %280 = vector.extract_strided_slice %5 {offsets = [12, 0], sizes = [2, 128], strides = [1, 1]} : vector<16x256xf32> to vector<2x128xf32>
    %cst_74 = arith.constant dense<0.000000e+00> : vector<2x128xf32>
    %281 = tpu.matmul %257, %6, %cst_74 {dimension_numbers = #tpu.dot_dimension_numbers<[1], [0], [0], [1], [0, 0, 1, 1], [], []>} : vector<2x32xf32>, vector<32x128xf32>, vector<2x128xf32> -> vector<2x128xf32>
    %282 = arith.addf %280, %281 : vector<2x128xf32>
    %283 = vector.extract_strided_slice %5 {offsets = [2, 128], sizes = [2, 128], strides = [1, 1]} : vector<16x256xf32> to vector<2x128xf32>
    %cst_75 = arith.constant dense<0.000000e+00> : vector<2x128xf32>
    %284 = tpu.matmul %273, %7, %cst_75 {dimension_numbers = #tpu.dot_dimension_numbers<[1], [0], [0], [1], [0, 0, 1, 1], [], []>} : vector<2x32xf32>, vector<32x128xf32>, vector<2x128xf32> -> vector<2x128xf32>
    %285 = arith.addf %283, %284 : vector<2x128xf32>
    %286 = vector.extract_strided_slice %282 {offsets = [0, 0], sizes = [2, 96], strides = [1, 1]} : vector<2x128xf32> to vector<2x96xf32>
    %287 = arith.negf %286 : vector<2x96xf32>
    %288 = math.exp %287 : vector<2x96xf32>
    %cst_76 = arith.constant 1.000000e+00 : f32
    %289 = vector.broadcast %cst_76 : f32 to vector<2x96xf32>
    %290 = arith.addf %289, %288 : vector<2x96xf32>
    %291 = arith.divf %289, %290 : vector<2x96xf32>
    %292 = vector.extract_strided_slice %282 {offsets = [0, 96], sizes = [2, 32], strides = [1, 1]} : vector<2x128xf32> to vector<2x32xf32>
    %293 = math.tanh %292 : vector<2x32xf32>
    %294 = vector.extract_strided_slice %291 {offsets = [0, 0], sizes = [2, 32], strides = [1, 1]} : vector<2x96xf32> to vector<2x32xf32>
    %295 = vector.extract_strided_slice %291 {offsets = [0, 32], sizes = [2, 32], strides = [1, 1]} : vector<2x96xf32> to vector<2x32xf32>
    %296 = vector.extract_strided_slice %291 {offsets = [0, 64], sizes = [2, 32], strides = [1, 1]} : vector<2x96xf32> to vector<2x32xf32>
    %297 = arith.mulf %295, %255 : vector<2x32xf32>
    %298 = arith.mulf %294, %293 : vector<2x32xf32>
    %299 = arith.addf %297, %298 : vector<2x32xf32>
    %300 = math.tanh %299 : vector<2x32xf32>
    %301 = arith.mulf %296, %300 : vector<2x32xf32>
    %302 = vector.extract_strided_slice %285 {offsets = [0, 0], sizes = [2, 96], strides = [1, 1]} : vector<2x128xf32> to vector<2x96xf32>
    %303 = arith.negf %302 : vector<2x96xf32>
    %304 = math.exp %303 : vector<2x96xf32>
    %cst_77 = arith.constant 1.000000e+00 : f32
    %305 = vector.broadcast %cst_77 : f32 to vector<2x96xf32>
    %306 = arith.addf %305, %304 : vector<2x96xf32>
    %307 = arith.divf %305, %306 : vector<2x96xf32>
    %308 = vector.extract_strided_slice %285 {offsets = [0, 96], sizes = [2, 32], strides = [1, 1]} : vector<2x128xf32> to vector<2x32xf32>
    %309 = math.tanh %308 : vector<2x32xf32>
    %310 = vector.extract_strided_slice %307 {offsets = [0, 0], sizes = [2, 32], strides = [1, 1]} : vector<2x96xf32> to vector<2x32xf32>
    %311 = vector.extract_strided_slice %307 {offsets = [0, 32], sizes = [2, 32], strides = [1, 1]} : vector<2x96xf32> to vector<2x32xf32>
    %312 = vector.extract_strided_slice %307 {offsets = [0, 64], sizes = [2, 32], strides = [1, 1]} : vector<2x96xf32> to vector<2x32xf32>
    %313 = arith.mulf %311, %271 : vector<2x32xf32>
    %314 = arith.mulf %310, %309 : vector<2x32xf32>
    %315 = arith.addf %313, %314 : vector<2x32xf32>
    %316 = math.tanh %315 : vector<2x32xf32>
    %317 = arith.mulf %312, %316 : vector<2x32xf32>
    %c6_78 = arith.constant 6 : index
    %c0_79 = arith.constant 0 : index
    %c0_80 = arith.constant 0 : index
    %318 = vector.load %arg14[%c6_78, %c0_79, %c0_80] : memref<8x2x32xf32, #tpu.memory_space<vmem>>, vector<1x2x32xf32>
    %319 = vector.shape_cast %318 : vector<1x2x32xf32> to vector<2x32xf32>
    %320 = vector.shape_cast %301 : vector<2x32xf32> to vector<1x2x32xf32>
    tpu.vector_store %arg14[%c6_78, %c0_79, %c0_80], %320 {strides = array<i32>} : memref<8x2x32xf32, #tpu.memory_space<vmem>>, vector<1x2x32xf32>,
    %c1_81 = arith.constant 1 : index
    %c0_82 = arith.constant 0 : index
    %c0_83 = arith.constant 0 : index
    %321 = vector.load %arg15[%c1_81, %c0_82, %c0_83] : memref<8x2x32xf32, #tpu.memory_space<vmem>>, vector<1x2x32xf32>
    %322 = vector.shape_cast %321 : vector<1x2x32xf32> to vector<2x32xf32>
    %323 = vector.shape_cast %317 : vector<2x32xf32> to vector<1x2x32xf32>
    tpu.vector_store %arg15[%c1_81, %c0_82, %c0_83], %323 {strides = array<i32>} : memref<8x2x32xf32, #tpu.memory_space<vmem>>, vector<1x2x32xf32>,
    %324 = vector.extract_strided_slice %5 {offsets = [14, 0], sizes = [2, 128], strides = [1, 1]} : vector<16x256xf32> to vector<2x128xf32>
    %cst_84 = arith.constant dense<0.000000e+00> : vector<2x128xf32>
    %325 = tpu.matmul %301, %6, %cst_84 {dimension_numbers = #tpu.dot_dimension_numbers<[1], [0], [0], [1], [0, 0, 1, 1], [], []>} : vector<2x32xf32>, vector<32x128xf32>, vector<2x128xf32> -> vector<2x128xf32>
    %326 = arith.addf %324, %325 : vector<2x128xf32>
    %327 = vector.extract_strided_slice %5 {offsets = [0, 128], sizes = [2, 128], strides = [1, 1]} : vector<16x256xf32> to vector<2x128xf32>
    %cst_85 = arith.constant dense<0.000000e+00> : vector<2x128xf32>
    %328 = tpu.matmul %317, %7, %cst_85 {dimension_numbers = #tpu.dot_dimension_numbers<[1], [0], [0], [1], [0, 0, 1, 1], [], []>} : vector<2x32xf32>, vector<32x128xf32>, vector<2x128xf32> -> vector<2x128xf32>
    %329 = arith.addf %327, %328 : vector<2x128xf32>
    %330 = vector.extract_strided_slice %326 {offsets = [0, 0], sizes = [2, 96], strides = [1, 1]} : vector<2x128xf32> to vector<2x96xf32>
    %331 = arith.negf %330 : vector<2x96xf32>
    %332 = math.exp %331 : vector<2x96xf32>
    %cst_86 = arith.constant 1.000000e+00 : f32
    %333 = vector.broadcast %cst_86 : f32 to vector<2x96xf32>
    %334 = arith.addf %333, %332 : vector<2x96xf32>
    %335 = arith.divf %333, %334 : vector<2x96xf32>
    %336 = vector.extract_strided_slice %326 {offsets = [0, 96], sizes = [2, 32], strides = [1, 1]} : vector<2x128xf32> to vector<2x32xf32>
    %337 = math.tanh %336 : vector<2x32xf32>
    %338 = vector.extract_strided_slice %335 {offsets = [0, 0], sizes = [2, 32], strides = [1, 1]} : vector<2x96xf32> to vector<2x32xf32>
    %339 = vector.extract_strided_slice %335 {offsets = [0, 32], sizes = [2, 32], strides = [1, 1]} : vector<2x96xf32> to vector<2x32xf32>
    %340 = vector.extract_strided_slice %335 {offsets = [0, 64], sizes = [2, 32], strides = [1, 1]} : vector<2x96xf32> to vector<2x32xf32>
    %341 = arith.mulf %339, %299 : vector<2x32xf32>
    %342 = arith.mulf %338, %337 : vector<2x32xf32>
    %343 = arith.addf %341, %342 : vector<2x32xf32>
    %344 = math.tanh %343 : vector<2x32xf32>
    %345 = arith.mulf %340, %344 : vector<2x32xf32>
    %346 = vector.extract_strided_slice %329 {offsets = [0, 0], sizes = [2, 96], strides = [1, 1]} : vector<2x128xf32> to vector<2x96xf32>
    %347 = arith.negf %346 : vector<2x96xf32>
    %348 = math.exp %347 : vector<2x96xf32>
    %cst_87 = arith.constant 1.000000e+00 : f32
    %349 = vector.broadcast %cst_87 : f32 to vector<2x96xf32>
    %350 = arith.addf %349, %348 : vector<2x96xf32>
    %351 = arith.divf %349, %350 : vector<2x96xf32>
    %352 = vector.extract_strided_slice %329 {offsets = [0, 96], sizes = [2, 32], strides = [1, 1]} : vector<2x128xf32> to vector<2x32xf32>
    %353 = math.tanh %352 : vector<2x32xf32>
    %354 = vector.extract_strided_slice %351 {offsets = [0, 0], sizes = [2, 32], strides = [1, 1]} : vector<2x96xf32> to vector<2x32xf32>
    %355 = vector.extract_strided_slice %351 {offsets = [0, 32], sizes = [2, 32], strides = [1, 1]} : vector<2x96xf32> to vector<2x32xf32>
    %356 = vector.extract_strided_slice %351 {offsets = [0, 64], sizes = [2, 32], strides = [1, 1]} : vector<2x96xf32> to vector<2x32xf32>
    %357 = arith.mulf %355, %315 : vector<2x32xf32>
    %358 = arith.mulf %354, %353 : vector<2x32xf32>
    %359 = arith.addf %357, %358 : vector<2x32xf32>
    %360 = math.tanh %359 : vector<2x32xf32>
    %361 = arith.mulf %356, %360 : vector<2x32xf32>
    %c7_88 = arith.constant 7 : index
    %c0_89 = arith.constant 0 : index
    %c0_90 = arith.constant 0 : index
    %362 = vector.load %arg14[%c7_88, %c0_89, %c0_90] : memref<8x2x32xf32, #tpu.memory_space<vmem>>, vector<1x2x32xf32>
    %363 = vector.shape_cast %362 : vector<1x2x32xf32> to vector<2x32xf32>
    %364 = vector.shape_cast %345 : vector<2x32xf32> to vector<1x2x32xf32>
    tpu.vector_store %arg14[%c7_88, %c0_89, %c0_90], %364 {strides = array<i32>} : memref<8x2x32xf32, #tpu.memory_space<vmem>>, vector<1x2x32xf32>,
    %c0_91 = arith.constant 0 : index
    %c0_92 = arith.constant 0 : index
    %c0_93 = arith.constant 0 : index
    %365 = vector.load %arg15[%c0_91, %c0_92, %c0_93] : memref<8x2x32xf32, #tpu.memory_space<vmem>>, vector<1x2x32xf32>
    %366 = vector.shape_cast %365 : vector<1x2x32xf32> to vector<2x32xf32>
    %367 = vector.shape_cast %361 : vector<2x32xf32> to vector<1x2x32xf32>
    tpu.vector_store %arg15[%c0_91, %c0_92, %c0_93], %367 {strides = array<i32>} : memref<8x2x32xf32, #tpu.memory_space<vmem>>, vector<1x2x32xf32>,
    %c0_94 = arith.constant 0 : index
    %c0_95 = arith.constant 0 : index
    %c0_96 = arith.constant 0 : index
    %368 = vector.load %arg14[%c0_94, %c0_95, %c0_96] : memref<8x2x32xf32, #tpu.memory_space<vmem>>, vector<1x2x32xf32>
    %369 = vector.shape_cast %368 : vector<1x2x32xf32> to vector<2x32xf32>
    %c0_97 = arith.constant 0 : index
    %c0_98 = arith.constant 0 : index
    %c0_99 = arith.constant 0 : index
    %370 = vector.load %arg15[%c0_97, %c0_98, %c0_99] : memref<8x2x32xf32, #tpu.memory_space<vmem>>, vector<1x2x32xf32>
    %371 = vector.shape_cast %370 : vector<1x2x32xf32> to vector<2x32xf32>
    %372 = tpu.concatenate %369, %371 in 1 : vector<2x32xf32>, vector<2x32xf32> -> vector<2x64xf32>
    %c1_100 = arith.constant 1 : index
    %c0_101 = arith.constant 0 : index
    %c0_102 = arith.constant 0 : index
    %373 = vector.load %arg14[%c1_100, %c0_101, %c0_102] : memref<8x2x32xf32, #tpu.memory_space<vmem>>, vector<1x2x32xf32>
    %374 = vector.shape_cast %373 : vector<1x2x32xf32> to vector<2x32xf32>
    %c1_103 = arith.constant 1 : index
    %c0_104 = arith.constant 0 : index
    %c0_105 = arith.constant 0 : index
    %375 = vector.load %arg15[%c1_103, %c0_104, %c0_105] : memref<8x2x32xf32, #tpu.memory_space<vmem>>, vector<1x2x32xf32>
    %376 = vector.shape_cast %375 : vector<1x2x32xf32> to vector<2x32xf32>
    %377 = tpu.concatenate %374, %376 in 1 : vector<2x32xf32>, vector<2x32xf32> -> vector<2x64xf32>
    %c2_106 = arith.constant 2 : index
    %c0_107 = arith.constant 0 : index
    %c0_108 = arith.constant 0 : index
    %378 = vector.load %arg14[%c2_106, %c0_107, %c0_108] : memref<8x2x32xf32, #tpu.memory_space<vmem>>, vector<1x2x32xf32>
    %379 = vector.shape_cast %378 : vector<1x2x32xf32> to vector<2x32xf32>
    %c2_109 = arith.constant 2 : index
    %c0_110 = arith.constant 0 : index
    %c0_111 = arith.constant 0 : index
    %380 = vector.load %arg15[%c2_109, %c0_110, %c0_111] : memref<8x2x32xf32, #tpu.memory_space<vmem>>, vector<1x2x32xf32>
    %381 = vector.shape_cast %380 : vector<1x2x32xf32> to vector<2x32xf32>
    %382 = tpu.concatenate %379, %381 in 1 : vector<2x32xf32>, vector<2x32xf32> -> vector<2x64xf32>
    %c3_112 = arith.constant 3 : index
    %c0_113 = arith.constant 0 : index
    %c0_114 = arith.constant 0 : index
    %383 = vector.load %arg14[%c3_112, %c0_113, %c0_114] : memref<8x2x32xf32, #tpu.memory_space<vmem>>, vector<1x2x32xf32>
    %384 = vector.shape_cast %383 : vector<1x2x32xf32> to vector<2x32xf32>
    %c3_115 = arith.constant 3 : index
    %c0_116 = arith.constant 0 : index
    %c0_117 = arith.constant 0 : index
    %385 = vector.load %arg15[%c3_115, %c0_116, %c0_117] : memref<8x2x32xf32, #tpu.memory_space<vmem>>, vector<1x2x32xf32>
    %386 = vector.shape_cast %385 : vector<1x2x32xf32> to vector<2x32xf32>
    %387 = tpu.concatenate %384, %386 in 1 : vector<2x32xf32>, vector<2x32xf32> -> vector<2x64xf32>
    %c4_118 = arith.constant 4 : index
    %c0_119 = arith.constant 0 : index
    %c0_120 = arith.constant 0 : index
    %388 = vector.load %arg14[%c4_118, %c0_119, %c0_120] : memref<8x2x32xf32, #tpu.memory_space<vmem>>, vector<1x2x32xf32>
    %389 = vector.shape_cast %388 : vector<1x2x32xf32> to vector<2x32xf32>
    %c4_121 = arith.constant 4 : index
    %c0_122 = arith.constant 0 : index
    %c0_123 = arith.constant 0 : index
    %390 = vector.load %arg15[%c4_121, %c0_122, %c0_123] : memref<8x2x32xf32, #tpu.memory_space<vmem>>, vector<1x2x32xf32>
    %391 = vector.shape_cast %390 : vector<1x2x32xf32> to vector<2x32xf32>
    %392 = tpu.concatenate %389, %391 in 1 : vector<2x32xf32>, vector<2x32xf32> -> vector<2x64xf32>
    %c5_124 = arith.constant 5 : index
    %c0_125 = arith.constant 0 : index
    %c0_126 = arith.constant 0 : index
    %393 = vector.load %arg14[%c5_124, %c0_125, %c0_126] : memref<8x2x32xf32, #tpu.memory_space<vmem>>, vector<1x2x32xf32>
    %394 = vector.shape_cast %393 : vector<1x2x32xf32> to vector<2x32xf32>
    %c5_127 = arith.constant 5 : index
    %c0_128 = arith.constant 0 : index
    %c0_129 = arith.constant 0 : index
    %395 = vector.load %arg15[%c5_127, %c0_128, %c0_129] : memref<8x2x32xf32, #tpu.memory_space<vmem>>, vector<1x2x32xf32>
    %396 = vector.shape_cast %395 : vector<1x2x32xf32> to vector<2x32xf32>
    %397 = tpu.concatenate %394, %396 in 1 : vector<2x32xf32>, vector<2x32xf32> -> vector<2x64xf32>
    %c6_130 = arith.constant 6 : index
    %c0_131 = arith.constant 0 : index
    %c0_132 = arith.constant 0 : index
    %398 = vector.load %arg14[%c6_130, %c0_131, %c0_132] : memref<8x2x32xf32, #tpu.memory_space<vmem>>, vector<1x2x32xf32>
    %399 = vector.shape_cast %398 : vector<1x2x32xf32> to vector<2x32xf32>
    %c6_133 = arith.constant 6 : index
    %c0_134 = arith.constant 0 : index
    %c0_135 = arith.constant 0 : index
    %400 = vector.load %arg15[%c6_133, %c0_134, %c0_135] : memref<8x2x32xf32, #tpu.memory_space<vmem>>, vector<1x2x32xf32>
    %401 = vector.shape_cast %400 : vector<1x2x32xf32> to vector<2x32xf32>
    %402 = tpu.concatenate %399, %401 in 1 : vector<2x32xf32>, vector<2x32xf32> -> vector<2x64xf32>
    %c7_136 = arith.constant 7 : index
    %c0_137 = arith.constant 0 : index
    %c0_138 = arith.constant 0 : index
    %403 = vector.load %arg14[%c7_136, %c0_137, %c0_138] : memref<8x2x32xf32, #tpu.memory_space<vmem>>, vector<1x2x32xf32>
    %404 = vector.shape_cast %403 : vector<1x2x32xf32> to vector<2x32xf32>
    %c7_139 = arith.constant 7 : index
    %c0_140 = arith.constant 0 : index
    %c0_141 = arith.constant 0 : index
    %405 = vector.load %arg15[%c7_139, %c0_140, %c0_141] : memref<8x2x32xf32, #tpu.memory_space<vmem>>, vector<1x2x32xf32>
    %406 = vector.shape_cast %405 : vector<1x2x32xf32> to vector<2x32xf32>
    %407 = tpu.concatenate %404, %406 in 1 : vector<2x32xf32>, vector<2x32xf32> -> vector<2x64xf32>
    %408 = tpu.concatenate %372, %377, %382, %387, %392, %397, %402, %407 in 0 : vector<2x64xf32>, vector<2x64xf32>, vector<2x64xf32>, vector<2x64xf32>, vector<2x64xf32>, vector<2x64xf32>, vector<2x64xf32>, vector<2x64xf32> -> vector<16x64xf32>
    %c0_142 = arith.constant 0 : index
    %c0_143 = arith.constant 0 : index
    %409 = vector.load %arg7[%c0_142, %c0_143] : memref<64x256xf32, #tpu.memory_space<vmem>>, vector<64x256xf32>
    %cst_144 = arith.constant dense<0.000000e+00> : vector<16x256xf32>
    %410 = tpu.matmul %408, %409, %cst_144 {dimension_numbers = #tpu.dot_dimension_numbers<[1], [0], [0], [1], [0, 0, 1, 1], [], []>} : vector<16x64xf32>, vector<64x256xf32>, vector<16x256xf32> -> vector<16x256xf32>
    %c0_145 = arith.constant 0 : index
    %c0_146 = arith.constant 0 : index
    %411 = vector.load %arg8[%c0_145, %c0_146] : memref<1x256xf32, #tpu.memory_space<vmem>>, vector<1x256xf32>
    %412 = vector.broadcast %411 : vector<1x256xf32> to vector<16x256xf32>
    %413 = arith.addf %410, %412 : vector<16x256xf32>
    %c0_147 = arith.constant 0 : index
    %c0_148 = arith.constant 0 : index
    %414 = vector.load %arg9[%c0_147, %c0_148] : memref<32x128xf32, #tpu.memory_space<vmem>>, vector<32x128xf32>
    %c0_149 = arith.constant 0 : index
    %c0_150 = arith.constant 0 : index
    %415 = vector.load %arg10[%c0_149, %c0_150] : memref<32x128xf32, #tpu.memory_space<vmem>>, vector<32x128xf32>
    %c2_151 = arith.constant 2 : index
    %c0_152 = arith.constant 0 : index
    %c0_153 = arith.constant 0 : index
    %416 = vector.load %arg1[%c2_151, %c0_152, %c0_153] : memref<4x2x32xf32, #tpu.memory_space<vmem>>, vector<1x2x32xf32>
    %417 = vector.shape_cast %416 : vector<1x2x32xf32> to vector<2x32xf32>
    %c2_154 = arith.constant 2 : index
    %c0_155 = arith.constant 0 : index
    %c0_156 = arith.constant 0 : index
    %418 = vector.load %arg2[%c2_154, %c0_155, %c0_156] : memref<4x2x32xf32, #tpu.memory_space<vmem>>, vector<1x2x32xf32>
    %419 = vector.shape_cast %418 : vector<1x2x32xf32> to vector<2x32xf32>
    %c3_157 = arith.constant 3 : index
    %c0_158 = arith.constant 0 : index
    %c0_159 = arith.constant 0 : index
    %420 = vector.load %arg1[%c3_157, %c0_158, %c0_159] : memref<4x2x32xf32, #tpu.memory_space<vmem>>, vector<1x2x32xf32>
    %421 = vector.shape_cast %420 : vector<1x2x32xf32> to vector<2x32xf32>
    %c3_160 = arith.constant 3 : index
    %c0_161 = arith.constant 0 : index
    %c0_162 = arith.constant 0 : index
    %422 = vector.load %arg2[%c3_160, %c0_161, %c0_162] : memref<4x2x32xf32, #tpu.memory_space<vmem>>, vector<1x2x32xf32>
    %423 = vector.shape_cast %422 : vector<1x2x32xf32> to vector<2x32xf32>
    %424 = vector.extract_strided_slice %413 {offsets = [0, 0], sizes = [2, 128], strides = [1, 1]} : vector<16x256xf32> to vector<2x128xf32>
    %cst_163 = arith.constant dense<0.000000e+00> : vector<2x128xf32>
    %425 = tpu.matmul %417, %414, %cst_163 {dimension_numbers = #tpu.dot_dimension_numbers<[1], [0], [0], [1], [0, 0, 1, 1], [], []>} : vector<2x32xf32>, vector<32x128xf32>, vector<2x128xf32> -> vector<2x128xf32>
    %426 = arith.addf %424, %425 : vector<2x128xf32>
    %427 = vector.extract_strided_slice %413 {offsets = [14, 128], sizes = [2, 128], strides = [1, 1]} : vector<16x256xf32> to vector<2x128xf32>
    %cst_164 = arith.constant dense<0.000000e+00> : vector<2x128xf32>
    %428 = tpu.matmul %421, %415, %cst_164 {dimension_numbers = #tpu.dot_dimension_numbers<[1], [0], [0], [1], [0, 0, 1, 1], [], []>} : vector<2x32xf32>, vector<32x128xf32>, vector<2x128xf32> -> vector<2x128xf32>
    %429 = arith.addf %427, %428 : vector<2x128xf32>
    %430 = vector.extract_strided_slice %426 {offsets = [0, 0], sizes = [2, 96], strides = [1, 1]} : vector<2x128xf32> to vector<2x96xf32>
    %431 = arith.negf %430 : vector<2x96xf32>
    %432 = math.exp %431 : vector<2x96xf32>
    %cst_165 = arith.constant 1.000000e+00 : f32
    %433 = vector.broadcast %cst_165 : f32 to vector<2x96xf32>
    %434 = arith.addf %433, %432 : vector<2x96xf32>
    %435 = arith.divf %433, %434 : vector<2x96xf32>
    %436 = vector.extract_strided_slice %426 {offsets = [0, 96], sizes = [2, 32], strides = [1, 1]} : vector<2x128xf32> to vector<2x32xf32>
    %437 = math.tanh %436 : vector<2x32xf32>
    %438 = vector.extract_strided_slice %435 {offsets = [0, 0], sizes = [2, 32], strides = [1, 1]} : vector<2x96xf32> to vector<2x32xf32>
    %439 = vector.extract_strided_slice %435 {offsets = [0, 32], sizes = [2, 32], strides = [1, 1]} : vector<2x96xf32> to vector<2x32xf32>
    %440 = vector.extract_strided_slice %435 {offsets = [0, 64], sizes = [2, 32], strides = [1, 1]} : vector<2x96xf32> to vector<2x32xf32>
    %441 = arith.mulf %439, %419 : vector<2x32xf32>
    %442 = arith.mulf %438, %437 : vector<2x32xf32>
    %443 = arith.addf %441, %442 : vector<2x32xf32>
    %444 = math.tanh %443 : vector<2x32xf32>
    %445 = arith.mulf %440, %444 : vector<2x32xf32>
    %446 = vector.extract_strided_slice %429 {offsets = [0, 0], sizes = [2, 96], strides = [1, 1]} : vector<2x128xf32> to vector<2x96xf32>
    %447 = arith.negf %446 : vector<2x96xf32>
    %448 = math.exp %447 : vector<2x96xf32>
    %cst_166 = arith.constant 1.000000e+00 : f32
    %449 = vector.broadcast %cst_166 : f32 to vector<2x96xf32>
    %450 = arith.addf %449, %448 : vector<2x96xf32>
    %451 = arith.divf %449, %450 : vector<2x96xf32>
    %452 = vector.extract_strided_slice %429 {offsets = [0, 96], sizes = [2, 32], strides = [1, 1]} : vector<2x128xf32> to vector<2x32xf32>
    %453 = math.tanh %452 : vector<2x32xf32>
    %454 = vector.extract_strided_slice %451 {offsets = [0, 0], sizes = [2, 32], strides = [1, 1]} : vector<2x96xf32> to vector<2x32xf32>
    %455 = vector.extract_strided_slice %451 {offsets = [0, 32], sizes = [2, 32], strides = [1, 1]} : vector<2x96xf32> to vector<2x32xf32>
    %456 = vector.extract_strided_slice %451 {offsets = [0, 64], sizes = [2, 32], strides = [1, 1]} : vector<2x96xf32> to vector<2x32xf32>
    %457 = arith.mulf %455, %423 : vector<2x32xf32>
    %458 = arith.mulf %454, %453 : vector<2x32xf32>
    %459 = arith.addf %457, %458 : vector<2x32xf32>
    %460 = math.tanh %459 : vector<2x32xf32>
    %461 = arith.mulf %456, %460 : vector<2x32xf32>
    %462 = vector.extract_strided_slice %413 {offsets = [2, 0], sizes = [2, 128], strides = [1, 1]} : vector<16x256xf32> to vector<2x128xf32>
    %cst_167 = arith.constant dense<0.000000e+00> : vector<2x128xf32>
    %463 = tpu.matmul %445, %414, %cst_167 {dimension_numbers = #tpu.dot_dimension_numbers<[1], [0], [0], [1], [0, 0, 1, 1], [], []>} : vector<2x32xf32>, vector<32x128xf32>, vector<2x128xf32> -> vector<2x128xf32>
    %464 = arith.addf %462, %463 : vector<2x128xf32>
    %465 = vector.extract_strided_slice %413 {offsets = [12, 128], sizes = [2, 128], strides = [1, 1]} : vector<16x256xf32> to vector<2x128xf32>
    %cst_168 = arith.constant dense<0.000000e+00> : vector<2x128xf32>
    %466 = tpu.matmul %461, %415, %cst_168 {dimension_numbers = #tpu.dot_dimension_numbers<[1], [0], [0], [1], [0, 0, 1, 1], [], []>} : vector<2x32xf32>, vector<32x128xf32>, vector<2x128xf32> -> vector<2x128xf32>
    %467 = arith.addf %465, %466 : vector<2x128xf32>
    %468 = vector.extract_strided_slice %464 {offsets = [0, 0], sizes = [2, 96], strides = [1, 1]} : vector<2x128xf32> to vector<2x96xf32>
    %469 = arith.negf %468 : vector<2x96xf32>
    %470 = math.exp %469 : vector<2x96xf32>
    %cst_169 = arith.constant 1.000000e+00 : f32
    %471 = vector.broadcast %cst_169 : f32 to vector<2x96xf32>
    %472 = arith.addf %471, %470 : vector<2x96xf32>
    %473 = arith.divf %471, %472 : vector<2x96xf32>
    %474 = vector.extract_strided_slice %464 {offsets = [0, 96], sizes = [2, 32], strides = [1, 1]} : vector<2x128xf32> to vector<2x32xf32>
    %475 = math.tanh %474 : vector<2x32xf32>
    %476 = vector.extract_strided_slice %473 {offsets = [0, 0], sizes = [2, 32], strides = [1, 1]} : vector<2x96xf32> to vector<2x32xf32>
    %477 = vector.extract_strided_slice %473 {offsets = [0, 32], sizes = [2, 32], strides = [1, 1]} : vector<2x96xf32> to vector<2x32xf32>
    %478 = vector.extract_strided_slice %473 {offsets = [0, 64], sizes = [2, 32], strides = [1, 1]} : vector<2x96xf32> to vector<2x32xf32>
    %479 = arith.mulf %477, %443 : vector<2x32xf32>
    %480 = arith.mulf %476, %475 : vector<2x32xf32>
    %481 = arith.addf %479, %480 : vector<2x32xf32>
    %482 = math.tanh %481 : vector<2x32xf32>
    %483 = arith.mulf %478, %482 : vector<2x32xf32>
    %484 = vector.extract_strided_slice %467 {offsets = [0, 0], sizes = [2, 96], strides = [1, 1]} : vector<2x128xf32> to vector<2x96xf32>
    %485 = arith.negf %484 : vector<2x96xf32>
    %486 = math.exp %485 : vector<2x96xf32>
    %cst_170 = arith.constant 1.000000e+00 : f32
    %487 = vector.broadcast %cst_170 : f32 to vector<2x96xf32>
    %488 = arith.addf %487, %486 : vector<2x96xf32>
    %489 = arith.divf %487, %488 : vector<2x96xf32>
    %490 = vector.extract_strided_slice %467 {offsets = [0, 96], sizes = [2, 32], strides = [1, 1]} : vector<2x128xf32> to vector<2x32xf32>
    %491 = math.tanh %490 : vector<2x32xf32>
    %492 = vector.extract_strided_slice %489 {offsets = [0, 0], sizes = [2, 32], strides = [1, 1]} : vector<2x96xf32> to vector<2x32xf32>
    %493 = vector.extract_strided_slice %489 {offsets = [0, 32], sizes = [2, 32], strides = [1, 1]} : vector<2x96xf32> to vector<2x32xf32>
    %494 = vector.extract_strided_slice %489 {offsets = [0, 64], sizes = [2, 32], strides = [1, 1]} : vector<2x96xf32> to vector<2x32xf32>
    %495 = arith.mulf %493, %459 : vector<2x32xf32>
    %496 = arith.mulf %492, %491 : vector<2x32xf32>
    %497 = arith.addf %495, %496 : vector<2x32xf32>
    %498 = math.tanh %497 : vector<2x32xf32>
    %499 = arith.mulf %494, %498 : vector<2x32xf32>
    %500 = vector.extract_strided_slice %413 {offsets = [4, 0], sizes = [2, 128], strides = [1, 1]} : vector<16x256xf32> to vector<2x128xf32>
    %cst_171 = arith.constant dense<0.000000e+00> : vector<2x128xf32>
    %501 = tpu.matmul %483, %414, %cst_171 {dimension_numbers = #tpu.dot_dimension_numbers<[1], [0], [0], [1], [0, 0, 1, 1], [], []>} : vector<2x32xf32>, vector<32x128xf32>, vector<2x128xf32> -> vector<2x128xf32>
    %502 = arith.addf %500, %501 : vector<2x128xf32>
    %503 = vector.extract_strided_slice %413 {offsets = [10, 128], sizes = [2, 128], strides = [1, 1]} : vector<16x256xf32> to vector<2x128xf32>
    %cst_172 = arith.constant dense<0.000000e+00> : vector<2x128xf32>
    %504 = tpu.matmul %499, %415, %cst_172 {dimension_numbers = #tpu.dot_dimension_numbers<[1], [0], [0], [1], [0, 0, 1, 1], [], []>} : vector<2x32xf32>, vector<32x128xf32>, vector<2x128xf32> -> vector<2x128xf32>
    %505 = arith.addf %503, %504 : vector<2x128xf32>
    %506 = vector.extract_strided_slice %502 {offsets = [0, 0], sizes = [2, 96], strides = [1, 1]} : vector<2x128xf32> to vector<2x96xf32>
    %507 = arith.negf %506 : vector<2x96xf32>
    %508 = math.exp %507 : vector<2x96xf32>
    %cst_173 = arith.constant 1.000000e+00 : f32
    %509 = vector.broadcast %cst_173 : f32 to vector<2x96xf32>
    %510 = arith.addf %509, %508 : vector<2x96xf32>
    %511 = arith.divf %509, %510 : vector<2x96xf32>
    %512 = vector.extract_strided_slice %502 {offsets = [0, 96], sizes = [2, 32], strides = [1, 1]} : vector<2x128xf32> to vector<2x32xf32>
    %513 = math.tanh %512 : vector<2x32xf32>
    %514 = vector.extract_strided_slice %511 {offsets = [0, 0], sizes = [2, 32], strides = [1, 1]} : vector<2x96xf32> to vector<2x32xf32>
    %515 = vector.extract_strided_slice %511 {offsets = [0, 32], sizes = [2, 32], strides = [1, 1]} : vector<2x96xf32> to vector<2x32xf32>
    %516 = vector.extract_strided_slice %511 {offsets = [0, 64], sizes = [2, 32], strides = [1, 1]} : vector<2x96xf32> to vector<2x32xf32>
    %517 = arith.mulf %515, %481 : vector<2x32xf32>
    %518 = arith.mulf %514, %513 : vector<2x32xf32>
    %519 = arith.addf %517, %518 : vector<2x32xf32>
    %520 = math.tanh %519 : vector<2x32xf32>
    %521 = arith.mulf %516, %520 : vector<2x32xf32>
    %522 = vector.extract_strided_slice %505 {offsets = [0, 0], sizes = [2, 96], strides = [1, 1]} : vector<2x128xf32> to vector<2x96xf32>
    %523 = arith.negf %522 : vector<2x96xf32>
    %524 = math.exp %523 : vector<2x96xf32>
    %cst_174 = arith.constant 1.000000e+00 : f32
    %525 = vector.broadcast %cst_174 : f32 to vector<2x96xf32>
    %526 = arith.addf %525, %524 : vector<2x96xf32>
    %527 = arith.divf %525, %526 : vector<2x96xf32>
    %528 = vector.extract_strided_slice %505 {offsets = [0, 96], sizes = [2, 32], strides = [1, 1]} : vector<2x128xf32> to vector<2x32xf32>
    %529 = math.tanh %528 : vector<2x32xf32>
    %530 = vector.extract_strided_slice %527 {offsets = [0, 0], sizes = [2, 32], strides = [1, 1]} : vector<2x96xf32> to vector<2x32xf32>
    %531 = vector.extract_strided_slice %527 {offsets = [0, 32], sizes = [2, 32], strides = [1, 1]} : vector<2x96xf32> to vector<2x32xf32>
    %532 = vector.extract_strided_slice %527 {offsets = [0, 64], sizes = [2, 32], strides = [1, 1]} : vector<2x96xf32> to vector<2x32xf32>
    %533 = arith.mulf %531, %497 : vector<2x32xf32>
    %534 = arith.mulf %530, %529 : vector<2x32xf32>
    %535 = arith.addf %533, %534 : vector<2x32xf32>
    %536 = math.tanh %535 : vector<2x32xf32>
    %537 = arith.mulf %532, %536 : vector<2x32xf32>
    %538 = vector.extract_strided_slice %413 {offsets = [6, 0], sizes = [2, 128], strides = [1, 1]} : vector<16x256xf32> to vector<2x128xf32>
    %cst_175 = arith.constant dense<0.000000e+00> : vector<2x128xf32>
    %539 = tpu.matmul %521, %414, %cst_175 {dimension_numbers = #tpu.dot_dimension_numbers<[1], [0], [0], [1], [0, 0, 1, 1], [], []>} : vector<2x32xf32>, vector<32x128xf32>, vector<2x128xf32> -> vector<2x128xf32>
    %540 = arith.addf %538, %539 : vector<2x128xf32>
    %541 = vector.extract_strided_slice %413 {offsets = [8, 128], sizes = [2, 128], strides = [1, 1]} : vector<16x256xf32> to vector<2x128xf32>
    %cst_176 = arith.constant dense<0.000000e+00> : vector<2x128xf32>
    %542 = tpu.matmul %537, %415, %cst_176 {dimension_numbers = #tpu.dot_dimension_numbers<[1], [0], [0], [1], [0, 0, 1, 1], [], []>} : vector<2x32xf32>, vector<32x128xf32>, vector<2x128xf32> -> vector<2x128xf32>
    %543 = arith.addf %541, %542 : vector<2x128xf32>
    %544 = vector.extract_strided_slice %540 {offsets = [0, 0], sizes = [2, 96], strides = [1, 1]} : vector<2x128xf32> to vector<2x96xf32>
    %545 = arith.negf %544 : vector<2x96xf32>
    %546 = math.exp %545 : vector<2x96xf32>
    %cst_177 = arith.constant 1.000000e+00 : f32
    %547 = vector.broadcast %cst_177 : f32 to vector<2x96xf32>
    %548 = arith.addf %547, %546 : vector<2x96xf32>
    %549 = arith.divf %547, %548 : vector<2x96xf32>
    %550 = vector.extract_strided_slice %540 {offsets = [0, 96], sizes = [2, 32], strides = [1, 1]} : vector<2x128xf32> to vector<2x32xf32>
    %551 = math.tanh %550 : vector<2x32xf32>
    %552 = vector.extract_strided_slice %549 {offsets = [0, 0], sizes = [2, 32], strides = [1, 1]} : vector<2x96xf32> to vector<2x32xf32>
    %553 = vector.extract_strided_slice %549 {offsets = [0, 32], sizes = [2, 32], strides = [1, 1]} : vector<2x96xf32> to vector<2x32xf32>
    %554 = vector.extract_strided_slice %549 {offsets = [0, 64], sizes = [2, 32], strides = [1, 1]} : vector<2x96xf32> to vector<2x32xf32>
    %555 = arith.mulf %553, %519 : vector<2x32xf32>
    %556 = arith.mulf %552, %551 : vector<2x32xf32>
    %557 = arith.addf %555, %556 : vector<2x32xf32>
    %558 = math.tanh %557 : vector<2x32xf32>
    %559 = arith.mulf %554, %558 : vector<2x32xf32>
    %560 = vector.extract_strided_slice %543 {offsets = [0, 0], sizes = [2, 96], strides = [1, 1]} : vector<2x128xf32> to vector<2x96xf32>
    %561 = arith.negf %560 : vector<2x96xf32>
    %562 = math.exp %561 : vector<2x96xf32>
    %cst_178 = arith.constant 1.000000e+00 : f32
    %563 = vector.broadcast %cst_178 : f32 to vector<2x96xf32>
    %564 = arith.addf %563, %562 : vector<2x96xf32>
    %565 = arith.divf %563, %564 : vector<2x96xf32>
    %566 = vector.extract_strided_slice %543 {offsets = [0, 96], sizes = [2, 32], strides = [1, 1]} : vector<2x128xf32> to vector<2x32xf32>
    %567 = math.tanh %566 : vector<2x32xf32>
    %568 = vector.extract_strided_slice %565 {offsets = [0, 0], sizes = [2, 32], strides = [1, 1]} : vector<2x96xf32> to vector<2x32xf32>
    %569 = vector.extract_strided_slice %565 {offsets = [0, 32], sizes = [2, 32], strides = [1, 1]} : vector<2x96xf32> to vector<2x32xf32>
    %570 = vector.extract_strided_slice %565 {offsets = [0, 64], sizes = [2, 32], strides = [1, 1]} : vector<2x96xf32> to vector<2x32xf32>
    %571 = arith.mulf %569, %535 : vector<2x32xf32>
    %572 = arith.mulf %568, %567 : vector<2x32xf32>
    %573 = arith.addf %571, %572 : vector<2x32xf32>
    %574 = math.tanh %573 : vector<2x32xf32>
    %575 = arith.mulf %570, %574 : vector<2x32xf32>
    %576 = vector.extract_strided_slice %413 {offsets = [8, 0], sizes = [2, 128], strides = [1, 1]} : vector<16x256xf32> to vector<2x128xf32>
    %cst_179 = arith.constant dense<0.000000e+00> : vector<2x128xf32>
    %577 = tpu.matmul %559, %414, %cst_179 {dimension_numbers = #tpu.dot_dimension_numbers<[1], [0], [0], [1], [0, 0, 1, 1], [], []>} : vector<2x32xf32>, vector<32x128xf32>, vector<2x128xf32> -> vector<2x128xf32>
    %578 = arith.addf %576, %577 : vector<2x128xf32>
    %579 = vector.extract_strided_slice %413 {offsets = [6, 128], sizes = [2, 128], strides = [1, 1]} : vector<16x256xf32> to vector<2x128xf32>
    %cst_180 = arith.constant dense<0.000000e+00> : vector<2x128xf32>
    %580 = tpu.matmul %575, %415, %cst_180 {dimension_numbers = #tpu.dot_dimension_numbers<[1], [0], [0], [1], [0, 0, 1, 1], [], []>} : vector<2x32xf32>, vector<32x128xf32>, vector<2x128xf32> -> vector<2x128xf32>
    %581 = arith.addf %579, %580 : vector<2x128xf32>
    %582 = vector.extract_strided_slice %578 {offsets = [0, 0], sizes = [2, 96], strides = [1, 1]} : vector<2x128xf32> to vector<2x96xf32>
    %583 = arith.negf %582 : vector<2x96xf32>
    %584 = math.exp %583 : vector<2x96xf32>
    %cst_181 = arith.constant 1.000000e+00 : f32
    %585 = vector.broadcast %cst_181 : f32 to vector<2x96xf32>
    %586 = arith.addf %585, %584 : vector<2x96xf32>
    %587 = arith.divf %585, %586 : vector<2x96xf32>
    %588 = vector.extract_strided_slice %578 {offsets = [0, 96], sizes = [2, 32], strides = [1, 1]} : vector<2x128xf32> to vector<2x32xf32>
    %589 = math.tanh %588 : vector<2x32xf32>
    %590 = vector.extract_strided_slice %587 {offsets = [0, 0], sizes = [2, 32], strides = [1, 1]} : vector<2x96xf32> to vector<2x32xf32>
    %591 = vector.extract_strided_slice %587 {offsets = [0, 32], sizes = [2, 32], strides = [1, 1]} : vector<2x96xf32> to vector<2x32xf32>
    %592 = vector.extract_strided_slice %587 {offsets = [0, 64], sizes = [2, 32], strides = [1, 1]} : vector<2x96xf32> to vector<2x32xf32>
    %593 = arith.mulf %591, %557 : vector<2x32xf32>
    %594 = arith.mulf %590, %589 : vector<2x32xf32>
    %595 = arith.addf %593, %594 : vector<2x32xf32>
    %596 = math.tanh %595 : vector<2x32xf32>
    %597 = arith.mulf %592, %596 : vector<2x32xf32>
    %598 = vector.extract_strided_slice %581 {offsets = [0, 0], sizes = [2, 96], strides = [1, 1]} : vector<2x128xf32> to vector<2x96xf32>
    %599 = arith.negf %598 : vector<2x96xf32>
    %600 = math.exp %599 : vector<2x96xf32>
    %cst_182 = arith.constant 1.000000e+00 : f32
    %601 = vector.broadcast %cst_182 : f32 to vector<2x96xf32>
    %602 = arith.addf %601, %600 : vector<2x96xf32>
    %603 = arith.divf %601, %602 : vector<2x96xf32>
    %604 = vector.extract_strided_slice %581 {offsets = [0, 96], sizes = [2, 32], strides = [1, 1]} : vector<2x128xf32> to vector<2x32xf32>
    %605 = math.tanh %604 : vector<2x32xf32>
    %606 = vector.extract_strided_slice %603 {offsets = [0, 0], sizes = [2, 32], strides = [1, 1]} : vector<2x96xf32> to vector<2x32xf32>
    %607 = vector.extract_strided_slice %603 {offsets = [0, 32], sizes = [2, 32], strides = [1, 1]} : vector<2x96xf32> to vector<2x32xf32>
    %608 = vector.extract_strided_slice %603 {offsets = [0, 64], sizes = [2, 32], strides = [1, 1]} : vector<2x96xf32> to vector<2x32xf32>
    %609 = arith.mulf %607, %573 : vector<2x32xf32>
    %610 = arith.mulf %606, %605 : vector<2x32xf32>
    %611 = arith.addf %609, %610 : vector<2x32xf32>
    %612 = math.tanh %611 : vector<2x32xf32>
    %613 = arith.mulf %608, %612 : vector<2x32xf32>
    %614 = vector.extract_strided_slice %413 {offsets = [10, 0], sizes = [2, 128], strides = [1, 1]} : vector<16x256xf32> to vector<2x128xf32>
    %cst_183 = arith.constant dense<0.000000e+00> : vector<2x128xf32>
    %615 = tpu.matmul %597, %414, %cst_183 {dimension_numbers = #tpu.dot_dimension_numbers<[1], [0], [0], [1], [0, 0, 1, 1], [], []>} : vector<2x32xf32>, vector<32x128xf32>, vector<2x128xf32> -> vector<2x128xf32>
    %616 = arith.addf %614, %615 : vector<2x128xf32>
    %617 = vector.extract_strided_slice %413 {offsets = [4, 128], sizes = [2, 128], strides = [1, 1]} : vector<16x256xf32> to vector<2x128xf32>
    %cst_184 = arith.constant dense<0.000000e+00> : vector<2x128xf32>
    %618 = tpu.matmul %613, %415, %cst_184 {dimension_numbers = #tpu.dot_dimension_numbers<[1], [0], [0], [1], [0, 0, 1, 1], [], []>} : vector<2x32xf32>, vector<32x128xf32>, vector<2x128xf32> -> vector<2x128xf32>
    %619 = arith.addf %617, %618 : vector<2x128xf32>
    %620 = vector.extract_strided_slice %616 {offsets = [0, 0], sizes = [2, 96], strides = [1, 1]} : vector<2x128xf32> to vector<2x96xf32>
    %621 = arith.negf %620 : vector<2x96xf32>
    %622 = math.exp %621 : vector<2x96xf32>
    %cst_185 = arith.constant 1.000000e+00 : f32
    %623 = vector.broadcast %cst_185 : f32 to vector<2x96xf32>
    %624 = arith.addf %623, %622 : vector<2x96xf32>
    %625 = arith.divf %623, %624 : vector<2x96xf32>
    %626 = vector.extract_strided_slice %616 {offsets = [0, 96], sizes = [2, 32], strides = [1, 1]} : vector<2x128xf32> to vector<2x32xf32>
    %627 = math.tanh %626 : vector<2x32xf32>
    %628 = vector.extract_strided_slice %625 {offsets = [0, 0], sizes = [2, 32], strides = [1, 1]} : vector<2x96xf32> to vector<2x32xf32>
    %629 = vector.extract_strided_slice %625 {offsets = [0, 32], sizes = [2, 32], strides = [1, 1]} : vector<2x96xf32> to vector<2x32xf32>
    %630 = vector.extract_strided_slice %625 {offsets = [0, 64], sizes = [2, 32], strides = [1, 1]} : vector<2x96xf32> to vector<2x32xf32>
    %631 = arith.mulf %629, %595 : vector<2x32xf32>
    %632 = arith.mulf %628, %627 : vector<2x32xf32>
    %633 = arith.addf %631, %632 : vector<2x32xf32>
    %634 = math.tanh %633 : vector<2x32xf32>
    %635 = arith.mulf %630, %634 : vector<2x32xf32>
    %636 = vector.extract_strided_slice %619 {offsets = [0, 0], sizes = [2, 96], strides = [1, 1]} : vector<2x128xf32> to vector<2x96xf32>
    %637 = arith.negf %636 : vector<2x96xf32>
    %638 = math.exp %637 : vector<2x96xf32>
    %cst_186 = arith.constant 1.000000e+00 : f32
    %639 = vector.broadcast %cst_186 : f32 to vector<2x96xf32>
    %640 = arith.addf %639, %638 : vector<2x96xf32>
    %641 = arith.divf %639, %640 : vector<2x96xf32>
    %642 = vector.extract_strided_slice %619 {offsets = [0, 96], sizes = [2, 32], strides = [1, 1]} : vector<2x128xf32> to vector<2x32xf32>
    %643 = math.tanh %642 : vector<2x32xf32>
    %644 = vector.extract_strided_slice %641 {offsets = [0, 0], sizes = [2, 32], strides = [1, 1]} : vector<2x96xf32> to vector<2x32xf32>
    %645 = vector.extract_strided_slice %641 {offsets = [0, 32], sizes = [2, 32], strides = [1, 1]} : vector<2x96xf32> to vector<2x32xf32>
    %646 = vector.extract_strided_slice %641 {offsets = [0, 64], sizes = [2, 32], strides = [1, 1]} : vector<2x96xf32> to vector<2x32xf32>
    %647 = arith.mulf %645, %611 : vector<2x32xf32>
    %648 = arith.mulf %644, %643 : vector<2x32xf32>
    %649 = arith.addf %647, %648 : vector<2x32xf32>
    %650 = math.tanh %649 : vector<2x32xf32>
    %651 = arith.mulf %646, %650 : vector<2x32xf32>
    %652 = vector.extract_strided_slice %413 {offsets = [12, 0], sizes = [2, 128], strides = [1, 1]} : vector<16x256xf32> to vector<2x128xf32>
    %cst_187 = arith.constant dense<0.000000e+00> : vector<2x128xf32>
    %653 = tpu.matmul %635, %414, %cst_187 {dimension_numbers = #tpu.dot_dimension_numbers<[1], [0], [0], [1], [0, 0, 1, 1], [], []>} : vector<2x32xf32>, vector<32x128xf32>, vector<2x128xf32> -> vector<2x128xf32>
    %654 = arith.addf %652, %653 : vector<2x128xf32>
    %655 = vector.extract_strided_slice %413 {offsets = [2, 128], sizes = [2, 128], strides = [1, 1]} : vector<16x256xf32> to vector<2x128xf32>
    %cst_188 = arith.constant dense<0.000000e+00> : vector<2x128xf32>
    %656 = tpu.matmul %651, %415, %cst_188 {dimension_numbers = #tpu.dot_dimension_numbers<[1], [0], [0], [1], [0, 0, 1, 1], [], []>} : vector<2x32xf32>, vector<32x128xf32>, vector<2x128xf32> -> vector<2x128xf32>
    %657 = arith.addf %655, %656 : vector<2x128xf32>
    %658 = vector.extract_strided_slice %654 {offsets = [0, 0], sizes = [2, 96], strides = [1, 1]} : vector<2x128xf32> to vector<2x96xf32>
    %659 = arith.negf %658 : vector<2x96xf32>
    %660 = math.exp %659 : vector<2x96xf32>
    %cst_189 = arith.constant 1.000000e+00 : f32
    %661 = vector.broadcast %cst_189 : f32 to vector<2x96xf32>
    %662 = arith.addf %661, %660 : vector<2x96xf32>
    %663 = arith.divf %661, %662 : vector<2x96xf32>
    %664 = vector.extract_strided_slice %654 {offsets = [0, 96], sizes = [2, 32], strides = [1, 1]} : vector<2x128xf32> to vector<2x32xf32>
    %665 = math.tanh %664 : vector<2x32xf32>
    %666 = vector.extract_strided_slice %663 {offsets = [0, 0], sizes = [2, 32], strides = [1, 1]} : vector<2x96xf32> to vector<2x32xf32>
    %667 = vector.extract_strided_slice %663 {offsets = [0, 32], sizes = [2, 32], strides = [1, 1]} : vector<2x96xf32> to vector<2x32xf32>
    %668 = vector.extract_strided_slice %663 {offsets = [0, 64], sizes = [2, 32], strides = [1, 1]} : vector<2x96xf32> to vector<2x32xf32>
    %669 = arith.mulf %667, %633 : vector<2x32xf32>
    %670 = arith.mulf %666, %665 : vector<2x32xf32>
    %671 = arith.addf %669, %670 : vector<2x32xf32>
    %672 = math.tanh %671 : vector<2x32xf32>
    %673 = arith.mulf %668, %672 : vector<2x32xf32>
    %674 = vector.extract_strided_slice %657 {offsets = [0, 0], sizes = [2, 96], strides = [1, 1]} : vector<2x128xf32> to vector<2x96xf32>
    %675 = arith.negf %674 : vector<2x96xf32>
    %676 = math.exp %675 : vector<2x96xf32>
    %cst_190 = arith.constant 1.000000e+00 : f32
    %677 = vector.broadcast %cst_190 : f32 to vector<2x96xf32>
    %678 = arith.addf %677, %676 : vector<2x96xf32>
    %679 = arith.divf %677, %678 : vector<2x96xf32>
    %680 = vector.extract_strided_slice %657 {offsets = [0, 96], sizes = [2, 32], strides = [1, 1]} : vector<2x128xf32> to vector<2x32xf32>
    %681 = math.tanh %680 : vector<2x32xf32>
    %682 = vector.extract_strided_slice %679 {offsets = [0, 0], sizes = [2, 32], strides = [1, 1]} : vector<2x96xf32> to vector<2x32xf32>
    %683 = vector.extract_strided_slice %679 {offsets = [0, 32], sizes = [2, 32], strides = [1, 1]} : vector<2x96xf32> to vector<2x32xf32>
    %684 = vector.extract_strided_slice %679 {offsets = [0, 64], sizes = [2, 32], strides = [1, 1]} : vector<2x96xf32> to vector<2x32xf32>
    %685 = arith.mulf %683, %649 : vector<2x32xf32>
    %686 = arith.mulf %682, %681 : vector<2x32xf32>
    %687 = arith.addf %685, %686 : vector<2x32xf32>
    %688 = math.tanh %687 : vector<2x32xf32>
    %689 = arith.mulf %684, %688 : vector<2x32xf32>
    %690 = vector.extract_strided_slice %413 {offsets = [14, 0], sizes = [2, 128], strides = [1, 1]} : vector<16x256xf32> to vector<2x128xf32>
    %cst_191 = arith.constant dense<0.000000e+00> : vector<2x128xf32>
    %691 = tpu.matmul %673, %414, %cst_191 {dimension_numbers = #tpu.dot_dimension_numbers<[1], [0], [0], [1], [0, 0, 1, 1], [], []>} : vector<2x32xf32>, vector<32x128xf32>, vector<2x128xf32> -> vector<2x128xf32>
    %692 = arith.addf %690, %691 : vector<2x128xf32>
    %693 = vector.extract_strided_slice %413 {offsets = [0, 128], sizes = [2, 128], strides = [1, 1]} : vector<16x256xf32> to vector<2x128xf32>
    %cst_192 = arith.constant dense<0.000000e+00> : vector<2x128xf32>
    %694 = tpu.matmul %689, %415, %cst_192 {dimension_numbers = #tpu.dot_dimension_numbers<[1], [0], [0], [1], [0, 0, 1, 1], [], []>} : vector<2x32xf32>, vector<32x128xf32>, vector<2x128xf32> -> vector<2x128xf32>
    %695 = arith.addf %693, %694 : vector<2x128xf32>
    %696 = vector.extract_strided_slice %692 {offsets = [0, 0], sizes = [2, 96], strides = [1, 1]} : vector<2x128xf32> to vector<2x96xf32>
    %697 = arith.negf %696 : vector<2x96xf32>
    %698 = math.exp %697 : vector<2x96xf32>
    %cst_193 = arith.constant 1.000000e+00 : f32
    %699 = vector.broadcast %cst_193 : f32 to vector<2x96xf32>
    %700 = arith.addf %699, %698 : vector<2x96xf32>
    %701 = arith.divf %699, %700 : vector<2x96xf32>
    %702 = vector.extract_strided_slice %692 {offsets = [0, 96], sizes = [2, 32], strides = [1, 1]} : vector<2x128xf32> to vector<2x32xf32>
    %703 = math.tanh %702 : vector<2x32xf32>
    %704 = vector.extract_strided_slice %701 {offsets = [0, 0], sizes = [2, 32], strides = [1, 1]} : vector<2x96xf32> to vector<2x32xf32>
    %705 = vector.extract_strided_slice %701 {offsets = [0, 32], sizes = [2, 32], strides = [1, 1]} : vector<2x96xf32> to vector<2x32xf32>
    %706 = vector.extract_strided_slice %701 {offsets = [0, 64], sizes = [2, 32], strides = [1, 1]} : vector<2x96xf32> to vector<2x32xf32>
    %707 = arith.mulf %705, %671 : vector<2x32xf32>
    %708 = arith.mulf %704, %703 : vector<2x32xf32>
    %709 = arith.addf %707, %708 : vector<2x32xf32>
    %710 = math.tanh %709 : vector<2x32xf32>
    %711 = arith.mulf %706, %710 : vector<2x32xf32>
    %712 = vector.extract_strided_slice %695 {offsets = [0, 0], sizes = [2, 96], strides = [1, 1]} : vector<2x128xf32> to vector<2x96xf32>
    %713 = arith.negf %712 : vector<2x96xf32>
    %714 = math.exp %713 : vector<2x96xf32>
    %cst_194 = arith.constant 1.000000e+00 : f32
    %715 = vector.broadcast %cst_194 : f32 to vector<2x96xf32>
    %716 = arith.addf %715, %714 : vector<2x96xf32>
    %717 = arith.divf %715, %716 : vector<2x96xf32>
    %718 = vector.extract_strided_slice %695 {offsets = [0, 96], sizes = [2, 32], strides = [1, 1]} : vector<2x128xf32> to vector<2x32xf32>
    %719 = math.tanh %718 : vector<2x32xf32>
    %720 = vector.extract_strided_slice %717 {offsets = [0, 0], sizes = [2, 32], strides = [1, 1]} : vector<2x96xf32> to vector<2x32xf32>
    %721 = vector.extract_strided_slice %717 {offsets = [0, 32], sizes = [2, 32], strides = [1, 1]} : vector<2x96xf32> to vector<2x32xf32>
    %722 = vector.extract_strided_slice %717 {offsets = [0, 64], sizes = [2, 32], strides = [1, 1]} : vector<2x96xf32> to vector<2x32xf32>
    %723 = arith.mulf %721, %687 : vector<2x32xf32>
    %724 = arith.mulf %720, %719 : vector<2x32xf32>
    %725 = arith.addf %723, %724 : vector<2x32xf32>
    %726 = math.tanh %725 : vector<2x32xf32>
    %727 = arith.mulf %722, %726 : vector<2x32xf32>
    %728 = tpu.concatenate %711, %727 in 1 : vector<2x32xf32>, vector<2x32xf32> -> vector<2x64xf32>
    %c0_195 = arith.constant 0 : index
    %c0_196 = arith.constant 0 : index
    %729 = vector.load %arg11[%c0_195, %c0_196] : memref<64x4xf32, #tpu.memory_space<vmem>>, vector<64x4xf32>
    %cst_197 = arith.constant dense<0.000000e+00> : vector<2x4xf32>
    %730 = tpu.matmul %728, %729, %cst_197 {dimension_numbers = #tpu.dot_dimension_numbers<[1], [0], [0], [1], [0, 0, 1, 1], [], []>} : vector<2x64xf32>, vector<64x4xf32>, vector<2x4xf32> -> vector<2x4xf32>
    %c0_198 = arith.constant 0 : index
    %c0_199 = arith.constant 0 : index
    %731 = vector.load %arg12[%c0_198, %c0_199] : memref<1x4xf32, #tpu.memory_space<vmem>>, vector<1x4xf32>
    %732 = vector.broadcast %731 : vector<1x4xf32> to vector<2x4xf32>
    %733 = arith.addf %730, %732 : vector<2x4xf32>
    %c0_200 = arith.constant 0 : index
    %c0_201 = arith.constant 0 : index
    %734 = vector.load %arg13[%c0_200, %c0_201] : memref<2x4xf32, #tpu.memory_space<vmem>>, vector<2x4xf32>
    tpu.vector_store %arg13[%c0_200, %c0_201], %733 {strides = array<i32>} : memref<2x4xf32, #tpu.memory_space<vmem>>, vector<2x4xf32>,
    return
  }
}

</mosaic_0001>

<bundles_post_ra>
// kernel: bert_lstm_forward.1
= control target key start
LH: loop header
LB: loop body
LE: loop exit
PB: predicated region body
PF: predicated region fallthrough
CT: control target
= control target key end

     0   :  { %18 = vsyncpa [#allocation5], 0  ;;  %s5177_s0 = inlined_call_operand.vmem [shape: bf16[16,768], index: 0, kind: input, shape index: {}]   ;;  %s5178_s1 = inlined_call_operand.vmem [shape: f32[4,2,32], index: 1, kind: input, shape index: {}]   ;;  %s5179_s2 = inlined_call_operand.vmem [shape: f32[4,2,32], index: 2, kind: input, shape index: {}]   ;;  %s5180_s3 = inlined_call_operand.hbm [shape: bf16[768,256], index: 3, kind: input, shape index: {}]   ;;  %s5181_s4 = inlined_call_operand.vmem [shape: f32[1,256], index: 4, kind: input, shape index: {}]   ;;  %s5182_s5 = inlined_call_operand.vmem [shape: f32[32,128], index: 5, kind: input, shape index: {}]   ;;  %s5183_s6 = inlined_call_operand.vmem [shape: f32[32,128], index: 6, kind: input, shape index: {}]   ;;  %s5184_s7 = inlined_call_operand.vmem [shape: f32[64,256], index: 7, kind: input, shape index: {}]   ;;  %s5185_s8 = inlined_call_operand.vmem [shape: f32[1,256], index: 8, kind: input, shape index: {}]   ;;  %s5186_s9 = inlined_call_operand.vmem [shape: f32[32,128], index: 9, kind: input, shape index: {}]   ;;  %s5187_s10 = inlined_call_operand.vmem [shape: f32[32,128], index: 10, kind: input, shape index: {}]   ;;  %s5188_s11 = inlined_call_operand.vmem [shape: f32[64,4], index: 11, kind: input, shape index: {}]   ;;  %s5189_s12 = inlined_call_operand.vmem [shape: f32[1,4], index: 12, kind: input, shape index: {}]   ;;  %s5190_s13 = inlined_call_operand.hbm [shape: f32[2,4], index: 13, kind: output, shape index: {}]  }
   0x1   :  { %19 = vsyncpa [#allocation6], 0  ;;  %s30_s27 = sshll.u32 %s5180_s3, 4  ;;  %s4284_s28 = smov [#allocation4]   ;;  %s31_s27 = int_to_ptr.hbm [resolvable:$true] %s30_s27 }
   0x2   :  { %s32_s29 = sshll.u32 %s4284_s28, 4  ;;  %s4285_s30 = smov 128   ;;  %s33_s29 = int_to_ptr.vmem [resolvable:$true] %s32_s29 }
   0x3   :  { %s4286_s14 = smov 8  }
   0x4   :  { %38 = dma.hbm_to_vmem [thread:$0]  %s31_s27, 12288, %s33_s29, [#allocation5], %s4285_s30, %s4285_s30, %s4286_s14  }
   0x5   :  { %4280 = dma.done.wait [#allocation5], 12288  }
   0x6   :  { %4281 = vsyncadd [#allocation5], 4294955008  ;;  %v3465_v0 = vld [vmem:[#allocation4 + $0x70] sm:$0xf]  ;;  %v3887_v1 = vld [vmem:[#allocation4 + $0x74] sm:$0xf0] }
   0x7   :  { %v3529_v2 = vld [vmem:[#allocation4 + $0xf0] sm:$0xf]  ;;  %v3466_v3 = vor.u32 %v3887_v1, %v3465_v0  ;;  %v3903_v4 = vld [vmem:[#allocation4 + $0xf4] sm:$0xf0]  ;;  %v3457_v11 = vld [vmem:[#allocation4 + $0x60] sm:$0xf] }
   0x8   :  { %v3593_v5 = vld [vmem:[#allocation4 + $0x170] sm:$0xf]  ;;  %v3919_v6 = vld [vmem:[#allocation4 + $0x174] sm:$0xf0]  ;;  %v3530_v7 = vor.u32 %v3903_v4, %v3529_v2  ;;  %v3885_v13 = vld [vmem:[#allocation4 + $0x64] sm:$0xf0] }
   0x9   :  { %v3594_v8 = vor.u32 %v3919_v6, %v3593_v5  ;;  %v3657_v9 = vld [vmem:[#allocation4 + $0x1f0] sm:$0xf]  ;;  %v3935_v10 = vld [vmem:[#allocation4 + $0x1f4] sm:$0xf0]  ;;  %679 = vmatpush.bf16.msra.mxu0 %v3466_v3  ;;  %v3521_v14 = vld [vmem:[#allocation4 + $0xe0] sm:$0xf]  ;;  %v3458_v16 = vor.u32 %v3885_v13, %v3457_v11 }
   0xa   :  { %v3658_v12 = vor.u32 %v3935_v10, %v3657_v9  ;;  %v3901_v15 = vld [vmem:[#allocation4 + $0xe4] sm:$0xf0]  ;;  %693 = vmatpush.bf16.msra.mxu1 %v3530_v7  ;;  %v3585_v18 = vld [vmem:[#allocation4 + $0x160] sm:$0xf]  ;;  %v3449_v23 = vld [vmem:[#allocation4 + $0x50] sm:$0xf] }
   0xb   :  { %707 = vmatpush.bf16.msra.mxu2 %v3594_v8  ;;  %v3522_v17 = vor.u32 %v3901_v15, %v3521_v14  ;;  %v3917_v19 = vld [vmem:[#allocation4 + $0x164] sm:$0xf0]  ;;  %v3649_v20 = vld [vmem:[#allocation4 + $0x1e0] sm:$0xf]  ;;  %v3883_v24 = vld [vmem:[#allocation4 + $0x54] sm:$0xf0] }
   0xc   :  { %721 = vmatpush.bf16.msra.mxu3 %v3658_v12  ;;  %v3586_v21 = vor.u32 %v3917_v19, %v3585_v18  ;;  %v3933_v22 = vld [vmem:[#allocation4 + $0x1e4] sm:$0xf0]  ;;  %v3513_v26 = vld [vmem:[#allocation4 + $0xd0] sm:$0xf]  ;;  %v3899_v27 = vld [vmem:[#allocation4 + $0xd4] sm:$0xf0]  ;;  %v3450_v29 = vor.u32 %v3883_v24, %v3449_v23 }
   0xd   :  { %v3650_v25 = vor.u32 %v3933_v22, %v3649_v20  ;;  %v3577_v28 = vld [vmem:[#allocation4 + $0x150] sm:$0xf]  ;;  %680 = vmatpush.bf16.msra.mxu0 %v3458_v16  ;;  %v3915_v30 = vld [vmem:[#allocation4 + $0x154] sm:$0xf0]  ;;  %v3514_v33 = vor.u32 %v3899_v27, %v3513_v26  ;;  %v3441_v35 = vld [vmem:[#allocation4 + $0x40] sm:$0xf] }
   0xe   :  { %v3641_v31 = vld [vmem:[#allocation4 + $0x1d0] sm:$0xf]  ;;  %v3931_v32 = vld [vmem:[#allocation4 + $0x1d4] sm:$0xf0]  ;;  %694 = vmatpush.bf16.msra.mxu1 %v3522_v17  ;;  %v3578_v34 = vor.u32 %v3915_v30, %v3577_v28  ;;  %v3881_v36 = vld [vmem:[#allocation4 + $0x44] sm:$0xf0] }
   0xf   :  { %708 = vmatpush.bf16.msra.mxu2 %v3586_v21  ;;  %v3505_v37 = vld [vmem:[#allocation4 + $0xc0] sm:$0xf]  ;;  %v3642_v38 = vor.u32 %v3931_v32, %v3641_v31  ;;  %v3897_v39 = vld [vmem:[#allocation4 + $0xc4] sm:$0xf0]  ;;  %v3442_v44 = vor.u32 %v3881_v36, %v3441_v35  ;;  %v3433_v47 = vld [vmem:[#allocation4 + $0x30] sm:$0xf] }
  0x10   :  { %722 = vmatpush.bf16.msra.mxu3 %v3650_v25  ;;  %v3569_v40 = vld [vmem:[#allocation4 + $0x140] sm:$0xf]  ;;  %v3913_v41 = vld [vmem:[#allocation4 + $0x144] sm:$0xf0]  ;;  %v3506_v45 = vor.u32 %v3897_v39, %v3505_v37  ;;  %v3879_v48 = vld [vmem:[#allocation4 + $0x34] sm:$0xf0] }
  0x11   :  { %v3633_v42 = vld [vmem:[#allocation4 + $0x1c0] sm:$0xf]  ;;  %v3929_v43 = vld [vmem:[#allocation4 + $0x1c4] sm:$0xf0]  ;;  %681 = vmatpush.bf16.msra.mxu0 %v3450_v29  ;;  %v3570_v46 = vor.u32 %v3913_v41, %v3569_v40  ;;  %v3497_v49 = vld [vmem:[#allocation4 + $0xb0] sm:$0xf]  ;;  %v3434_v56 = vor.u32 %v3879_v48, %v3433_v47 }
  0x12   :  { %695 = vmatpush.bf16.msra.mxu1 %v3514_v33  ;;  %v3634_v50 = vor.u32 %v3929_v43, %v3633_v42  ;;  %v3895_v51 = vld [vmem:[#allocation4 + $0xb4] sm:$0xf0]  ;;  %v3561_v52 = vld [vmem:[#allocation4 + $0x130] sm:$0xf]  ;;  %v3425_v59 = vld [vmem:[#allocation4 + $0x20] sm:$0xf] }
  0x13   :  { %709 = vmatpush.bf16.msra.mxu2 %v3578_v34  ;;  %v3911_v53 = vld [vmem:[#allocation4 + $0x134] sm:$0xf0]  ;;  %v3625_v54 = vld [vmem:[#allocation4 + $0x1b0] sm:$0xf]  ;;  %v3498_v57 = vor.u32 %v3895_v51, %v3497_v49  ;;  %v3877_v60 = vld [vmem:[#allocation4 + $0x24] sm:$0xf0] }
  0x14   :  { %723 = vmatpush.bf16.msra.mxu3 %v3642_v38  ;;  %v3927_v55 = vld [vmem:[#allocation4 + $0x1b4] sm:$0xf0]  ;;  %v3562_v58 = vor.u32 %v3911_v53, %v3561_v52  ;;  %v3489_v61 = vld [vmem:[#allocation4 + $0xa0] sm:$0xf]  ;;  %v3893_v63 = vld [vmem:[#allocation4 + $0xa4] sm:$0xf0]  ;;  %v3426_v4 = vor.u32 %v3877_v60, %v3425_v59 }
  0x15   :  { %682 = vmatpush.bf16.msra.mxu0 %v3442_v44  ;;  %v3626_v62 = vor.u32 %v3927_v55, %v3625_v54  ;;  %v3553_v0 = vld [vmem:[#allocation4 + $0x120] sm:$0xf]  ;;  %v3909_v1 = vld [vmem:[#allocation4 + $0x124] sm:$0xf0]  ;;  %v3490_v5 = vor.u32 %v3893_v63, %v3489_v61  ;;  %v3417_v7 = vld [vmem:[#allocation4 + $0x10] sm:$0xf] }
  0x16   :  { %696 = vmatpush.bf16.msra.mxu1 %v3506_v45  ;;  %v3617_v2 = vld [vmem:[#allocation4 + $0x1a0] sm:$0xf]  ;;  %v3925_v3 = vld [vmem:[#allocation4 + $0x1a4] sm:$0xf0]  ;;  %v3554_v6 = vor.u32 %v3909_v1, %v3553_v0  ;;  %v3875_v8 = vld [vmem:[#allocation4 + $0x14] sm:$0xf0] }
  0x17   :  { %710 = vmatpush.bf16.msra.mxu2 %v3570_v46  ;;  %v3481_v9 = vld [vmem:[#allocation4 + $0x90] sm:$0xf]  ;;  %v3618_v10 = vor.u32 %v3925_v3, %v3617_v2  ;;  %v3891_v11 = vld [vmem:[#allocation4 + $0x94] sm:$0xf0]  ;;  %v3418_v16 = vor.u32 %v3875_v8, %v3417_v7  ;;  %v3409_v17 = vld [vmem:[#allocation4] sm:$0xf] }
  0x18   :  { %724 = vmatpush.bf16.msra.mxu3 %v3634_v50  ;;  %v3545_v12 = vld [vmem:[#allocation4 + $0x110] sm:$0xf]  ;;  %v3907_v13 = vld [vmem:[#allocation4 + $0x114] sm:$0xf0]  ;;  %v3873_v18 = vld [vmem:[#allocation4 + $0x4] sm:$0xf0]  ;;  %v3482_v19 = vor.u32 %v3891_v11, %v3481_v9 }
  0x19   :  { %683 = vmatpush.bf16.msra.mxu0 %v3434_v56  ;;  %v3609_v14 = vld [vmem:[#allocation4 + $0x190] sm:$0xf]  ;;  %v3923_v15 = vld [vmem:[#allocation4 + $0x194] sm:$0xf0]  ;;  %v3546_v20 = vor.u32 %v3907_v13, %v3545_v12  ;;  %v3473_v21 = vld [vmem:[#allocation4 + $0x80] sm:$0xf]  ;;  %v3410_v31 = vor.u32 %v3873_v18, %v3409_v17 }
  0x1a   :  { %697 = vmatpush.bf16.msra.mxu1 %v3498_v57  ;;  %v3889_v22 = vld [vmem:[#allocation4 + $0x84] sm:$0xf0]  ;;  %v3537_v23 = vld [vmem:[#allocation4 + $0x100] sm:$0xf]  ;;  %v3610_v24 = vor.u32 %v3923_v15, %v3609_v14  ;;  %v3721_v28 = vld [vmem:[#allocation4 + $0x270] sm:$0xf] }
  0x1b   :  { %711 = vmatpush.bf16.msra.mxu2 %v3562_v58  ;;  %v3905_v25 = vld [vmem:[#allocation4 + $0x104] sm:$0xf0]  ;;  %v3601_v26 = vld [vmem:[#allocation4 + $0x180] sm:$0xf]  ;;  %v3951_v29 = vld [vmem:[#allocation4 + $0x274] sm:$0xf0]  ;;  %v3474_v35 = vor.u32 %v3889_v22, %v3473_v21 }
  0x1c   :  { %725 = vmatpush.bf16.msra.mxu3 %v3626_v62  ;;  %v3921_v27 = vld [vmem:[#allocation4 + $0x184] sm:$0xf0]  ;;  %v3785_v30 = vld [vmem:[#allocation4 + $0x2f0] sm:$0xf]  ;;  %v3967_v32 = vld [vmem:[#allocation4 + $0x2f4] sm:$0xf0]  ;;  %v3538_v36 = vor.u32 %v3905_v25, %v3537_v23  ;;  %v3722_v40 = vor.u32 %v3951_v29, %v3721_v28 }
  0x1d   :  { %684 = vmatpush.bf16.msra.mxu0 %v3426_v4  ;;  %v3886_v33 = vld [vmem:[#allocation4 + $0x74] sm:$0xf]  ;;  %v3467_v34 = vld [vmem:[#allocation4 + $0x78] sm:$0xf0]  ;;  %v3602_v39 = vor.u32 %v3921_v27, %v3601_v26  ;;  %v3713_v41 = vld [vmem:[#allocation4 + $0x260] sm:$0xf]  ;;  %v3786_v43 = vor.u32 %v3967_v32, %v3785_v30 }
  0x1e   :  { %698 = vmatpush.bf16.msra.mxu1 %v3490_v5  ;;  %v3902_v37 = vld [vmem:[#allocation4 + $0xf4] sm:$0xf]  ;;  %v3531_v38 = vld [vmem:[#allocation4 + $0xf8] sm:$0xf0]  ;;  %v3949_v42 = vld [vmem:[#allocation4 + $0x264] sm:$0xf0]  ;;  %v3470_v44 = vor.u32 %v3886_v33, %v3467_v34 }
  0x1f   :  { %712 = vmatpush.bf16.msra.mxu2 %v3554_v6  ;;  %v3777_v45 = vld [vmem:[#allocation4 + $0x2e0] sm:$0xf]  ;;  %v3965_v46 = vld [vmem:[#allocation4 + $0x2e4] sm:$0xf0]  ;;  %v3884_v47 = vld [vmem:[#allocation4 + $0x64] sm:$0xf]  ;;  %v3534_v48 = vor.u32 %v3902_v37, %v3531_v38  ;;  %v3714_v55 = vor.u32 %v3949_v42, %v3713_v41 }
  0x20   :  { %726 = vmatpush.bf16.msra.mxu3 %v3618_v10  ;;  %v3459_v49 = vld [vmem:[#allocation4 + $0x68] sm:$0xf0]  ;;  %v3900_v50 = vld [vmem:[#allocation4 + $0xe4] sm:$0xf]  ;;  %v3705_v52 = vld [vmem:[#allocation4 + $0x250] sm:$0xf]  ;;  %v3778_v60 = vor.u32 %v3965_v46, %v3777_v45 }
  0x21   :  { %685 = vmatpush.bf16.msra.mxu0 %v3418_v16  ;;  %v3523_v51 = vld [vmem:[#allocation4 + $0xe8] sm:$0xf0]  ;;  %v3385_v53 = vld [vmem:[%s5177_s0] sm:$0xf]  ;;  %v3869_v54 = vld [vmem:[%s5177_s0 + $0x14] sm:$0xf0]  ;;  %v3462_v61 = vor.u32 %v3884_v47, %v3459_v49 }
  0x22   :  { %699 = vmatpush.bf16.msra.mxu1 %v3482_v19  ;;  %v3947_v56 = vld [vmem:[#allocation4 + $0x254] sm:$0xf0]  ;;  %v3769_v57 = vld [vmem:[#allocation4 + $0x2d0] sm:$0xf]  ;;  %v4370_v59 = vor.u32 %v3869_v54, %v3385_v53  ;;  %v3882_v62 = vld [vmem:[#allocation4 + $0x54] sm:$0xf]  ;;  %v3526_v1 = vor.u32 %v3900_v50, %v3523_v51 }
  0x23   :  { %713 = vmatpush.bf16.msra.mxu2 %v3546_v20  ;;  %v3963_v58 = vld [vmem:[#allocation4 + $0x2d4] sm:$0xf0]  ;;  %v3451_v63 = vld [vmem:[#allocation4 + $0x58] sm:$0xf0]  ;;  %v3898_v0 = vld [vmem:[#allocation4 + $0xd4] sm:$0xf]  ;;  %v3706_v9 = vor.u32 %v3947_v56, %v3705_v52 }
  0x24   :  { %727 = vmatpush.bf16.msra.mxu3 %v3610_v24  ;;  %v3515_v2 = vld [vmem:[#allocation4 + $0xd8] sm:$0xf0]  ;;  %v3866_v3 = vld [vmem:[%s5177_s0 + $0x4] sm:$0xf]  ;;  %v3393_v6 = vld [vmem:[%s5177_s0 + $0x8] sm:$0xf]  ;;  %v3770_v12 = vor.u32 %v3963_v58, %v3769_v57  ;;  %v3454_v13 = vor.u32 %v3882_v62, %v3451_v63 }
  0x25   :  { %686 = vmatpush.bf16.msra.mxu0 %v3410_v31  ;;  %v3387_v4 = vld [vmem:[%s5177_s0 + $0x18] sm:$0xf0]  ;;  %v3870_v7 = vld [vmem:[%s5177_s0 + $0x1c] sm:$0xf0]  ;;  %v3867_v8 = vld [vmem:[%s5177_s0 + $0xc] sm:$0xf]  ;;  %v3518_v18 = vor.u32 %v3898_v0, %v3515_v2 }
  0x26   :  { %700 = vmatpush.bf16.msra.mxu1 %v3474_v35  ;;  %v4379_v5 = vor.u32 %v3866_v3, %v3387_v4  ;;  %v4390_v10 = vor.u32 %v3870_v7, %v3393_v6  ;;  %v3395_v11 = vld [vmem:[%s5177_s0 + $0x20] sm:$0xf0]  ;;  %v3697_v14 = vld [vmem:[#allocation4 + $0x240] sm:$0xf]  ;;  %v3945_v15 = vld [vmem:[#allocation4 + $0x244] sm:$0xf0] }
  0x27   :  { %714 = vmatpush.bf16.msra.mxu2 %v3538_v36  ;;  %v3761_v16 = vld [vmem:[#allocation4 + $0x2c0] sm:$0xf]  ;;  %v4395_v17 = vor.u32 %v3867_v8, %v3395_v11  ;;  %v3961_v19 = vld [vmem:[#allocation4 + $0x2c4] sm:$0xf0]  ;;  %v3880_v20 = vld [vmem:[#allocation4 + $0x44] sm:$0xf]  ;;  %v3698_v24 = vor.u32 %v3945_v15, %v3697_v14 }
  0x28   :  { %728 = vmatpush.bf16.msra.mxu3 %v3602_v39  ;;  %687 = vmatmul.bf16.vlgmr.msra.gmra.mxu0 %v4370_v59  ;;  %v3443_v21 = vld [vmem:[#allocation4 + $0x48] sm:$0xf0]  ;;  %v3896_v22 = vld [vmem:[#allocation4 + $0xc4] sm:$0xf]  ;;  %v3762_v25 = vor.u32 %v3961_v19, %v3761_v16  ;;  %v3689_v27 = vld [vmem:[#allocation4 + $0x230] sm:$0xf] }
  0x29   :  { %735 = vmatpush.bf16.msrb.mxu0 %v3722_v40  ;;  %701 = vmatmul.bf16.vlgmr.msra.gmra.mxu1 %v4379_v5  ;;  %v3507_v23 = vld [vmem:[#allocation4 + $0xc8] sm:$0xf0]  ;;  %v3446_v26 = vor.u32 %v3880_v20, %v3443_v21  ;;  %v3943_v28 = vld [vmem:[#allocation4 + $0x234] sm:$0xf0]  ;;  %v3753_v29 = vld [vmem:[#allocation4 + $0x2b0] sm:$0xf] }
  0x2a   :  { %749 = vmatpush.bf16.msrb.mxu1 %v3786_v43  ;;  %715 = vmatmul.bf16.vlgmr.msra.gmra.mxu2 %v4390_v10  ;;  %v3510_v30 = vor.u32 %v3896_v22, %v3507_v23  ;;  %v3959_v31 = vld [vmem:[#allocation4 + $0x2b4] sm:$0xf0]  ;;  %v3878_v32 = vld [vmem:[#allocation4 + $0x34] sm:$0xf]  ;;  %v3435_v33 = vld [vmem:[#allocation4 + $0x38] sm:$0xf0]  ;;  %v3690_v36 = vor.u32 %v3943_v28, %v3689_v27 }
  0x2b   :  { %763 = vmatpush.bf16.msrb.mxu2 %v3470_v44  ;;  %729 = vmatmul.bf16.vlgmr.msra.gmra.mxu3 %v4395_v17  ;;  %v3894_v34 = vld [vmem:[#allocation4 + $0xb4] sm:$0xf]  ;;  %v3499_v35 = vld [vmem:[#allocation4 + $0xb8] sm:$0xf0]  ;;  %v3754_v37 = vor.u32 %v3959_v31, %v3753_v29  ;;  %v3438_v38 = vor.u32 %v3878_v32, %v3435_v33  ;;  %v3681_v39 = vld [vmem:[#allocation4 + $0x220] sm:$0xf] }
  0x2c   :  { %777 = vmatpush.bf16.msrb.mxu3 %v3534_v48  ;;  %v3941_v40 = vld [vmem:[#allocation4 + $0x224] sm:$0xf0]  ;;  %v3745_v41 = vld [vmem:[#allocation4 + $0x2a0] sm:$0xf]  ;;  %v3502_v42 = vor.u32 %v3894_v34, %v3499_v35  ;;  %v3876_v44 = vld [vmem:[#allocation4 + $0x24] sm:$0xf] }
  0x2d   :  { %736 = vmatpush.bf16.msrb.mxu0 %v3714_v55  ;;  %v3957_v43 = vld [vmem:[#allocation4 + $0x2a4] sm:$0xf0]  ;;  %v3427_v45 = vld [vmem:[#allocation4 + $0x28] sm:$0xf0]  ;;  %v3892_v46 = vld [vmem:[#allocation4 + $0xa4] sm:$0xf]  ;;  %v3682_v48 = vor.u32 %v3941_v40, %v3681_v39 }
  0x2e   :  { %750 = vmatpush.bf16.msrb.mxu1 %v3778_v60  ;;  %v3491_v47 = vld [vmem:[#allocation4 + $0xa8] sm:$0xf0]  ;;  %v3746_v49 = vor.u32 %v3957_v43, %v3745_v41  ;;  %v3430_v50 = vor.u32 %v3876_v44, %v3427_v45  ;;  %v3673_v51 = vld [vmem:[#allocation4 + $0x210] sm:$0xf]  ;;  %v3939_v52 = vld [vmem:[#allocation4 + $0x214] sm:$0xf0] }
  0x2f   :  { %764 = vmatpush.bf16.msrb.mxu2 %v3462_v61  ;;  %v3737_v53 = vld [vmem:[#allocation4 + $0x290] sm:$0xf]  ;;  %v3494_v54 = vor.u32 %v3892_v46, %v3491_v47  ;;  %v3955_v55 = vld [vmem:[#allocation4 + $0x294] sm:$0xf0]  ;;  %v3874_v56 = vld [vmem:[#allocation4 + $0x14] sm:$0xf]  ;;  %v3674_v61 = vor.u32 %v3939_v52, %v3673_v51 }
  0x30   :  { %778 = vmatpush.bf16.msrb.mxu3 %v3526_v1  ;;  %v3419_v57 = vld [vmem:[#allocation4 + $0x18] sm:$0xf0]  ;;  %v3890_v58 = vld [vmem:[#allocation4 + $0x94] sm:$0xf]  ;;  %v3665_v62 = vld [vmem:[#allocation4 + $0x200] sm:$0xf]  ;;  %v3738_v1 = vor.u32 %v3955_v55, %v3737_v53 }
  0x31   :  { %737 = vmatpush.bf16.msrb.mxu0 %v3706_v9  ;;  %v3483_v60 = vld [vmem:[#allocation4 + $0x98] sm:$0xf0]  ;;  %v3937_v63 = vld [vmem:[#allocation4 + $0x204] sm:$0xf0]  ;;  %v3729_v0 = vld [vmem:[#allocation4 + $0x280] sm:$0xf]  ;;  %v3422_v2 = vor.u32 %v3874_v56, %v3419_v57 }
  0x32   :  { %751 = vmatpush.bf16.msrb.mxu1 %v3770_v12  ;;  %v3953_v3 = vld [vmem:[#allocation4 + $0x284] sm:$0xf0]  ;;  %v3872_v4 = vld [vmem:[#allocation4 + $0x4] sm:$0xf]  ;;  %v3411_v6 = vld [vmem:[#allocation4 + $0x8] sm:$0xf0]  ;;  %v3486_v7 = vor.u32 %v3890_v58, %v3483_v60  ;;  %v3666_v15 = vor.u32 %v3937_v63, %v3665_v62 }
  0x33   :  { %765 = vmatpush.bf16.msrb.mxu2 %v3454_v13  ;;  %v3888_v8 = vld [vmem:[#allocation4 + $0x84] sm:$0xf]  ;;  %v3475_v9 = vld [vmem:[#allocation4 + $0x88] sm:$0xf0]  ;;  %v3918_v11 = vld [vmem:[#allocation4 + $0x174] sm:$0xf]  ;;  %v3730_v20 = vor.u32 %v3953_v3, %v3729_v0  ;;  %v3414_v21 = vor.u32 %v3872_v4, %v3411_v6 }
  0x34   :  { %779 = vmatpush.bf16.msrb.mxu3 %v3518_v18  ;;  %v3595_v12 = vld [vmem:[#allocation4 + $0x178] sm:$0xf0]  ;;  %v3934_v13 = vld [vmem:[#allocation4 + $0x1f4] sm:$0xf]  ;;  %v3401_v23 = vld [vmem:[%s5177_s0 + $0x10] sm:$0xf] }
  0x35   :  { %738 = vmatpush.bf16.msrb.mxu0 %v3698_v24  ;;  %v3659_v14 = vld [vmem:[#allocation4 + $0x1f8] sm:$0xf0]  ;;  %v3950_v16 = vld [vmem:[#allocation4 + $0x274] sm:$0xf]  ;;  %v3871_v24 = vld [vmem:[%s5177_s0 + $0x24] sm:$0xf0] }
  0x36   :  { %752 = vmatpush.bf16.msrb.mxu1 %v3762_v25  ;;  %v3723_v18 = vld [vmem:[#allocation4 + $0x278] sm:$0xf0]  ;;  %v3966_v19 = vld [vmem:[#allocation4 + $0x2f4] sm:$0xf]  ;;  %v3478_v25 = vor.u32 %v3888_v8, %v3475_v9  ;;  %v3403_v28 = vld [vmem:[%s5177_s0 + $0x28] sm:$0xf0]  ;;  %v3662_v29 = vor.u32 %v3934_v13, %v3659_v14  ;;  %v4412_v35 = vor.u32 %v3871_v24, %v3401_v23 }
  0x37   :  { %766 = vmatpush.bf16.msrb.mxu2 %v3446_v26  ;;  %v3787_v22 = vld [vmem:[#allocation4 + $0x2f8] sm:$0xf0]  ;;  %v3598_v26 = vor.u32 %v3918_v11, %v3595_v12  ;;  %v3868_v27 = vld [vmem:[%s5177_s0 + $0x14] sm:$0xf]  ;;  %v3916_v31 = vld [vmem:[#allocation4 + $0x164] sm:$0xf] }
  0x38   :  { %780 = vmatpush.bf16.msrb.mxu3 %v3510_v30  ;;  %v3726_v30 = vor.u32 %v3950_v16, %v3723_v18  ;;  %v3587_v32 = vld [vmem:[#allocation4 + $0x168] sm:$0xf0]  ;;  %v3932_v33 = vld [vmem:[#allocation4 + $0x1e4] sm:$0xf]  ;;  %v3790_v34 = vor.u32 %v3966_v19, %v3787_v22  ;;  %v4414_v39 = vor.u32 %v3868_v27, %v3403_v28  ;;  %v3914_v45 = vld [vmem:[#allocation4 + $0x154] sm:$0xf] }
  0x39   :  { %739 = vmatpush.bf16.msrb.mxu0 %v3690_v36  ;;  %v3651_v36 = vld [vmem:[#allocation4 + $0x1e8] sm:$0xf0]  ;;  %v3964_v40 = vld [vmem:[#allocation4 + $0x2e4] sm:$0xf]  ;;  %v3579_v46 = vld [vmem:[#allocation4 + $0x158] sm:$0xf0] }
  0x3a   :  { %753 = vmatpush.bf16.msrb.mxu1 %v3754_v37  ;;  %v3948_v37 = vld [vmem:[#allocation4 + $0x264] sm:$0xf]  ;;  %v3779_v41 = vld [vmem:[#allocation4 + $0x2e8] sm:$0xf0]  ;;  %v3654_v43 = vor.u32 %v3932_v33, %v3651_v36  ;;  %v3930_v47 = vld [vmem:[#allocation4 + $0x1d4] sm:$0xf] }
  0x3b   :  { %767 = vmatpush.bf16.msrb.mxu2 %v3438_v38  ;;  %v3715_v38 = vld [vmem:[#allocation4 + $0x268] sm:$0xf0]  ;;  %v3707_v51 = vld [vmem:[#allocation4 + $0x258] sm:$0xf0]  ;;  %v3962_v52 = vld [vmem:[#allocation4 + $0x2d4] sm:$0xf] }
  0x3c   :  { %781 = vmatpush.bf16.msrb.mxu3 %v3502_v42  ;;  %v3590_v42 = vor.u32 %v3916_v31, %v3587_v32  ;;  %v3718_v44 = vor.u32 %v3948_v37, %v3715_v38  ;;  %v3771_v53 = vld [vmem:[#allocation4 + $0x2d8] sm:$0xf0]  ;;  %v3912_v57 = vld [vmem:[#allocation4 + $0x144] sm:$0xf]  ;;  %v3571_v58 = vld [vmem:[#allocation4 + $0x148] sm:$0xf0] }
  0x3d   :  { %740 = vmatpush.bf16.msrb.mxu0 %v3682_v48  ;;  %v3782_v48 = vor.u32 %v3964_v40, %v3779_v41  ;;  %v3928_v60 = vld [vmem:[#allocation4 + $0x1c4] sm:$0xf]  ;;  %v3635_v62 = vld [vmem:[#allocation4 + $0x1c8] sm:$0xf0]  ;;  %v3910_v4 = vld [vmem:[#allocation4 + $0x134] sm:$0xf] }
  0x3e   :  { %754 = vmatpush.bf16.msrb.mxu1 %v3746_v49  ;;  %v3643_v49 = vld [vmem:[#allocation4 + $0x1d8] sm:$0xf0]  ;;  %v3944_v63 = vld [vmem:[#allocation4 + $0x244] sm:$0xf]  ;;  %v3699_v0 = vld [vmem:[#allocation4 + $0x248] sm:$0xf0]  ;;  %v3638_v3 = vor.u32 %v3928_v60, %v3635_v62 }
  0x3f   :  { %768 = vmatpush.bf16.msrb.mxu2 %v3430_v50  ;;  %v3946_v50 = vld [vmem:[#allocation4 + $0x254] sm:$0xf]  ;;  %v3646_v55 = vor.u32 %v3930_v47, %v3643_v49  ;;  %v3563_v6 = vld [vmem:[#allocation4 + $0x138] sm:$0xf0]  ;;  %v3908_v19 = vld [vmem:[#allocation4 + $0x124] sm:$0xf] }
  0x40   :  { %782 = vmatpush.bf16.msrb.mxu3 %v3494_v54  ;;  %v3582_v54 = vor.u32 %v3914_v45, %v3579_v46  ;;  %v3710_v56 = vor.u32 %v3946_v50, %v3707_v51  ;;  %v3627_v9 = vld [vmem:[#allocation4 + $0x1b8] sm:$0xf0]  ;;  %v3942_v11 = vld [vmem:[#allocation4 + $0x234] sm:$0xf]  ;;  %v3619_v23 = vld [vmem:[#allocation4 + $0x1a8] sm:$0xf0] }
  0x41   :  { %741 = vmatpush.bf16.msrb.mxu0 %v3674_v61  ;;  %v3774_v61 = vor.u32 %v3962_v52, %v3771_v53  ;;  %v3691_v12 = vld [vmem:[#allocation4 + $0x238] sm:$0xf0]  ;;  %v3958_v13 = vld [vmem:[#allocation4 + $0x2b4] sm:$0xf]  ;;  %v3940_v24 = vld [vmem:[#allocation4 + $0x224] sm:$0xf] }
  0x42   :  { %755 = vmatpush.bf16.msrb.mxu1 %v3738_v1  ;;  %v3960_v1 = vld [vmem:[#allocation4 + $0x2c4] sm:$0xf]  ;;  %v3755_v14 = vld [vmem:[#allocation4 + $0x2b8] sm:$0xf0]  ;;  %v3694_v18 = vor.u32 %v3942_v11, %v3691_v12  ;;  %v3747_v27 = vld [vmem:[#allocation4 + $0x2a8] sm:$0xf0] }
  0x43   :  { %769 = vmatpush.bf16.msrb.mxu2 %v3422_v2  ;;  %v3763_v2 = vld [vmem:[#allocation4 + $0x2c8] sm:$0xf0]  ;;  %v3758_v22 = vor.u32 %v3958_v13, %v3755_v14  ;;  %v3906_v32 = vld [vmem:[#allocation4 + $0x114] sm:$0xf]  ;;  %v3547_v33 = vld [vmem:[#allocation4 + $0x118] sm:$0xf0] }
  0x44   :  { %783 = vmatpush.bf16.msrb.mxu3 %v3486_v7  ;;  %v3926_v7 = vld [vmem:[#allocation4 + $0x1b4] sm:$0xf]  ;;  %v3766_v8 = vor.u32 %v3960_v1, %v3763_v2  ;;  %v3611_v37 = vld [vmem:[#allocation4 + $0x198] sm:$0xf0]  ;;  %s4287_s21 = smov 32   ;;  %vm861_vm0 = vcmask 261120  }
  0x45   :  { %742 = vmatpush.bf16.msrb.mxu0 %v3666_v15  ;;  %v3566_v15 = vor.u32 %v3910_v4, %v3563_v6  ;;  %v3630_v16 = vor.u32 %v3926_v7, %v3627_v9  ;;  %v3938_v38 = vld [vmem:[#allocation4 + $0x214] sm:$0xf]  ;;  %v3675_v40 = vld [vmem:[#allocation4 + $0x218] sm:$0xf0]  ;;  %v3904_v46 = vld [vmem:[#allocation4 + $0x104] sm:$0xf] }
  0x46   :  { %756 = vmatpush.bf16.msrb.mxu1 %v3730_v20  ;;  %v3555_v20 = vld [vmem:[#allocation4 + $0x128] sm:$0xf0]  ;;  %v3954_v41 = vld [vmem:[#allocation4 + $0x294] sm:$0xf]  ;;  %v3678_v45 = vor.u32 %v3938_v38, %v3675_v40  ;;  %v3936_v51 = vld [vmem:[#allocation4 + $0x204] sm:$0xf] }
  0x47   :  { %770 = vmatpush.bf16.msrb.mxu2 %v3414_v21  ;;  %v3924_v21 = vld [vmem:[#allocation4 + $0x1a4] sm:$0xf]  ;;  %v3558_v28 = vor.u32 %v3908_v19, %v3555_v20  ;;  %v3539_v47 = vld [vmem:[#allocation4 + $0x108] sm:$0xf0]  ;;  %v4427_v60 = vld [vmem:[%s5182_s5 + $0x18] sm:$0xff]  ;;  %vm1000_vm9 = vcmask 254976  }
  0x48   :  { %784 = vmatpush.bf16.msrb.mxu3 %v3478_v25  ;;  %743 = vmatmul.bf16.vlgmr.msrb.gmra.mxu0 %v4412_v35  ;;  %v3683_v25 = vld [vmem:[#allocation4 + $0x228] sm:$0xf0]  ;;  %v3952_v53 = vld [vmem:[#allocation4 + $0x284] sm:$0xf]  ;;  %v4438_v62 = vld [vmem:[%s5182_s5 + $0x10] sm:$0xff]  ;;  %s4290_s16 = smov [#allocation7]  }
  0x49   :  { %791 = vmatpush.bf16.msra.mxu0 %v3598_v26  ;;  %757 = vmatmul.bf16.vlgmr.msrb.gmra.mxu1 %v4414_v39  ;;  %v3956_v26 = vld [vmem:[#allocation4 + $0x2a4] sm:$0xf]  ;;  %v3686_v31 = vor.u32 %v3940_v24, %v3683_v25  ;;  %v3603_v50 = vld [vmem:[#allocation4 + $0x188] sm:$0xf0]  ;;  %v3791_v1 = vld [vmem:[%s5178_s1 + $0x2] sm:$0x3] }
  0x4a   :  { %805 = vmatpush.bf16.msra.mxu1 %v3662_v29  ;;  %771 = vmatmul.bf16.vlgmr.msrb.gmra.mxu2 %v4370_v59  ;;  %v3574_v59 = vor.u32 %v3912_v57, %v3571_v58  ;;  %v856_v29 = vld [vmem:[%s5179_s2] sm:$0x3]  ;;  %v3750_v36 = vor.u32 %v3956_v26, %v3747_v27  ;;  %v3667_v52 = vld [vmem:[#allocation4 + $0x208] sm:$0xf0]  ;;  %v3792_v2 = vld [vmem:[%s5179_s2 + $0x2] sm:$0x3] }
  0x4b   :  { %819 = vmatpush.bf16.msra.mxu2 %v3726_v30  ;;  %785 = vmatmul.bf16.vlgmr.msrb.gmra.mxu3 %v4379_v5  ;;  %v3702_v5 = vor.u32 %v3944_v63, %v3699_v0  ;;  %v3622_v30 = vor.u32 %v3924_v21, %v3619_v23  ;;  %v3670_v57 = vor.u32 %v3936_v51, %v3667_v52  ;;  %v4445_v63 = vld [vmem:[%s5183_s6 + $0x10] sm:$0xff]  ;;  %v4452_v0 = vld [vmem:[%s5182_s5 + $0x8] sm:$0xff]  ;;  %s3371_s17 = sshll.u32 %s4290_s16, 4  ;;  %s3372_s17 = int_to_ptr.vmem [resolvable:$true] %s3371_s17 }
  0x4c   :  { %833 = vmatpush.bf16.msra.mxu3 %v3790_v34  ;;  %v3922_v34 = vld [vmem:[#allocation4 + $0x194] sm:$0xf]  ;;  %934 = vrot.lane.b32.xlu1 %v856_v29, %s4287_s21 }
  0x4d   :  { %792 = vmatpush.bf16.msra.mxu0 %v3590_v42  ;;  %v3739_v42 = vld [vmem:[#allocation4 + $0x298] sm:$0xf0] }
  0x4e   :  { %806 = vmatpush.bf16.msra.mxu1 %v3654_v43  ;;  %v3550_v43 = vor.u32 %v3906_v32, %v3547_v33  ;;  %v3742_v49 = vor.u32 %v3954_v41, %v3739_v42 }
  0x4f   :  { %820 = vmatpush.bf16.msra.mxu2 %v3718_v44  ;;  %v3614_v44 = vor.u32 %v3922_v34, %v3611_v37 }
  0x50   :  { %834 = vmatpush.bf16.msra.mxu3 %v3782_v48  ;;  %v3920_v48 = vld [vmem:[#allocation4 + $0x184] sm:$0xf] }
  0x51   :  { %793 = vmatpush.bf16.msra.mxu0 %v3582_v54  ;;  %v3731_v54 = vld [vmem:[#allocation4 + $0x288] sm:$0xf0] }
  0x52   :  { %807 = vmatpush.bf16.msra.mxu1 %v3646_v55  ;;  %v3542_v55 = vor.u32 %v3904_v46, %v3539_v47  ;;  %v3734_v58 = vor.u32 %v3952_v53, %v3731_v54 }
  0x53   :  { %821 = vmatpush.bf16.msra.mxu2 %v3710_v56  ;;  %v3606_v56 = vor.u32 %v3920_v48, %v3603_v50 }
  0x54   :  { %835 = vmatpush.bf16.msra.mxu3 %v3774_v61  ;;  %v4432_v61 = vld [vmem:[%s5183_s6 + $0x18] sm:$0xff] }
  0x55   :  { %794 = vmatpush.bf16.msra.mxu0 %v3574_v59  ;;  %v975_v59 = vrot.slane %v3792_v2, 2 }
  0x56   :  { %808 = vmatpush.bf16.msra.mxu1 %v3638_v3 }
  0x57   :  { %822 = vmatpush.bf16.msra.mxu2 %v3702_v5  ;;  %976 = vrot.lane.b32.xlu2 %v975_v59, %s4287_s21  ;;  %v163_v5 = vld [vmem:[%s5181_s4] sm:$0x3]  ;;  %s4288_s4 = smov 64  }
  0x58   :  { %836 = vmatpush.bf16.msra.mxu3 %v3766_v8  ;;  %v165_v6 = vperm.slane %v163_v5, 0  ;;  %v166_v21 = vperm.slane %v163_v5, 1 }
  0x59   :  { %795 = vmatpush.bf16.msra.mxu0 %v3566_v15 }
  0x5a   :  { %809 = vmatpush.bf16.msra.mxu1 %v3630_v16 }
  0x5b   :  { %823 = vmatpush.bf16.msra.mxu2 %v3694_v18 }
  0x5c   :  { %837 = vmatpush.bf16.msra.mxu3 %v3758_v22 }
  0x5d   :  { %796 = vmatpush.bf16.msra.mxu0 %v3558_v28 }
  0x5e   :  { %810 = vmatpush.bf16.msra.mxu1 %v3622_v30 }
  0x5f   :  { %824 = vmatpush.bf16.msra.mxu2 %v3686_v31 }
  0x60   :  { %838 = vmatpush.bf16.msra.mxu3 %v3750_v36 }
  0x61   :  { %797 = vmatpush.bf16.msra.mxu0 %v3550_v43 }
  0x62   :  { %811 = vmatpush.bf16.msra.mxu1 %v3614_v44 }
  0x63   :  { %825 = vmatpush.bf16.msra.mxu2 %v3678_v45 }
  0x64   :  { %839 = vmatpush.bf16.msra.mxu3 %v3742_v49 }
  0x65   :  { %798 = vmatpush.bf16.msra.mxu0 %v3542_v55 }
  0x66   :  { %812 = vmatpush.bf16.msra.mxu1 %v3606_v56 }
  0x67   :  { %826 = vmatpush.bf16.msra.mxu2 %v3670_v57 }
  0x68   :  { %840 = vmatpush.bf16.msra.mxu3 %v3734_v58  ;;  %799 = vmatmul.bf16.vlgmr.msra.gmra.mxu0 %v4390_v10  ;;  %v4459_v10 = vld [vmem:[%s5183_s6 + $0x8] sm:$0xff] }
  0x69   :  { %877 = vmatpush.msrb.mxu0 %v4427_v60  ;;  %813 = vmatmul.bf16.vlgmr.msra.gmra.mxu1 %v4395_v17  ;;  %v4465_v17 = vld [vmem:[%s5182_s5] sm:$0xff] }
  0x6a   :  { %901 = vmatpush.msrb.mxu1 %v4432_v61  ;;  %827 = vmatmul.bf16.vlgmr.msra.gmra.mxu2 %v4412_v35  ;;  %v4472_v35 = vld [vmem:[%s5183_s6] sm:$0xff] }
  0x6b   :  { %841 = vmatmul.bf16.vlgmr.msra.gmra.mxu3 %v4414_v39  ;;  %878 = vmatpush.msrb.mxu0 %v4438_v62  ;;  %v855_v39 = vld [vmem:[%s5178_s1] sm:$0x3] }
  0x6c   :  { %902 = vmatpush.msrb.mxu1 %v4445_v63  ;;  %1023 = vmatpush.msrb.mxu3 %v4427_v60 }
  0x6d   :  { %879 = vmatpush.msrb.mxu0 %v4452_v0  ;;  %1325 = vmatpush.msrb.mxu2 %v4427_v60 }
  0x6e   :  { %903 = vmatpush.msrb.mxu1 %v4459_v10  ;;  %1024 = vmatpush.msrb.mxu3 %v4438_v62 }
  0x6f   :  { %880 = vmatpush.msrb.mxu0 %v4465_v17  ;;  %1326 = vmatpush.msrb.mxu2 %v4438_v62 }
  0x70   :  { %904 = vmatpush.msrb.mxu1 %v4472_v35  ;;  %1025 = vmatpush.msrb.mxu3 %v4452_v0 }
  0x71   :  { %1175 = vmatpush.msra.mxu0 %v4427_v60  ;;  %1327 = vmatpush.msrb.mxu2 %v4452_v0 }
  0x72   :  { %1204 = vmatpush.msra.mxu1 %v4432_v61  ;;  %1026 = vmatpush.msrb.mxu3 %v4465_v17 }
  0x73   :  { %1176 = vmatpush.msra.mxu0 %v4438_v62  ;;  %1328 = vmatpush.msrb.mxu2 %v4465_v17 }
  0x74   :  { %1052 = vmatpush.msra.mxu3 %v4432_v61  ;;  %1205 = vmatpush.msra.mxu1 %v4445_v63 }
  0x75   :  { %1177 = vmatpush.msra.mxu0 %v4452_v0  ;;  %1613 = vmatpush.msra.mxu2 %v4427_v60 }
  0x76   :  { %1053 = vmatpush.msra.mxu3 %v4445_v63  ;;  %1206 = vmatpush.msra.mxu1 %v4459_v10 }
  0x77   :  { %1178 = vmatpush.msra.mxu0 %v4465_v17  ;;  %1614 = vmatpush.msra.mxu2 %v4438_v62 }
  0x78   :  { %1054 = vmatpush.msra.mxu3 %v4459_v10  ;;  %1207 = vmatpush.msra.mxu1 %v4472_v35 }
  0x79   :  { %3793 = vmatmul.msk.f32.vlgmr.msrb.gmra.mxu0 %vm861_vm0, %v855_v39  ;;  %3794 = vmatmul.msk.f32.vlgmr.msrb.gmra.mxu1 %vm861_vm0, %v3791_v1 }
  0x7a   :  { %1055 = vmatpush.msra.mxu3 %v4472_v35  ;;  %1472 = vmatpush.msrb.mxu0 %v4427_v60 }
  0x7b   :  { %1495 = vmatpush.msrb.mxu1 %v4432_v61  ;;  %1615 = vmatpush.msra.mxu2 %v4452_v0 }
  0x7c   :  { %1473 = vmatpush.msrb.mxu0 %v4438_v62 }
  0x7d   :  { %1496 = vmatpush.msrb.mxu1 %v4445_v63  ;;  %1616 = vmatpush.msra.mxu2 %v4465_v17 }
  0x7e   :  { %1474 = vmatpush.msrb.mxu0 %v4452_v0 }
  0x7f   :  { %1497 = vmatpush.msrb.mxu1 %v4459_v10 }
  0x80   :  { %1475 = vmatpush.msrb.mxu0 %v4465_v17 }
  0x81   :  { %1498 = vmatpush.msrb.mxu1 %v4472_v35 }
  0xa5   :  { %v688_v3 = vpop.f32.mrf.mxu0 }
  0xa6   :  { %v702_v4 = vpop.f32.mrf.mxu1  ;;  %v689_v30 = vadd.f32 %v688_v3, %v165_v6 }
  0xa8   :  { %v703_v32 = vadd.f32 %v702_v4, %v689_v30 }
  0xad   :  { %v690_v7 = vpop.f32.mrf.mxu0  ;;  %v716_v9 = vpop.f32.mrf.mxu2 }
  0xae   :  { %v691_v8 = vadd.f32 %v690_v7, %v165_v6  ;;  %v730_v11 = vpop.f32.mrf.mxu3  ;;  %v704_v12 = vpop.f32.mrf.mxu1  ;;  %v717_v38 = vadd.f32 %v716_v9, %v703_v32 }
  0xb0   :  { %v705_v13 = vadd.f32 %v704_v12, %v691_v8  ;;  %v731_v42 = vadd.f32 %v730_v11, %v717_v38 }
  0xb5   :  { %v718_v14 = vpop.f32.mrf.mxu2 }
  0xb6   :  { %v732_v15 = vpop.f32.mrf.mxu3  ;;  %v719_v16 = vadd.f32 %v718_v14, %v705_v13 }
  0xb8   :  { %v733_v18 = vadd.f32 %v732_v15, %v719_v16 }
  0xc5   :  { %v744_v19 = vpop.f32.mrf.mxu0 }
  0xc6   :  { %v758_v20 = vpop.f32.mrf.mxu1  ;;  %v745_v51 = vadd.f32 %v744_v19, %v731_v42 }
  0xc8   :  { %v4527_v53 = vadd.f32 %v758_v20, %v745_v51 }
  0xcd   :  { %v772_v22 = vpop.f32.mrf.mxu2  ;;  %v746_v23 = vpop.f32.mrf.mxu0 }
  0xce   :  { %v773_v24 = vadd.f32 %v772_v22, %v166_v21  ;;  %v747_v25 = vadd.f32 %v746_v23, %v733_v18  ;;  %v760_v26 = vpop.f32.mrf.mxu1  ;;  %v786_v27 = vpop.f32.mrf.mxu3 }
  0xd0   :  { %v787_v28 = vadd.f32 %v786_v27, %v773_v24  ;;  %v4523_v29 = vadd.f32 %v760_v26, %v747_v25 }
  0xd5   :  { %v774_v33 = vpop.f32.mrf.mxu2 }
  0xd6   :  { %v788_v31 = vpop.f32.mrf.mxu3  ;;  %v775_v41 = vadd.f32 %v774_v33, %v166_v21 }
  0xd8   :  { %v789_v44 = vadd.f32 %v788_v31, %v775_v41 }
  0xe5   :  { %v800_v34 = vpop.f32.mrf.mxu0 }
  0xe6   :  { %v801_v36 = vadd.f32 %v800_v34, %v787_v28  ;;  %v814_v37 = vpop.f32.mrf.mxu1 }
  0xe8   :  { %v815_v40 = vadd.f32 %v814_v37, %v801_v36 }
  0xed   :  { %v828_v43 = vpop.f32.mrf.mxu2  ;;  %v802_v47 = vpop.f32.mrf.mxu0 }
  0xee   :  { %v829_v45 = vadd.f32 %v828_v43, %v815_v40  ;;  %v842_v46 = vpop.f32.mrf.mxu3  ;;  %v816_v48 = vpop.f32.mrf.mxu1  ;;  %v803_v50 = vadd.f32 %v802_v47, %v789_v44 }
  0xef   :  { %v977_v40 = vpop.permute.xlu2 %976  ;;  %v935_v44 = vpop.permute.xlu1 %934 }
  0xf0   :  { %v4525_v49 = vadd.f32 %v842_v46, %v829_v45  ;;  %v817_v52 = vadd.f32 %v816_v48, %v803_v50 }
  0xf5   :  { %v830_v54 = vpop.f32.mrf.mxu2 }
  0xf6   :  { %v831_v55 = vadd.f32 %v830_v54, %v817_v52  ;;  %v882_v56 = vpop.f32.mrf.mxu0  ;;  %v906_v58 = vpop.f32.mrf.mxu1 }
  0xf7   :  { %v885_v57 = vadd.f32 %v882_v56, %v4527_v53  ;;  %v844_v39 = vpop.f32.mrf.mxu3  ;;  %v910_v2 = vrot.slane %v906_v58, 2 }
  0xf8   :  { %v4530_v1 = vadd.f32 %v844_v39, %v831_v55 }
  0xf9   :  { %3976 = vtanh.f32 %v885_v57  ;;  %v3795_v4 = vmul.f32 -1.442695, %v885_v57 }
  0xfa   :  { %v912_v59 = vadd.f32 %v910_v2, %v4530_v1 }
  0xfc   :  { %3978 = vtanh.f32 %v912_v59  ;;  %v3796_v6 = vmul.f32 -1.442695, %v912_v59 }
  0xfd   :  { %3980 = vpow2.f32 %v3795_v4 }
  0xfe   :  { %3982 = vpow2.f32 %v3796_v6 }
  0xff   :  { %v3977_v3 = vpop.eup %3976 }
 0x100   :  { %939 = vrot.lane.b32.xlu0 %v3977_v3, %s4287_s21 }
 0x102   :  { %v3979_v5 = vpop.eup %3978 }
 0x103   :  { %v3981_v7 = vpop.eup %3980 }
 0x104   :  { %v916_v8 = vadd.f32 1.0, %v3981_v7  ;;  %v3983_v9 = vpop.eup %3982 }
 0x105   :  { %v957_v11 = vadd.f32 1.0, %v3983_v9 }
 0x106   :  { %3984 = vrcp.f32 %v916_v8  ;;  %v928_v21 = vand.u32 2147483648, %v916_v8  ;;  %vm922_vm2 = vweird.f32 %v916_v8  ;;  %v926_v22 = vand.u32 2147483647, %v916_v8 }
 0x107   :  { %3986 = vrcp.f32 %v957_v11  ;;  %v969_v31 = vand.u32 2147483648, %v957_v11  ;;  %vm963_vm6 = vweird.f32 %v957_v11  ;;  %v967_v32 = vand.u32 2147483647, %v957_v11 }
 0x108   :  { %981 = vrot.lane.b32.xlu0 %v3979_v5, %s4287_s21  ;;  %v929_v25 = vor.u32 1.1754944e-38, %v928_v21  ;;  %vm927_vm4 = vcmp.eq.f32.partialorder %v926_v22, 8.507059e+37 }
 0x109   :  { %v970_v34 = vor.u32 1.1754944e-38, %v969_v31  ;;  %vm968_vm8 = vcmp.eq.f32.partialorder %v967_v32, 8.507059e+37 }
 0x10c   :  { %v3985_v12 = vpop.eup %3984 }
 0x10d   :  { %v918_v13 = vmul.f32 %v3985_v12, %v916_v8  ;;  %v3987_v15 = vpop.eup %3986  ;;  %vm923_vm1 = vweird.f32 %v3985_v12 }
 0x10e   :  { %v959_v18 = vmul.f32 %v3987_v15, %v957_v11  ;;  %vm924_vm3 = vmor %vm922_vm2, %vm923_vm1  ;;  %vm964_vm5 = vweird.f32 %v3987_v15 }
 0x10f   :  { %v919_v14 = vsub.f32 1.0, %v918_v13  ;;  %vm965_vm7 = vmor %vm963_vm6, %vm964_vm5 }
 0x110   :  { %v960_v20 = vsub.f32 1.0, %v959_v18 }
 0x111   :  { %v920_v16 = vmul.f32 %v3985_v12, %v919_v14 }
 0x112   :  { %v961_v24 = vmul.f32 %v3987_v15, %v960_v20 }
 0x113   :  { %v921_v19 = vadd.f32 %v3985_v12, %v920_v16 }
 0x114   :  { %v962_v28 = vadd.f32 %v3987_v15, %v961_v24 }
 0x115   :  { %v925_v23 = vsel %vm924_vm3, %v3985_v12, %v921_v19 }
 0x116   :  { %v930_v26 = vsel %vm927_vm4, %v929_v25, %v925_v23  ;;  %v966_v33 = vsel %vm965_vm7, %v3987_v15, %v962_v28 }
 0x117   :  { %v971_v36 = vsel %vm968_vm8, %v970_v34, %v966_v33  ;;  %v937_v46 = vmul.f32 %v935_v44, %v930_v26 }
 0x118   :  { %v979_v41 = vmul.f32 %v977_v40, %v971_v36 }
 0x172   :  { %v940_v27 = vpop.permute.xlu0 %939 }
 0x173   :  { %v942_v30 = vmul.f32 %v940_v27, %v930_v26 }
 0x175   :  { %944 = vrot.lane.b32.xlu1 %v942_v30, %s4287_s21 }
 0x17a   :  { %v982_v37 = vpop.permute.xlu0 %981 }
 0x17b   :  { %v984_v38 = vmul.f32 %v982_v37, %v971_v36 }
 0x17d   :  { %986 = vrot.lane.b32.xlu2 %v984_v38, %s4287_s21 }
 0x1d7   :  { %v987_v42 = vpop.permute.xlu2 %986 }
 0x1d8   :  { %v4537_v43 = vadd.f32 %v987_v42, %v979_v41 }
 0x1da   :  { %3988 = vtanh.f32 %v4537_v43  ;;  %v1125_v44 = vrot.slane %v4537_v43, 2 }
 0x1e0   :  { %v3989_v45 = vpop.eup %3988 }
 0x1e1   :  { %992 = vrot.lane.b32.xlu1 %v3989_v45, %s4287_s21 }
 0x1e7   :  { %v945_v47 = vpop.permute.xlu1 %944 }
 0x1e8   :  { %v4541_v48 = vadd.f32 %v945_v47, %v937_v46 }
 0x1ea   :  { %3990 = vtanh.f32 %v4541_v48 }
 0x1f0   :  { %v3991_v50 = vpop.eup %3990 }
 0x1f1   :  { %950 = vrot.lane.b32.xlu0 %v3991_v50, %s4287_s21 }
 0x253   :  { %v993_v51 = vpop.permute.xlu1 %992 }
 0x254   :  { %v4545_v52 = vmul.f32 %v993_v51, %v971_v36  ;;  %v1085_v51 = vrot.slane %v4541_v48, 6 }
 0x256   :  { %v1035_v54 = vrot.slane %v4545_v52, 6 }
 0x258   :  { %1036 = vrot.lane.b32.xlu0 %v1035_v54, %s4288_s4 }
 0x263   :  { %v951_v55 = vpop.permute.xlu0 %950 }
 0x264   :  { %v953_v56 = vmul.f32 %v951_v55, %v930_v26 }
 0x266   :  { %997 = vrot.lane.b32.xlu2 %v953_v56, %s4288_s4 }
 0x2c0   :  { %v998_v57 = vpop.permute.xlu2 %997 }
 0x2c1   :  { %1001 = vst.msk [vmem:[#allocation2] sm:$0x3] %vm1000_vm9, %v998_v57  ;;  %3797 = vmatmul.msk.f32.vlgmr.msrb.gmra.mxu3 %vm861_vm0, %v998_v57 }
 0x2c2   :  { %1354 = vmatpush.msrb.mxu3 %v4432_v61 }
 0x2c4   :  { %1355 = vmatpush.msrb.mxu3 %v4445_v63 }
 0x2c6   :  { %1356 = vmatpush.msrb.mxu3 %v4459_v10 }
 0x2c8   :  { %1357 = vmatpush.msrb.mxu3 %v4472_v35 }
 0x2ca   :  { %v1037_v58 = vpop.permute.xlu0 %1036 }
 0x2cb   :  { %3798 = vmatmul.msk.f32.vlgmr.msra.gmra.mxu3 %vm861_vm0, %v1037_v58 }
 0x2cc   :  { %1642 = vmatpush.msra.mxu3 %v4432_v61 }
 0x2ce   :  { %1643 = vmatpush.msra.mxu3 %v4445_v63 }
 0x2d0   :  { %1644 = vmatpush.msra.mxu3 %v4459_v10 }
 0x2d2   :  { %1645 = vmatpush.msra.mxu3 %v4472_v35 }
 0x344   :  { %v1028_v39 = vpop.f32.mrf.mxu3 }
 0x345   :  { %v1032_v2 = vrot.slane %v1028_v39, 6 }
 0x347   :  { %v1034_v59 = vadd.f32 %v1032_v2, %v4527_v53 }
 0x349   :  { %3992 = vtanh.f32 %v1034_v59  ;;  %v3799_v8 = vmul.f32 -1.442695, %v1034_v59 }
 0x34e   :  { %v1057_v3 = vpop.f32.mrf.mxu3 }
 0x34f   :  { %v3993_v5 = vpop.eup %3992  ;;  %v1061_v4 = vrot.slane %v1057_v3, 4 }
 0x350   :  { %1089 = vrot.lane.b32.xlu0 %v3993_v5, %s4287_s21 }
 0x351   :  { %v1063_v6 = vadd.f32 %v1061_v4, %v4530_v1 }
 0x353   :  { %3994 = vtanh.f32 %v1063_v6  ;;  %v3800_v11 = vmul.f32 -1.442695, %v1063_v6 }
 0x354   :  { %3996 = vpow2.f32 %v3799_v8 }
 0x355   :  { %3998 = vpow2.f32 %v3800_v11 }
 0x359   :  { %v3995_v7 = vpop.eup %3994 }
 0x35a   :  { %1129 = vrot.lane.b32.xlu1 %v3995_v7, %s4287_s21  ;;  %v3997_v9 = vpop.eup %3996 }
 0x35b   :  { %v1067_v12 = vadd.f32 1.0, %v3997_v9  ;;  %v3999_v13 = vpop.eup %3998 }
 0x35c   :  { %v1107_v15 = vadd.f32 1.0, %v3999_v13 }
 0x35d   :  { %4000 = vrcp.f32 %v1067_v12  ;;  %v1079_v23 = vand.u32 2147483648, %v1067_v12  ;;  %vm1073_vm11 = vweird.f32 %v1067_v12  ;;  %v1077_v24 = vand.u32 2147483647, %v1067_v12 }
 0x35e   :  { %4002 = vrcp.f32 %v1107_v15  ;;  %v1119_v34 = vand.u32 2147483648, %v1107_v15  ;;  %vm1113_vm15 = vweird.f32 %v1107_v15  ;;  %v1117_v36 = vand.u32 2147483647, %v1107_v15 }
 0x35f   :  { %v1080_v27 = vor.u32 1.1754944e-38, %v1079_v23  ;;  %vm1078_vm13 = vcmp.eq.f32.partialorder %v1077_v24, 8.507059e+37 }
 0x360   :  { %v1120_v38 = vor.u32 1.1754944e-38, %v1119_v34  ;;  %vm1118_vm2 = vcmp.eq.f32.partialorder %v1117_v36, 8.507059e+37 }
 0x363   :  { %v4001_v14 = vpop.eup %4000 }
 0x364   :  { %v1069_v16 = vmul.f32 %v4001_v14, %v1067_v12  ;;  %v4003_v19 = vpop.eup %4002  ;;  %vm1074_vm10 = vweird.f32 %v4001_v14 }
 0x365   :  { %v1109_v21 = vmul.f32 %v4003_v19, %v1107_v15  ;;  %vm1075_vm12 = vmor %vm1073_vm11, %vm1074_vm10  ;;  %vm1114_vm14 = vweird.f32 %v4003_v19 }
 0x366   :  { %v1070_v18 = vsub.f32 1.0, %v1069_v16  ;;  %vm1115_vm1 = vmor %vm1113_vm15, %vm1114_vm14 }
 0x367   :  { %v1110_v25 = vsub.f32 1.0, %v1109_v21 }
 0x368   :  { %v1071_v20 = vmul.f32 %v4001_v14, %v1070_v18 }
 0x369   :  { %v1111_v28 = vmul.f32 %v4003_v19, %v1110_v25 }
 0x36a   :  { %v1072_v22 = vadd.f32 %v4001_v14, %v1071_v20 }
 0x36b   :  { %v1112_v33 = vadd.f32 %v4003_v19, %v1111_v28 }
 0x36c   :  { %v1076_v26 = vsel %vm1075_vm12, %v4001_v14, %v1072_v22 }
 0x36d   :  { %v1081_v30 = vsel %vm1078_vm13, %v1080_v27, %v1076_v26  ;;  %v1116_v37 = vsel %vm1115_vm1, %v4003_v19, %v1112_v33 }
 0x36e   :  { %v1121_v41 = vsel %vm1118_vm2, %v1120_v38, %v1116_v37  ;;  %v1087_v54 = vmul.f32 %v1085_v51, %v1081_v30 }
 0x36f   :  { %v1127_v45 = vmul.f32 %v1125_v44, %v1121_v41 }
 0x3c2   :  { %v1090_v31 = vpop.permute.xlu0 %1089 }
 0x3c3   :  { %v1092_v32 = vmul.f32 %v1090_v31, %v1081_v30 }
 0x3c5   :  { %1094 = vrot.lane.b32.xlu1 %v1092_v32, %s4287_s21 }
 0x3cc   :  { %v1130_v40 = vpop.permute.xlu1 %1129 }
 0x3cd   :  { %v1132_v42 = vmul.f32 %v1130_v40, %v1121_v41 }
 0x3cf   :  { %1134 = vrot.lane.b32.xlu2 %v1132_v42, %s4287_s21 }
 0x429   :  { %v1135_v46 = vpop.permute.xlu2 %1134 }
 0x42a   :  { %v4568_v47 = vadd.f32 %v1135_v46, %v1127_v45 }
 0x42c   :  { %4004 = vtanh.f32 %v4568_v47 }
 0x432   :  { %v4005_v50 = vpop.eup %4004 }
 0x433   :  { %1140 = vrot.lane.b32.xlu2 %v4005_v50, %s4287_s21 }
 0x437   :  { %v1095_v55 = vpop.permute.xlu1 %1094 }
 0x438   :  { %v4573_v56 = vadd.f32 %v1095_v55, %v1087_v54 }
 0x43a   :  { %4006 = vtanh.f32 %v4573_v56  ;;  %v1237_v54 = vrot.slane %v4573_v56, 6 }
 0x440   :  { %v4007_v57 = vpop.eup %4006 }
 0x441   :  { %1100 = vrot.lane.b32.xlu1 %v4007_v57, %s4287_s21 }
 0x48d   :  { %v1141_v43 = vpop.permute.xlu2 %1140 }
 0x48e   :  { %v4577_v58 = vmul.f32 %v1141_v43, %v1121_v41 }
 0x490   :  { %v1187_v39 = vrot.slane %v4577_v58, 4 }
 0x492   :  { %1188 = vrot.lane.b32.xlu0 %v1187_v39, %s4288_s4  ;;  %v1277_v39 = vrot.slane %v4568_v47, 2 }
 0x4b3   :  { %v1101_v2 = vpop.permute.xlu1 %1100 }
 0x4b4   :  { %v4581_v59 = vmul.f32 %v1101_v2, %v1081_v30 }
 0x4b6   :  { %v1158_v48 = vrot.slane %v4581_v59, 2 }
 0x4b8   :  { %1159 = vrot.lane.b32.xlu2 %v1158_v48, %s4288_s4 }
 0x504   :  { %v1189_v3 = vpop.permute.xlu0 %1188 }
 0x505   :  { %3802 = vmatmul.msk.f32.vlgmr.msra.gmra.mxu1 %vm861_vm0, %v1189_v3 }
 0x506   :  { %1792 = vmatpush.msra.mxu1 %v4432_v61 }
 0x508   :  { %1793 = vmatpush.msra.mxu1 %v4445_v63 }
 0x50a   :  { %1794 = vmatpush.msra.mxu1 %v4459_v10 }
 0x50c   :  { %1795 = vmatpush.msra.mxu1 %v4472_v35 }
 0x512   :  { %v1160_v5 = vpop.permute.xlu2 %1159 }
 0x513   :  { %3801 = vmatmul.msk.f32.vlgmr.msra.gmra.mxu0 %vm861_vm0, %v1160_v5 }
 0x514   :  { %1763 = vmatpush.msra.mxu0 %v4427_v60 }
 0x516   :  { %1764 = vmatpush.msra.mxu0 %v4438_v62 }
 0x518   :  { %1765 = vmatpush.msra.mxu0 %v4452_v0 }
 0x51a   :  { %1766 = vmatpush.msra.mxu0 %v4465_v17 }
 0x582   :  { %v1209_v4 = vpop.f32.mrf.mxu1 }
 0x583   :  { %v1213_v6 = vrot.slane %v1209_v4, 6 }
 0x585   :  { %v1215_v7 = vadd.f32 %v1213_v6, %v4530_v1 }
 0x587   :  { %4008 = vtanh.f32 %v1215_v7  ;;  %v3804_v16 = vmul.f32 -1.442695, %v1215_v7 }
 0x58d   :  { %v4009_v8 = vpop.eup %4008 }
 0x58e   :  { %1281 = vrot.lane.b32.xlu0 %v4009_v8, %s4287_s21 }
 0x590   :  { %v1180_v9 = vpop.f32.mrf.mxu0 }
 0x591   :  { %v1184_v11 = vrot.slane %v1180_v9, 4 }
 0x593   :  { %v1186_v12 = vadd.f32 %v1184_v11, %v4527_v53 }
 0x595   :  { %4010 = vtanh.f32 %v1186_v12  ;;  %v3803_v14 = vmul.f32 -1.442695, %v1186_v12 }
 0x597   :  { %4012 = vpow2.f32 %v3803_v14 }
 0x598   :  { %4014 = vpow2.f32 %v3804_v16 }
 0x59b   :  { %v4011_v13 = vpop.eup %4010 }
 0x59c   :  { %1241 = vrot.lane.b32.xlu2 %v4011_v13, %s4287_s21 }
 0x59d   :  { %v4013_v15 = vpop.eup %4012 }
 0x59e   :  { %v1219_v18 = vadd.f32 1.0, %v4013_v15  ;;  %v4015_v19 = vpop.eup %4014 }
 0x59f   :  { %v1259_v21 = vadd.f32 1.0, %v4015_v19 }
 0x5a0   :  { %4016 = vrcp.f32 %v1219_v18  ;;  %v1231_v28 = vand.u32 2147483648, %v1219_v18  ;;  %vm1225_vm4 = vweird.f32 %v1219_v18  ;;  %v1229_v30 = vand.u32 2147483647, %v1219_v18 }
 0x5a1   :  { %4018 = vrcp.f32 %v1259_v21  ;;  %v1271_v41 = vand.u32 2147483648, %v1259_v21  ;;  %vm1265_vm8 = vweird.f32 %v1259_v21  ;;  %v1269_v42 = vand.u32 2147483647, %v1259_v21 }
 0x5a2   :  { %v1232_v33 = vor.u32 1.1754944e-38, %v1231_v28  ;;  %vm1230_vm6 = vcmp.eq.f32.partialorder %v1229_v30, 8.507059e+37 }
 0x5a3   :  { %v1272_v45 = vor.u32 1.1754944e-38, %v1271_v41  ;;  %vm1270_vm11 = vcmp.eq.f32.partialorder %v1269_v42, 8.507059e+37 }
 0x5a6   :  { %v4017_v20 = vpop.eup %4016 }
 0x5a7   :  { %v1221_v22 = vmul.f32 %v4017_v20, %v1219_v18  ;;  %v4019_v24 = vpop.eup %4018  ;;  %vm1226_vm3 = vweird.f32 %v4017_v20 }
 0x5a8   :  { %v1261_v26 = vmul.f32 %v4019_v24, %v1259_v21  ;;  %vm1227_vm5 = vmor %vm1225_vm4, %vm1226_vm3  ;;  %vm1266_vm7 = vweird.f32 %v4019_v24 }
 0x5a9   :  { %v1222_v23 = vsub.f32 1.0, %v1221_v22  ;;  %vm1267_vm10 = vmor %vm1265_vm8, %vm1266_vm7 }
 0x5aa   :  { %v1262_v31 = vsub.f32 1.0, %v1261_v26 }
 0x5ab   :  { %v1223_v25 = vmul.f32 %v4017_v20, %v1222_v23 }
 0x5ac   :  { %v1263_v34 = vmul.f32 %v4019_v24, %v1262_v31 }
 0x5ad   :  { %v1224_v27 = vadd.f32 %v4017_v20, %v1223_v25 }
 0x5ae   :  { %v1264_v40 = vadd.f32 %v4019_v24, %v1263_v34 }
 0x5af   :  { %v1228_v32 = vsel %vm1227_vm5, %v4017_v20, %v1224_v27 }
 0x5b0   :  { %v1233_v37 = vsel %vm1230_vm6, %v1232_v33, %v1228_v32  ;;  %v1268_v44 = vsel %vm1267_vm10, %v4019_v24, %v1264_v40 }
 0x5b1   :  { %v1273_v50 = vsel %vm1270_vm11, %v1272_v45, %v1268_v44  ;;  %v1239_v55 = vmul.f32 %v1237_v54, %v1233_v37 }
 0x5b2   :  { %v1279_v48 = vmul.f32 %v1277_v39, %v1273_v50 }
 0x5f6   :  { %v1242_v36 = vpop.permute.xlu2 %1241 }
 0x5f7   :  { %v1244_v38 = vmul.f32 %v1242_v36, %v1233_v37 }
 0x5f9   :  { %1246 = vrot.lane.b32.xlu0 %v1244_v38, %s4287_s21 }
 0x600   :  { %v1282_v46 = vpop.permute.xlu0 %1281 }
 0x601   :  { %v1284_v51 = vmul.f32 %v1282_v46, %v1273_v50 }
 0x603   :  { %1286 = vrot.lane.b32.xlu1 %v1284_v51, %s4287_s21 }
 0x66b   :  { %v1247_v57 = vpop.permute.xlu0 %1246 }
 0x66c   :  { %v4602_v43 = vadd.f32 %v1247_v57, %v1239_v55 }
 0x66e   :  { %4020 = vtanh.f32 %v4602_v43  ;;  %v1384_v55 = vrot.slane %v4602_v43, 6 }
 0x674   :  { %v4021_v2 = vpop.eup %4020 }
 0x675   :  { %1252 = vrot.lane.b32.xlu0 %v4021_v2, %s4287_s21  ;;  %v1287_v3 = vpop.permute.xlu1 %1286 }
 0x676   :  { %v4607_v5 = vadd.f32 %v1287_v3, %v1279_v48 }
 0x678   :  { %4022 = vtanh.f32 %v4607_v5  ;;  %v1424_v45 = vrot.slane %v4607_v5, 2 }
 0x67e   :  { %v4023_v4 = vpop.eup %4022 }
 0x67f   :  { %1292 = vrot.lane.b32.xlu1 %v4023_v4, %s4287_s21 }
 0x6e7   :  { %v1253_v56 = vpop.permute.xlu0 %1252 }
 0x6e8   :  { %v4611_v6 = vmul.f32 %v1253_v56, %v1233_v37 }
 0x6ea   :  { %v1308_v7 = vrot.slane %v4611_v6, 4 }
 0x6ec   :  { %1309 = vrot.lane.b32.xlu1 %v1308_v7, %s4288_s4 }
 0x6f1   :  { %v1293_v47 = vpop.permute.xlu1 %1292 }
 0x6f2   :  { %v4615_v8 = vmul.f32 %v1293_v47, %v1273_v50 }
 0x6f4   :  { %v1337_v9 = vrot.slane %v4615_v8, 2 }
 0x6f6   :  { %1338 = vrot.lane.b32.xlu2 %v1337_v9, %s4288_s4 }
 0x750   :  { %v1339_v11 = vpop.permute.xlu2 %1338 }
 0x751   :  { %3806 = vmatmul.msk.f32.vlgmr.msrb.gmra.mxu3 %vm861_vm0, %v1339_v11 }
 0x752   :  { %1942 = vmatpush.msrb.mxu3 %v4432_v61 }
 0x754   :  { %1943 = vmatpush.msrb.mxu3 %v4445_v63 }
 0x756   :  { %1944 = vmatpush.msrb.mxu3 %v4459_v10 }
 0x758   :  { %1945 = vmatpush.msrb.mxu3 %v4472_v35 }
 0x75e   :  { %v1310_v12 = vpop.permute.xlu1 %1309 }
 0x75f   :  { %3805 = vmatmul.msk.f32.vlgmr.msrb.gmra.mxu2 %vm861_vm0, %v1310_v12 }
 0x760   :  { %1913 = vmatpush.msrb.mxu2 %v4427_v60 }
 0x762   :  { %1914 = vmatpush.msrb.mxu2 %v4438_v62 }
 0x764   :  { %1915 = vmatpush.msrb.mxu2 %v4452_v0 }
 0x766   :  { %1916 = vmatpush.msrb.mxu2 %v4465_v17 }
 0x7d4   :  { %v1359_v13 = vpop.f32.mrf.mxu3 }
 0x7d5   :  { %v1362_v61 = vadd.f32 %v1359_v13, %v4530_v1 }
 0x7d7   :  { %4024 = vtanh.f32 %v1362_v61  ;;  %v3808_v60 = vmul.f32 -1.442695, %v1362_v61 }
 0x7dd   :  { %v4025_v63 = vpop.eup %4024 }
 0x7de   :  { %1428 = vrot.lane.b32.xlu2 %v4025_v63, %s4287_s21 }
 0x7e2   :  { %v1330_v10 = vpop.f32.mrf.mxu2 }
 0x7e3   :  { %v1334_v35 = vrot.slane %v1330_v10, 2 }
 0x7e5   :  { %v1336_v14 = vadd.f32 %v1334_v35, %v4527_v53 }
 0x7e7   :  { %4026 = vtanh.f32 %v1336_v14  ;;  %v3807_v21 = vmul.f32 -1.442695, %v1336_v14 }
 0x7e8   :  { %4028 = vpow2.f32 %v3808_v60 }
 0x7ed   :  { %v4027_v15 = vpop.eup %4026 }
 0x7ee   :  { %1388 = vrot.lane.b32.xlu1 %v4027_v15, %s4287_s21  ;;  %v4029_v62 = vpop.eup %4028 }
 0x7ef   :  { %v1406_v0 = vadd.f32 1.0, %v4029_v62 }
 0x7f1   :  { %4030 = vrcp.f32 %v1406_v0  ;;  %v1418_v20 = vand.u32 2147483648, %v1406_v0  ;;  %vm1412_vm13 = vweird.f32 %v1406_v0  ;;  %v1416_v22 = vand.u32 2147483647, %v1406_v0 }
 0x7f2   :  { %4032 = vpow2.f32 %v3807_v21 }
 0x7f3   :  { %v1419_v23 = vor.u32 1.1754944e-38, %v1418_v20  ;;  %vm1417_vm15 = vcmp.eq.f32.partialorder %v1416_v22, 8.507059e+37 }
 0x7f7   :  { %v4031_v17 = vpop.eup %4030 }
 0x7f8   :  { %v1408_v16 = vmul.f32 %v4031_v17, %v1406_v0  ;;  %vm1413_vm12 = vweird.f32 %v4031_v17  ;;  %v4033_v27 = vpop.eup %4032 }
 0x7f9   :  { %vm1414_vm14 = vmor %vm1412_vm13, %vm1413_vm12  ;;  %v1366_v28 = vadd.f32 1.0, %v4033_v27 }
 0x7fa   :  { %v1409_v1 = vsub.f32 1.0, %v1408_v16 }
 0x7fb   :  { %4034 = vrcp.f32 %v1366_v28  ;;  %v1378_v36 = vand.u32 2147483648, %v1366_v28  ;;  %vm1372_vm2 = vweird.f32 %v1366_v28  ;;  %v1376_v37 = vand.u32 2147483647, %v1366_v28 }
 0x7fc   :  { %v1410_v18 = vmul.f32 %v4031_v17, %v1409_v1 }
 0x7fd   :  { %v1379_v40 = vor.u32 1.1754944e-38, %v1378_v36  ;;  %vm1377_vm4 = vcmp.eq.f32.partialorder %v1376_v37, 8.507059e+37 }
 0x7fe   :  { %v1411_v19 = vadd.f32 %v4031_v17, %v1410_v18 }
 0x800   :  { %v1415_v53 = vsel %vm1414_vm14, %v4031_v17, %v1411_v19 }
 0x801   :  { %v1420_v25 = vsel %vm1417_vm15, %v1419_v23, %v1415_v53  ;;  %v4035_v30 = vpop.eup %4034 }
 0x802   :  { %v1368_v31 = vmul.f32 %v4035_v30, %v1366_v28  ;;  %vm1373_vm1 = vweird.f32 %v4035_v30  ;;  %v1426_v46 = vmul.f32 %v1424_v45, %v1420_v25 }
 0x803   :  { %vm1374_vm3 = vmor %vm1372_vm2, %vm1373_vm1 }
 0x804   :  { %v1369_v32 = vsub.f32 1.0, %v1368_v31 }
 0x806   :  { %v1370_v33 = vmul.f32 %v4035_v30, %v1369_v32 }
 0x808   :  { %v1371_v34 = vadd.f32 %v4035_v30, %v1370_v33 }
 0x80a   :  { %v1375_v38 = vsel %vm1374_vm3, %v4035_v30, %v1371_v34 }
 0x80b   :  { %v1380_v42 = vsel %vm1377_vm4, %v1379_v40, %v1375_v38 }
 0x80c   :  { %v1386_v57 = vmul.f32 %v1384_v55, %v1380_v42 }
 0x838   :  { %v1429_v24 = vpop.permute.xlu2 %1428 }
 0x839   :  { %v1431_v26 = vmul.f32 %v1429_v24, %v1420_v25 }
 0x83b   :  { %1433 = vrot.lane.b32.xlu0 %v1431_v26, %s4287_s21 }
 0x860   :  { %v1389_v41 = vpop.permute.xlu1 %1388 }
 0x861   :  { %v1391_v44 = vmul.f32 %v1389_v41, %v1380_v42 }
 0x863   :  { %1393 = vrot.lane.b32.xlu2 %v1391_v44, %s4287_s21 }
 0x8ad   :  { %v1434_v50 = vpop.permute.xlu0 %1433 }
 0x8ae   :  { %v4636_v51 = vadd.f32 %v1434_v50, %v1426_v46 }
 0x8b0   :  { %4036 = vtanh.f32 %v4636_v51  ;;  %v1568_v41 = vrot.slane %v4636_v51, 2 }
 0x8b6   :  { %v4037_v54 = vpop.eup %4036 }
 0x8b7   :  { %1439 = vrot.lane.b32.xlu0 %v4037_v54, %s4287_s21 }
 0x8bd   :  { %v1394_v39 = vpop.permute.xlu2 %1393 }
 0x8be   :  { %v4641_v2 = vadd.f32 %v1394_v39, %v1386_v57 }
 0x8c0   :  { %4038 = vtanh.f32 %v4641_v2  ;;  %v1528_v50 = vrot.slane %v4641_v2, 6 }
 0x8c6   :  { %v4039_v48 = vpop.eup %4038 }
 0x8c7   :  { %1399 = vrot.lane.b32.xlu2 %v4039_v48, %s4287_s21 }
 0x921   :  { %v1400_v3 = vpop.permute.xlu2 %1399 }
 0x922   :  { %v4645_v5 = vmul.f32 %v1400_v3, %v1380_v42 }
 0x924   :  { %v1455_v4 = vrot.slane %v4645_v5, 6 }
 0x926   :  { %1456 = vrot.lane.b32.xlu0 %v1455_v4, %s4288_s4 }
 0x929   :  { %v1440_v56 = vpop.permute.xlu0 %1439 }
 0x92a   :  { %v1442_v7 = vmul.f32 %v1440_v56, %v1420_v25 }
 0x92c   :  { %1450 = vrot.lane.b32.xlu1 %v1442_v7, %s4288_s4 }
 0x998   :  { %v1457_v43 = vpop.permute.xlu0 %1456 }
 0x999   :  { %3809 = vmatmul.msk.f32.vlgmr.msrb.gmra.mxu0 %vm861_vm0, %v1457_v43 }
 0x99e   :  { %v1451_v47 = vpop.permute.xlu1 %1450 }
 0x99f   :  { %1454 = vst.msk [vmem:[#allocation3 + $0x8] sm:$0x3] %vm1000_vm9, %v1451_v47  ;;  %3810 = vmatmul.msk.f32.vlgmr.msrb.gmra.mxu1 %vm861_vm0, %v1451_v47 }
 0xa16   :  { %v1477_v9 = vpop.f32.mrf.mxu0 }
 0xa17   :  { %v1480_v11 = vadd.f32 %v1477_v9, %v4523_v29 }
 0xa19   :  { %4040 = vtanh.f32 %v1480_v11  ;;  %v3811_v35 = vmul.f32 -1.442695, %v1480_v11 }
 0xa1c   :  { %v1500_v12 = vpop.f32.mrf.mxu1 }
 0xa1d   :  { %v1504_v13 = vrot.slane %v1500_v12, 2 }
 0xa1f   :  { %v4041_v61 = vpop.eup %4040  ;;  %v1506_v63 = vadd.f32 %v1504_v13, %v4525_v49 }
 0xa20   :  { %1532 = vrot.lane.b32.xlu0 %v4041_v61, %s4287_s21 }
 0xa21   :  { %4042 = vtanh.f32 %v1506_v63  ;;  %v3812_v14 = vmul.f32 -1.442695, %v1506_v63 }
 0xa22   :  { %4044 = vpow2.f32 %v3811_v35 }
 0xa23   :  { %4046 = vpow2.f32 %v3812_v14 }
 0xa27   :  { %v4043_v10 = vpop.eup %4042 }
 0xa28   :  { %1572 = vrot.lane.b32.xlu1 %v4043_v10, %s4287_s21  ;;  %v4045_v15 = vpop.eup %4044 }
 0xa29   :  { %v1510_v60 = vadd.f32 1.0, %v4045_v15  ;;  %v4047_v62 = vpop.eup %4046 }
 0xa2a   :  { %v1550_v0 = vadd.f32 1.0, %v4047_v62 }
 0xa2b   :  { %4048 = vrcp.f32 %v1510_v60  ;;  %v1522_v53 = vand.u32 2147483648, %v1510_v60  ;;  %vm1516_vm6 = vweird.f32 %v1510_v60  ;;  %v1520_v23 = vand.u32 2147483647, %v1510_v60 }
 0xa2c   :  { %4050 = vrcp.f32 %v1550_v0  ;;  %v1562_v32 = vand.u32 2147483648, %v1550_v0  ;;  %vm1556_vm11 = vweird.f32 %v1550_v0  ;;  %v1560_v33 = vand.u32 2147483647, %v1550_v0 }
 0xa2d   :  { %v1523_v26 = vor.u32 1.1754944e-38, %v1522_v53  ;;  %vm1521_vm8 = vcmp.eq.f32.partialorder %v1520_v23, 8.507059e+37 }
 0xa2e   :  { %v1563_v36 = vor.u32 1.1754944e-38, %v1562_v32  ;;  %vm1561_vm13 = vcmp.eq.f32.partialorder %v1560_v33, 8.507059e+37 }
 0xa31   :  { %v4049_v17 = vpop.eup %4048 }
 0xa32   :  { %v1512_v16 = vmul.f32 %v4049_v17, %v1510_v60  ;;  %v4051_v18 = vpop.eup %4050  ;;  %vm1517_vm5 = vweird.f32 %v4049_v17 }
 0xa33   :  { %v1552_v20 = vmul.f32 %v4051_v18, %v1550_v0  ;;  %vm1518_vm7 = vmor %vm1516_vm6, %vm1517_vm5  ;;  %vm1557_vm10 = vweird.f32 %v4051_v18 }
 0xa34   :  { %v1513_v1 = vsub.f32 1.0, %v1512_v16  ;;  %vm1558_vm12 = vmor %vm1556_vm11, %vm1557_vm10 }
 0xa35   :  { %v1553_v22 = vsub.f32 1.0, %v1552_v20 }
 0xa36   :  { %v1514_v19 = vmul.f32 %v4049_v17, %v1513_v1 }
 0xa37   :  { %v1554_v25 = vmul.f32 %v4051_v18, %v1553_v22 }
 0xa38   :  { %v1515_v21 = vadd.f32 %v4049_v17, %v1514_v19 }
 0xa39   :  { %v1555_v31 = vadd.f32 %v4051_v18, %v1554_v25 }
 0xa3a   :  { %v1519_v24 = vsel %vm1518_vm7, %v4049_v17, %v1515_v21 }
 0xa3b   :  { %v1524_v28 = vsel %vm1521_vm8, %v1523_v26, %v1519_v24  ;;  %v1559_v34 = vsel %vm1558_vm12, %v4051_v18, %v1555_v31 }
 0xa3c   :  { %v1564_v38 = vsel %vm1561_vm13, %v1563_v36, %v1559_v34  ;;  %v1530_v54 = vmul.f32 %v1528_v50, %v1524_v28 }
 0xa3d   :  { %v1570_v42 = vmul.f32 %v1568_v41, %v1564_v38 }
 0xa92   :  { %v1533_v27 = vpop.permute.xlu0 %1532 }
 0xa93   :  { %v1535_v30 = vmul.f32 %v1533_v27, %v1524_v28 }
 0xa95   :  { %1537 = vrot.lane.b32.xlu1 %v1535_v30, %s4287_s21 }
 0xa9a   :  { %v1573_v37 = vpop.permute.xlu1 %1572 }
 0xa9b   :  { %v1575_v40 = vmul.f32 %v1573_v37, %v1564_v38 }
 0xa9d   :  { %1577 = vrot.lane.b32.xlu2 %v1575_v40, %s4287_s21 }
 0xaf7   :  { %v1578_v44 = vpop.permute.xlu2 %1577 }
 0xaf8   :  { %v4660_v45 = vadd.f32 %v1578_v44, %v1570_v42 }
 0xafa   :  { %4052 = vtanh.f32 %v4660_v45 }
 0xb00   :  { %v4053_v46 = vpop.eup %4052 }
 0xb01   :  { %1583 = vrot.lane.b32.xlu2 %v4053_v46, %s4287_s21  ;;  %v1715_v46 = vrot.slane %v4660_v45, 2 }
 0xb07   :  { %v1538_v55 = vpop.permute.xlu1 %1537 }
 0xb08   :  { %v4665_v57 = vadd.f32 %v1538_v55, %v1530_v54 }
 0xb0a   :  { %4054 = vtanh.f32 %v4665_v57  ;;  %v1675_v40 = vrot.slane %v4665_v57, 6 }
 0xb10   :  { %v4055_v39 = vpop.eup %4054 }
 0xb11   :  { %1543 = vrot.lane.b32.xlu1 %v4055_v39, %s4287_s21 }
 0xb5b   :  { %v1584_v51 = vpop.permute.xlu2 %1583 }
 0xb5c   :  { %v4669_v48 = vmul.f32 %v1584_v51, %v1564_v38 }
 0xb5e   :  { %v1625_v3 = vrot.slane %v4669_v48, 6 }
 0xb60   :  { %1626 = vrot.lane.b32.xlu0 %v1625_v3, %s4288_s4 }
 0xb83   :  { %v1544_v4 = vpop.permute.xlu1 %1543 }
 0xb84   :  { %v1546_v56 = vmul.f32 %v1544_v4, %v1524_v28 }
 0xb86   :  { %1588 = vrot.lane.b32.xlu2 %v1546_v56, %s4288_s4 }
 0xbd2   :  { %v1627_v2 = vpop.permute.xlu0 %1626 }
 0xbd3   :  { %3814 = vmatmul.msk.f32.vlgmr.msra.gmra.mxu3 %vm861_vm0, %v1627_v2 }
 0xbe0   :  { %v1589_v7 = vpop.permute.xlu2 %1588 }
 0xbe1   :  { %1592 = vst.msk [vmem:[#allocation2 + $0x8] sm:$0x3] %vm1000_vm9, %v1589_v7  ;;  %3813 = vmatmul.msk.f32.vlgmr.msra.gmra.mxu2 %vm861_vm0, %v1589_v7 }
 0xc56   :  { %v1647_v43 = vpop.f32.mrf.mxu3 }
 0xc57   :  { %v1651_v47 = vrot.slane %v1647_v43, 4 }
 0xc59   :  { %v1653_v9 = vadd.f32 %v1651_v47, %v4525_v49 }
 0xc5b   :  { %4056 = vtanh.f32 %v1653_v9  ;;  %v3816_v14 = vmul.f32 -1.442695, %v1653_v9 }
 0xc61   :  { %v4057_v11 = vpop.eup %4056 }
 0xc62   :  { %1719 = vrot.lane.b32.xlu0 %v4057_v11, %s4287_s21 }
 0xc64   :  { %v1618_v12 = vpop.f32.mrf.mxu2 }
 0xc65   :  { %v1622_v13 = vrot.slane %v1618_v12, 6 }
 0xc67   :  { %v1624_v61 = vadd.f32 %v1622_v13, %v4523_v29 }
 0xc69   :  { %4058 = vtanh.f32 %v1624_v61  ;;  %v3815_v10 = vmul.f32 -1.442695, %v1624_v61 }
 0xc6b   :  { %4060 = vpow2.f32 %v3815_v10 }
 0xc6c   :  { %4062 = vpow2.f32 %v3816_v14 }
 0xc6f   :  { %v4059_v63 = vpop.eup %4058 }
 0xc70   :  { %1679 = vrot.lane.b32.xlu2 %v4059_v63, %s4287_s21 }
 0xc71   :  { %v4061_v35 = vpop.eup %4060 }
 0xc72   :  { %v1657_v15 = vadd.f32 1.0, %v4061_v35  ;;  %v4063_v60 = vpop.eup %4062 }
 0xc73   :  { %v1697_v0 = vadd.f32 1.0, %v4063_v60 }
 0xc74   :  { %4064 = vrcp.f32 %v1657_v15  ;;  %v1669_v21 = vand.u32 2147483648, %v1657_v15  ;;  %vm1663_vm15 = vweird.f32 %v1657_v15  ;;  %v1667_v22 = vand.u32 2147483647, %v1657_v15 }
 0xc75   :  { %4066 = vrcp.f32 %v1697_v0  ;;  %v1709_v31 = vand.u32 2147483648, %v1697_v0  ;;  %vm1703_vm4 = vweird.f32 %v1697_v0  ;;  %v1707_v32 = vand.u32 2147483647, %v1697_v0 }
 0xc76   :  { %v1670_v24 = vor.u32 1.1754944e-38, %v1669_v21  ;;  %vm1668_vm2 = vcmp.eq.f32.partialorder %v1667_v22, 8.507059e+37 }
 0xc77   :  { %v1710_v34 = vor.u32 1.1754944e-38, %v1709_v31  ;;  %vm1708_vm6 = vcmp.eq.f32.partialorder %v1707_v32, 8.507059e+37 }
 0xc7a   :  { %v4065_v62 = vpop.eup %4064 }
 0xc7b   :  { %v1659_v17 = vmul.f32 %v4065_v62, %v1657_v15  ;;  %v4067_v1 = vpop.eup %4066  ;;  %vm1664_vm14 = vweird.f32 %v4065_v62 }
 0xc7c   :  { %v1699_v19 = vmul.f32 %v4067_v1, %v1697_v0  ;;  %vm1665_vm1 = vmor %vm1663_vm15, %vm1664_vm14  ;;  %vm1704_vm3 = vweird.f32 %v4067_v1 }
 0xc7d   :  { %v1660_v16 = vsub.f32 1.0, %v1659_v17  ;;  %vm1705_vm5 = vmor %vm1703_vm4, %vm1704_vm3 }
 0xc7e   :  { %v1700_v53 = vsub.f32 1.0, %v1699_v19 }
 0xc7f   :  { %v1661_v18 = vmul.f32 %v4065_v62, %v1660_v16 }
 0xc80   :  { %v1701_v25 = vmul.f32 %v4067_v1, %v1700_v53 }
 0xc81   :  { %v1662_v20 = vadd.f32 %v4065_v62, %v1661_v18 }
 0xc82   :  { %v1702_v30 = vadd.f32 %v4067_v1, %v1701_v25 }
 0xc83   :  { %v1666_v23 = vsel %vm1665_vm1, %v4065_v62, %v1662_v20 }
 0xc84   :  { %v1671_v27 = vsel %vm1668_vm2, %v1670_v24, %v1666_v23  ;;  %v1706_v33 = vsel %vm1705_vm5, %v4067_v1, %v1702_v30 }
 0xc85   :  { %v1711_v37 = vsel %vm1708_vm6, %v1710_v34, %v1706_v33  ;;  %v1677_v41 = vmul.f32 %v1675_v40, %v1671_v27 }
 0xc86   :  { %v1717_v54 = vmul.f32 %v1715_v46, %v1711_v37 }
 0xcca   :  { %v1680_v26 = vpop.permute.xlu2 %1679 }
 0xccb   :  { %v1682_v28 = vmul.f32 %v1680_v26, %v1671_v27 }
 0xccd   :  { %1684 = vrot.lane.b32.xlu0 %v1682_v28, %s4287_s21 }
 0xcd4   :  { %v1720_v36 = vpop.permute.xlu0 %1719 }
 0xcd5   :  { %v1722_v38 = vmul.f32 %v1720_v36, %v1711_v37 }
 0xcd7   :  { %1724 = vrot.lane.b32.xlu1 %v1722_v38, %s4287_s21 }
 0xd3f   :  { %v1685_v42 = vpop.permute.xlu0 %1684 }
 0xd40   :  { %v4684_v44 = vadd.f32 %v1685_v42, %v1677_v41 }
 0xd42   :  { %4068 = vtanh.f32 %v4684_v44 }
 0xd48   :  { %v4069_v50 = vpop.eup %4068 }
 0xd49   :  { %v1725_v55 = vpop.permute.xlu1 %1724  ;;  %1690 = vrot.lane.b32.xlu0 %v4069_v50, %s4287_s21 }
 0xd4a   :  { %v4689_v39 = vadd.f32 %v1725_v55, %v1717_v54  ;;  %v1825_v55 = vrot.slane %v4684_v44, 6 }
 0xd4c   :  { %4070 = vtanh.f32 %v4689_v39  ;;  %v1865_v41 = vrot.slane %v4689_v39, 2 }
 0xd52   :  { %v4071_v51 = vpop.eup %4070 }
 0xd53   :  { %1730 = vrot.lane.b32.xlu1 %v4071_v51, %s4287_s21 }
 0xdbb   :  { %v1691_v57 = vpop.permute.xlu0 %1690 }
 0xdbc   :  { %v4693_v3 = vmul.f32 %v1691_v57, %v1671_v27 }
 0xdbe   :  { %v1746_v4 = vrot.slane %v4693_v3, 2 }
 0xdc0   :  { %1747 = vrot.lane.b32.xlu1 %v1746_v4, %s4288_s4 }
 0xdc5   :  { %v1731_v45 = vpop.permute.xlu1 %1730 }
 0xdc6   :  { %v4697_v56 = vmul.f32 %v1731_v45, %v1711_v37 }
 0xdc8   :  { %v1775_v2 = vrot.slane %v4697_v56, 4 }
 0xdca   :  { %1776 = vrot.lane.b32.xlu2 %v1775_v2, %s4288_s4 }
 0xe24   :  { %v1777_v7 = vpop.permute.xlu2 %1776 }
 0xe25   :  { %3818 = vmatmul.msk.f32.vlgmr.msra.gmra.mxu1 %vm861_vm0, %v1777_v7 }
 0xe32   :  { %v1748_v43 = vpop.permute.xlu1 %1747 }
 0xe33   :  { %3817 = vmatmul.msk.f32.vlgmr.msra.gmra.mxu0 %vm861_vm0, %v1748_v43 }
 0xea2   :  { %v1797_v47 = vpop.f32.mrf.mxu1 }
 0xea3   :  { %v1801_v9 = vrot.slane %v1797_v47, 6 }
 0xea5   :  { %v1803_v11 = vadd.f32 %v1801_v9, %v4525_v49 }
 0xea7   :  { %4072 = vtanh.f32 %v1803_v11  ;;  %v3820_v35 = vmul.f32 -1.442695, %v1803_v11 }
 0xead   :  { %v4073_v12 = vpop.eup %4072 }
 0xeae   :  { %1869 = vrot.lane.b32.xlu2 %v4073_v12, %s4287_s21 }
 0xeb0   :  { %v1768_v13 = vpop.f32.mrf.mxu0 }
 0xeb1   :  { %v1772_v61 = vrot.slane %v1768_v13, 4 }
 0xeb3   :  { %v1774_v63 = vadd.f32 %v1772_v61, %v4523_v29 }
 0xeb5   :  { %4074 = vtanh.f32 %v1774_v63  ;;  %v3819_v16 = vmul.f32 -1.442695, %v1774_v63 }
 0xeb6   :  { %4076 = vpow2.f32 %v3820_v35 }
 0xebb   :  { %v4075_v10 = vpop.eup %4074 }
 0xebc   :  { %1829 = vrot.lane.b32.xlu1 %v4075_v10, %s4287_s21  ;;  %v4077_v14 = vpop.eup %4076 }
 0xebd   :  { %v1847_v15 = vadd.f32 1.0, %v4077_v14 }
 0xebf   :  { %4078 = vrcp.f32 %v1847_v15  ;;  %v1859_v18 = vand.u32 2147483648, %v1847_v15  ;;  %vm1853_vm8 = vweird.f32 %v1847_v15  ;;  %v1857_v19 = vand.u32 2147483647, %v1847_v15 }
 0xec0   :  { %4080 = vpow2.f32 %v3819_v16 }
 0xec1   :  { %v1860_v21 = vor.u32 1.1754944e-38, %v1859_v18  ;;  %vm1858_vm11 = vcmp.eq.f32.partialorder %v1857_v19, 8.507059e+37 }
 0xec5   :  { %v4079_v60 = vpop.eup %4078 }
 0xec6   :  { %v1849_v62 = vmul.f32 %v4079_v60, %v1847_v15  ;;  %vm1854_vm7 = vweird.f32 %v4079_v60  ;;  %v4081_v24 = vpop.eup %4080 }
 0xec7   :  { %vm1855_vm10 = vmor %vm1853_vm8, %vm1854_vm7  ;;  %v1807_v25 = vadd.f32 1.0, %v4081_v24  ;;  %vm1149_vm8 = vcmask 257026  }
 0xec8   :  { %v1850_v0 = vsub.f32 1.0, %v1849_v62 }
 0xec9   :  { %4082 = vrcp.f32 %v1807_v25  ;;  %v1819_v32 = vand.u32 2147483648, %v1807_v25  ;;  %vm1813_vm13 = vweird.f32 %v1807_v25  ;;  %v1817_v33 = vand.u32 2147483647, %v1807_v25 }
 0xeca   :  { %v1851_v17 = vmul.f32 %v4079_v60, %v1850_v0 }
 0xecb   :  { %v1820_v36 = vor.u32 1.1754944e-38, %v1819_v32  ;;  %vm1818_vm15 = vcmp.eq.f32.partialorder %v1817_v33, 8.507059e+37 }
 0xecc   :  { %v1852_v1 = vadd.f32 %v4079_v60, %v1851_v17 }
 0xece   :  { %v1856_v20 = vsel %vm1855_vm10, %v4079_v60, %v1852_v1 }
 0xecf   :  { %v1861_v53 = vsel %vm1858_vm11, %v1860_v21, %v1856_v20  ;;  %v4083_v26 = vpop.eup %4082  ;;  %vm1156_vm11 = vcmask 259076  }
 0xed0   :  { %v1809_v27 = vmul.f32 %v4083_v26, %v1807_v25  ;;  %vm1814_vm12 = vweird.f32 %v4083_v26  ;;  %v1867_v42 = vmul.f32 %v1865_v41, %v1861_v53 }
 0xed1   :  { %vm1815_vm14 = vmor %vm1813_vm13, %vm1814_vm12  ;;  %vm1007_vm12 = vcmask 261126   ;;  %vm2116_vm13 = vcmask 1041408  }
 0xed2   :  { %v1810_v28 = vsub.f32 1.0, %v1809_v27 }
 0xed4   :  { %v1811_v30 = vmul.f32 %v4083_v26, %v1810_v28 }
 0xed6   :  { %v1812_v31 = vadd.f32 %v4083_v26, %v1811_v30 }
 0xed8   :  { %v1816_v34 = vsel %vm1815_vm14, %v4083_v26, %v1812_v31  ;;  %vm2120_vm14 = vcmask 1045504  }
 0xed9   :  { %v1821_v38 = vsel %vm1818_vm15, %v1820_v36, %v1816_v34  ;;  %vm2147_vm15 = vcmask 523264  }
 0xeda   :  { %v1827_v51 = vmul.f32 %v1825_v55, %v1821_v38 }
 0xf08   :  { %v1870_v22 = vpop.permute.xlu2 %1869 }
 0xf09   :  { %v1872_v23 = vmul.f32 %v1870_v22, %v1861_v53 }
 0xf0b   :  { %1874 = vrot.lane.b32.xlu0 %v1872_v23, %s4287_s21 }
 0xf2e   :  { %v1830_v37 = vpop.permute.xlu1 %1829 }
 0xf2f   :  { %v1832_v40 = vmul.f32 %v1830_v37, %v1821_v38 }
 0xf31   :  { %1834 = vrot.lane.b32.xlu2 %v1832_v40, %s4287_s21 }
 0xf7d   :  { %v1875_v46 = vpop.permute.xlu0 %1874 }
 0xf7e   :  { %v4710_v50 = vadd.f32 %v1875_v46, %v1867_v42 }
 0xf80   :  { %4084 = vtanh.f32 %v4710_v50  ;;  %v2012_v42 = vrot.slane %v4710_v50, 2 }
 0xf86   :  { %v4085_v54 = vpop.eup %4084 }
 0xf87   :  { %1880 = vrot.lane.b32.xlu0 %v4085_v54, %s4287_s21 }
 0xf8b   :  { %v1835_v57 = vpop.permute.xlu2 %1834 }
 0xf8c   :  { %v4715_v4 = vadd.f32 %v1835_v57, %v1827_v51 }
 0xf8e   :  { %4086 = vtanh.f32 %v4715_v4 }
 0xf94   :  { %v4087_v45 = vpop.eup %4086 }
 0xf95   :  { %1840 = vrot.lane.b32.xlu2 %v4087_v45, %s4287_s21 }
 0xfef   :  { %v1841_v39 = vpop.permute.xlu2 %1840 }
 0xff0   :  { %v4719_v2 = vmul.f32 %v1841_v39, %v1821_v38 }
 0xff2   :  { %v1896_v7 = vrot.slane %v4719_v2, 4 }
 0xff4   :  { %1897 = vrot.lane.b32.xlu0 %v1896_v7, %s4288_s4 }
 0xff9   :  { %v1881_v43 = vpop.permute.xlu0 %1880 }
 0xffa   :  { %v1883_v47 = vmul.f32 %v1881_v43, %v1861_v53 }
 0xffc   :  { %v1925_v9 = vrot.slane %v1883_v47, 2 }
 0xffe   :  { %1926 = vrot.lane.b32.xlu1 %v1925_v9, %s4288_s4 }
0x1066   :  { %v1898_v44 = vpop.permute.xlu0 %1897 }
0x1067   :  { %3821 = vmatmul.msk.f32.vlgmr.msrb.gmra.mxu2 %vm861_vm0, %v1898_v44  ;;  %v2071_v44 = vld [vmem:[#allocation3 + $0x8] sm:$0x3] }
0x1070   :  { %v1927_v11 = vpop.permute.xlu1 %1926 }
0x1071   :  { %3822 = vmatmul.msk.f32.vlgmr.msrb.gmra.mxu3 %vm861_vm0, %v1927_v11 }
0x10ea   :  { %v1918_v12 = vpop.f32.mrf.mxu2 }
0x10eb   :  { %v1922_v13 = vrot.slane %v1918_v12, 2 }
0x10ed   :  { %v1924_v61 = vadd.f32 %v1922_v13, %v4523_v29 }
0x10ef   :  { %4088 = vtanh.f32 %v1924_v61  ;;  %v3823_v15 = vmul.f32 -1.442695, %v1924_v61 }
0x10f4   :  { %v1947_v63 = vpop.f32.mrf.mxu3 }
0x10f5   :  { %v4089_v10 = vpop.eup %4088  ;;  %v1950_v35 = vadd.f32 %v1947_v63, %v4525_v49 }
0x10f6   :  { %1976 = vrot.lane.b32.xlu0 %v4089_v10, %s4287_s21 }
0x10f7   :  { %4090 = vtanh.f32 %v1950_v35  ;;  %v3824_v60 = vmul.f32 -1.442695, %v1950_v35 }
0x10f8   :  { %4092 = vpow2.f32 %v3823_v15  ;;  %v2139_v15 = vld [vmem:[%s5184_s7 + $0x70] sm:$0xff] }
0x10f9   :  { %4094 = vpow2.f32 %v3824_v60  ;;  %v2140_v60 = vld [vmem:[%s5184_s7 + $0x78] sm:$0xff]  ;;  %2162 = vmatpush.msrb.mxu0 %v2139_v15 }
0x10fa   :  { %2185 = vmatpush.msrb.mxu1 %v2140_v60  ;;  %v4949_v60 = vld [vmem:[%s5185_s8] sm:$0x3] }
0x10fd   :  { %v4091_v14 = vpop.eup %4090 }
0x10fe   :  { %2016 = vrot.lane.b32.xlu1 %v4091_v14, %s4287_s21  ;;  %1891 = vrot.lane.b32.xlu0 %v1883_v47, %s4288_s4  ;;  %v4093_v62 = vpop.eup %4092 }
0x10ff   :  { %v1954_v0 = vadd.f32 1.0, %v4093_v62  ;;  %v4095_v29 = vpop.eup %4094  ;;  %v2137_v62 = vld [vmem:[%s5184_s7 + $0x60] sm:$0xff] }
0x1100   :  { %v1994_v17 = vadd.f32 1.0, %v4095_v29  ;;  %v2135_v29 = vld [vmem:[%s5184_s7 + $0x50] sm:$0xff]  ;;  %2163 = vmatpush.msrb.mxu0 %v2137_v62  ;;  %v2143_v62 = vperm.slane %v4949_v60, 0 }
0x1101   :  { %4096 = vrcp.f32 %v1954_v0  ;;  %v1966_v53 = vand.u32 2147483648, %v1954_v0  ;;  %vm1960_vm2 = vweird.f32 %v1954_v0  ;;  %v1964_v23 = vand.u32 2147483647, %v1954_v0 }
0x1102   :  { %4098 = vrcp.f32 %v1994_v17  ;;  %v2006_v32 = vand.u32 2147483648, %v1994_v17  ;;  %vm2000_vm6 = vweird.f32 %v1994_v17  ;;  %v2004_v33 = vand.u32 2147483647, %v1994_v17  ;;  %2164 = vmatpush.msrb.mxu0 %v2135_v29 }
0x1103   :  { %v1967_v26 = vor.u32 1.1754944e-38, %v1966_v53  ;;  %vm1965_vm4 = vcmp.eq.f32.partialorder %v1964_v23, 8.507059e+37  ;;  %v2132_v53 = vld [vmem:[%s5184_s7 + $0x38] sm:$0xff]  ;;  %v4842_v23 = vld [vmem:[%s5186_s9] sm:$0xff] }
0x1104   :  { %v2007_v36 = vor.u32 1.1754944e-38, %v2006_v32  ;;  %vm2005_vm10 = vcmp.eq.f32.partialorder %v2004_v33, 8.507059e+37  ;;  %v2125_v32 = vld [vmem:[%s5184_s7] sm:$0xff]  ;;  %v2126_v33 = vld [vmem:[%s5184_s7 + $0x8] sm:$0xff] }
0x1107   :  { %v4097_v16 = vpop.eup %4096 }
0x1108   :  { %v1956_v49 = vmul.f32 %v4097_v16, %v1954_v0  ;;  %v4099_v18 = vpop.eup %4098  ;;  %vm1961_vm1 = vweird.f32 %v4097_v16  ;;  %v2138_v0 = vld [vmem:[%s5184_s7 + $0x68] sm:$0xff] }
0x1109   :  { %v1996_v20 = vmul.f32 %v4099_v18, %v1994_v17  ;;  %vm1962_vm3 = vmor %vm1960_vm2, %vm1961_vm1  ;;  %vm2001_vm5 = vweird.f32 %v4099_v18  ;;  %v2136_v17 = vld [vmem:[%s5184_s7 + $0x58] sm:$0xff]  ;;  %2186 = vmatpush.msrb.mxu1 %v2138_v0  ;;  %v2144_v0 = vperm.slane %v4949_v60, 1 }
0x110a   :  { %v1957_v1 = vsub.f32 1.0, %v1956_v49  ;;  %vm2002_vm7 = vmor %vm2000_vm6, %vm2001_vm5  ;;  %v4810_v49 = vld [vmem:[%s5186_s9 + $0x10] sm:$0xff] }
0x110b   :  { %v1997_v22 = vsub.f32 1.0, %v1996_v20  ;;  %2187 = vmatpush.msrb.mxu1 %v2136_v17  ;;  %v4827_v20 = vld [vmem:[%s5187_s10 + $0x18] sm:$0xff] }
0x110c   :  { %v1958_v19 = vmul.f32 %v4097_v16, %v1957_v1  ;;  %v2133_v1 = vld [vmem:[%s5184_s7 + $0x40] sm:$0xff]  ;;  %2255 = vmatpush.msra.mxu3 %v4827_v20 }
0x110d   :  { %v1998_v25 = vmul.f32 %v4099_v18, %v1997_v22  ;;  %v2131_v22 = vld [vmem:[%s5184_s7 + $0x30] sm:$0xff]  ;;  %2165 = vmatpush.msrb.mxu0 %v2133_v1 }
0x110e   :  { %v1959_v21 = vadd.f32 %v4097_v16, %v1958_v19  ;;  %v4822_v19 = vld [vmem:[%s5186_s9 + $0x8] sm:$0xff] }
0x110f   :  { %v1999_v31 = vadd.f32 %v4099_v18, %v1998_v25  ;;  %v2130_v25 = vld [vmem:[%s5184_s7 + $0x28] sm:$0xff]  ;;  %2166 = vmatpush.msrb.mxu0 %v2131_v22 }
0x1110   :  { %v1963_v24 = vsel %vm1962_vm3, %v4097_v16, %v1959_v21  ;;  %v4805_v16 = vld [vmem:[%s5186_s9 + $0x18] sm:$0xff] }
0x1111   :  { %v4731_v28 = vsel %vm1965_vm4, %v1967_v26, %v1963_v24  ;;  %v2003_v34 = vsel %vm2002_vm7, %v4099_v18, %v1999_v31  ;;  %2231 = vmatpush.msra.mxu2 %v4805_v16  ;;  %v2134_v18 = vld [vmem:[%s5184_s7 + $0x48] sm:$0xff]  ;;  %v2129_v24 = vld [vmem:[%s5184_s7 + $0x20] sm:$0xff]  ;;  %v4870_v31 = vld [vmem:[%s5187_s10 + $0x10] sm:$0xff] }
0x1112   :  { %v2008_v38 = vsel %vm2005_vm10, %v2007_v36, %v2003_v34  ;;  %2188 = vmatpush.msrb.mxu1 %v2134_v18  ;;  %2167 = vmatpush.msrb.mxu0 %v2129_v24  ;;  %v4881_v34 = vld [vmem:[%s5187_s10 + $0x8] sm:$0xff]  ;;  %v4888_v36 = vld [vmem:[%s5187_s10] sm:$0xff]  ;;  %s3373_s10 = sshll.u32 %s5190_s13, 4  ;;  %s3374_s10 = int_to_ptr.hbm [resolvable:$true] %s3373_s10 }
0x1113   :  { %v2014_v46 = vmul.f32 %v2012_v42, %v2008_v38  ;;  %2232 = vmatpush.msra.mxu2 %v4810_v49  ;;  %2256 = vmatpush.msra.mxu3 %v4870_v31 }
0x1114   :  { %2189 = vmatpush.msrb.mxu1 %v2132_v53 }
0x1115   :  { %2233 = vmatpush.msra.mxu2 %v4822_v19  ;;  %2257 = vmatpush.msra.mxu3 %v4881_v34 }
0x1116   :  { %2190 = vmatpush.msrb.mxu1 %v2130_v25 }
0x1117   :  { %2234 = vmatpush.msra.mxu2 %v4842_v23  ;;  %2258 = vmatpush.msra.mxu3 %v4888_v36 }
0x1119   :  { %2367 = vmatpush.msrb.mxu2 %v4805_v16  ;;  %2397 = vmatpush.msrb.mxu3 %v4827_v20 }
0x111b   :  { %2368 = vmatpush.msrb.mxu2 %v4810_v49  ;;  %2398 = vmatpush.msrb.mxu3 %v4870_v31 }
0x111d   :  { %2369 = vmatpush.msrb.mxu2 %v4822_v19  ;;  %2399 = vmatpush.msrb.mxu3 %v4881_v34 }
0x111f   :  { %2370 = vmatpush.msrb.mxu2 %v4842_v23  ;;  %2400 = vmatpush.msrb.mxu3 %v4888_v36 }
0x1168   :  { %v1977_v27 = vpop.permute.xlu0 %1976 }
0x1169   :  { %v1979_v30 = vmul.f32 %v1977_v27, %v4731_v28  ;;  %v3829_v27 = vld [vmem:[%s5178_s1 + $0x4] sm:$0x3] }
0x116a   :  { %3833 = vmatmul.msk.f32.vlgmr.msra.gmra.mxu2 %vm861_vm0, %v3829_v27 }
0x116b   :  { %1981 = vrot.lane.b32.xlu1 %v1979_v30, %s4287_s21  ;;  %v2128_v30 = vld [vmem:[%s5184_s7 + $0x18] sm:$0xff]  ;;  %2507 = vmatpush.msra.mxu2 %v4805_v16 }
0x116c   :  { %2191 = vmatpush.msrb.mxu1 %v2128_v30 }
0x116d   :  { %2508 = vmatpush.msra.mxu2 %v4810_v49 }
0x116e   :  { %2192 = vmatpush.msrb.mxu1 %v2126_v33 }
0x116f   :  { %2509 = vmatpush.msra.mxu2 %v4822_v19 }
0x1170   :  { %v2017_v37 = vpop.permute.xlu1 %2016  ;;  %v1892_v40 = vpop.permute.xlu0 %1891  ;;  %2677 = vmatpush.msra.mxu1 %v4827_v20 }
0x1171   :  { %v2019_v41 = vmul.f32 %v2017_v37, %v2008_v38  ;;  %1895 = vst.msk [vmem:[#allocation3] sm:$0xc] %vm1149_vm8, %v1892_v40  ;;  %v3831_v37 = vld [vmem:[%s5178_s1 + $0x6] sm:$0x3]  ;;  %2510 = vmatpush.msra.mxu2 %v4842_v23 }
0x1172   :  { %3834 = vmatmul.msk.f32.vlgmr.msra.gmra.mxu3 %vm861_vm0, %v3831_v37  ;;  %2678 = vmatpush.msra.mxu1 %v4870_v31 }
0x1173   :  { %2021 = vrot.lane.b32.xlu2 %v2019_v41, %s4287_s21  ;;  %1741 = vrot.lane.b32.xlu1 %v4697_v56, %s4288_s4 }
0x1174   :  { %2679 = vmatpush.msra.mxu1 %v4881_v34  ;;  %2537 = vmatpush.msra.mxu3 %v4827_v20 }
0x1176   :  { %2680 = vmatpush.msra.mxu1 %v4888_v36  ;;  %2538 = vmatpush.msra.mxu3 %v4870_v31 }
0x1178   :  { %v2050_v11 = vld [vmem:[#allocation3 + $0x2] sm:$0x3]  ;;  %2539 = vmatpush.msra.mxu3 %v4881_v34 }
0x117a   :  { %2540 = vmatpush.msra.mxu3 %v4888_v36 }
0x117b   :  { %1303 = vrot.lane.b32.xlu1 %v4615_v8, %s4288_s4  ;;  %v1972_v8 = vrot.slane %v4715_v4, 6 }
0x117d   :  { %v1974_v56 = vmul.f32 %v1972_v8, %v4731_v28 }
0x1183   :  { %1003 = vrot.lane.b32.xlu1 %v4545_v52, %s4288_s4 }
0x118b   :  { %1444 = vrot.lane.b32.xlu1 %v4645_v5, %s4288_s4 }
0x1193   :  { %1885 = vrot.lane.b32.xlu1 %v4719_v2, %s4288_s4 }
0x11cd   :  { %v2022_v54 = vpop.permute.xlu2 %2021 }
0x11ce   :  { %v2024_v55 = vadd.f32 %v2022_v54, %v2014_v46 }
0x11d0   :  { %4100 = vtanh.f32 %v2024_v55 }
0x11d6   :  { %v4101_v51 = vpop.eup %4100 }
0x11d7   :  { %2027 = vrot.lane.b32.xlu2 %v4101_v51, %s4287_s21 }
0x11dd   :  { %v1982_v52 = vpop.permute.xlu1 %1981 }
0x11de   :  { %v1984_v57 = vadd.f32 %v1982_v52, %v1974_v56 }
0x11df   :  { %1594 = vrot.lane.b32.xlu2 %v4669_v48, %s4288_s4 }
0x11e0   :  { %4102 = vtanh.f32 %v1984_v57 }
0x11e5   :  { %v1742_v5 = vpop.permute.xlu1 %1741 }
0x11e6   :  { %v4103_v50 = vpop.eup %4102  ;;  %1745 = vst.msk [vmem:[#allocation3] sm:$0x30] %vm1156_vm11, %v1742_v5  ;;  %v2042_v5 = vld [vmem:[#allocation2] sm:$0x3] }
0x11e7   :  { %1987 = vrot.lane.b32.xlu2 %v4103_v50, %s4287_s21 }
0x11ed   :  { %v1304_v45 = vpop.permute.xlu1 %1303  ;;  %v2057_v39 = vld [vmem:[#allocation3 + $0x4] sm:$0x3]  ;;  %v2236_v29 = vpop.f32.mrf.mxu2 }
0x11ee   :  { %1307 = vst.msk [vmem:[#allocation3 + $0x8] sm:$0xc] %vm1149_vm8, %v1304_v45 }
0x11ef   :  { %1145 = vrot.lane.b32.xlu2 %v4581_v59, %s4288_s4 }
0x11f5   :  { %v1004_v4 = vpop.permute.xlu1 %1003  ;;  %v2260_v53 = vpop.f32.mrf.mxu3 }
0x11f6   :  { %1008 = vst.msk [vmem:[#allocation3 + $0x8] sm:$0xc0] %vm1007_vm12, %v1004_v4  ;;  %v2264_v24 = vrot.slane %v2260_v53, 2 }
0x11f7   :  { %1735 = vrot.lane.b32.xlu2 %v4693_v3, %s4288_s4 }
0x11fd   :  { %v1445_v48 = vpop.permute.xlu1 %1444 }
0x11fe   :  { %1448 = vst.msk [vmem:[#allocation2] sm:$0xc0] %vm1007_vm12, %v1445_v48 }
0x11ff   :  { %2059 = vrot.lane.b32.xlu2 %v2057_v39, %s4287_s21 }
0x1205   :  { %v1886_v2 = vpop.permute.xlu1 %1885  ;;  %v2063_v8 = vld [vmem:[#allocation2 + $0x6] sm:$0x3] }
0x1206   :  { %1889 = vst.msk [vmem:[#allocation2 + $0x8] sm:$0x30] %vm1156_vm11, %v1886_v2 }
0x1231   :  { %v2028_v7 = vpop.permute.xlu2 %2027 }
0x1232   :  { %v2030_v43 = vmul.f32 %v2028_v7, %v2008_v38  ;;  %v3832_v38 = vld [vmem:[%s5179_s2 + $0x6] sm:$0x3] }
0x1233   :  { %v2329_v40 = vrot.slane %v3832_v38, 2 }
0x1234   :  { %2038 = vrot.lane.b32.xlu0 %v2030_v43, %s4288_s4 }
0x1239   :  { %v1595_v59 = vpop.permute.xlu2 %1594 }
0x123a   :  { %1598 = vst.msk [vmem:[#allocation3] sm:$0xc0] %vm1007_vm12, %v1595_v59 }
0x123c   :  { %1152 = vrot.lane.b32.xlu0 %v4577_v58, %s4288_s4  ;;  %v2078_v58 = vld [vmem:[#allocation3 + $0xa] sm:$0x3] }
0x1241   :  { %v1988_v3 = vpop.permute.xlu2 %1987  ;;  %v2064_v47 = vld [vmem:[#allocation3 + $0x6] sm:$0x3] }
0x1242   :  { %2066 = vrot.lane.b32.xlu2 %v2064_v47, %s4287_s21  ;;  %v1990_v13 = vmul.f32 %v1988_v3, %v4731_v28  ;;  %v2127_v28 = vld [vmem:[%s5184_s7 + $0x10] sm:$0xff] }
0x1243   :  { %2168 = vmatpush.msrb.mxu0 %v2127_v28 }
0x1244   :  { %1297 = vrot.lane.b32.xlu0 %v4611_v6, %s4288_s4  ;;  %v2092_v6 = vld [vmem:[#allocation3 + $0xe] sm:$0x3] }
0x1245   :  { %2169 = vmatpush.msrb.mxu0 %v2125_v32  ;;  %v3830_v32 = vld [vmem:[%s5179_s2 + $0x4] sm:$0x3]  ;;  %s4289_s2 = smov 96  }
0x1247   :  { %2647 = vmatpush.msra.mxu0 %v4805_v16 }
0x1249   :  { %v1146_v9 = vpop.permute.xlu2 %1145  ;;  %2648 = vmatpush.msra.mxu0 %v4810_v49 }
0x124a   :  { %1150 = vst.msk [vmem:[#allocation2] sm:$0xc] %vm1149_vm8, %v1146_v9  ;;  %2073 = vrot.lane.b32.xlu2 %v2071_v44, %s4287_s21 }
0x124b   :  { %2649 = vmatpush.msra.mxu0 %v4822_v19 }
0x124c   :  { %2052 = vrot.lane.b32.xlu0 %v2050_v11, %s4287_s21 }
0x124d   :  { %2650 = vmatpush.msra.mxu0 %v4842_v23 }
0x1251   :  { %v1736_v12 = vpop.permute.xlu2 %1735  ;;  %v2049_v55 = vld [vmem:[#allocation2 + $0x2] sm:$0x3] }
0x1252   :  { %1739 = vst.msk [vmem:[#allocation2 + $0x8] sm:$0xc] %vm1149_vm8, %v1736_v12  ;;  %v2084_v12 = vld [vmem:[#allocation2 + $0xc] sm:$0x3] }
0x1254   :  { %2032 = vrot.lane.b32.xlu0 %v1990_v13, %s4288_s4 }
0x1259   :  { %v2060_v41 = vpop.permute.xlu2 %2059  ;;  %v2077_v2 = vld [vmem:[#allocation2 + $0xa] sm:$0x3] }
0x125c   :  { %2080 = vrot.lane.b32.xlu0 %v2078_v58, %s4287_s21  ;;  %v2070_v58 = vld [vmem:[#allocation2 + $0x8] sm:$0x3] }
0x1264   :  { %2094 = vrot.lane.b32.xlu0 %v2092_v6, %s4287_s21 }
0x126c   :  { %2330 = vrot.lane.b32.xlu0 %v2329_v40, %s4287_s21 }
0x129c   :  { %v2067_v54 = vpop.permute.xlu2 %2066 }
0x129d   :  { %v2069_v52 = vsel %vm861_vm0, %v2063_v8, %v2067_v54 }
0x129e   :  { %v2105_v48 = vrot.slane %v2069_v52, 2 }
0x12a4   :  { %v2074_v47 = vpop.permute.xlu2 %2073 }
0x12a6   :  { %v2039_v61 = vpop.permute.xlu0 %2038 }
0x12a7   :  { %2041 = vst.msk [vmem:[#allocation3] sm:$0x3] %vm1000_vm9, %v2039_v61  ;;  %vm2118_vm9 = vcmask 1043456   ;;  %v2076_v61 = vsel %vm861_vm0, %v2070_v58, %v2074_v47 }
0x12ae   :  { %v1153_v63 = vpop.permute.xlu0 %1152  ;;  %v2043_v10 = vld [vmem:[#allocation3] sm:$0x3] }
0x12af   :  { %1157 = vst.msk [vmem:[#allocation3 + $0x8] sm:$0x30] %vm1156_vm11, %v1153_v63  ;;  %2045 = vrot.lane.b32.xlu1 %v2043_v10, %s4287_s21 }
0x12b6   :  { %v1298_v35 = vpop.permute.xlu0 %1297  ;;  %v2085_v14 = vld [vmem:[#allocation3 + $0xc] sm:$0x3] }
0x12b7   :  { %1301 = vst.msk [vmem:[#allocation2] sm:$0x30] %vm1156_vm11, %v1298_v35  ;;  %2087 = vrot.lane.b32.xlu1 %v2085_v14, %s4287_s21 }
0x12be   :  { %v4829_v21 = vpop.permute.xlu0 %2052  ;;  %v2056_v46 = vld [vmem:[#allocation2 + $0x4] sm:$0x3] }
0x12bf   :  { %v2055_v51 = vsel %vm861_vm0, %v2049_v55, %v4829_v21  ;;  %v2062_v56 = vsel %vm861_vm0, %v2056_v46, %v2060_v41 }
0x12c0   :  { %v2099_v57 = vrot.slane %v2055_v51, 6  ;;  %v2102_v4 = vrot.slane %v2062_v56, 4 }
0x12c6   :  { %v2033_v26 = vpop.permute.xlu0 %2032 }
0x12c7   :  { %2036 = vst.msk [vmem:[#allocation2 + $0x8] sm:$0xc0] %vm1007_vm12, %v2033_v26 }
0x12ce   :  { %v2081_v42 = vpop.permute.xlu0 %2080  ;;  %v2091_v44 = vld [vmem:[#allocation2 + $0xe] sm:$0x3] }
0x12cf   :  { %v2083_v43 = vsel %vm861_vm0, %v2077_v2, %v2081_v42 }
0x12d0   :  { %v2108_v9 = vrot.slane %v2083_v43, 6 }
0x12d2   :  { %v2122_v35 = vsel %vm2116_vm13, %v2076_v61, %v2108_v9 }
0x12d6   :  { %v2095_v3 = vpop.permute.xlu0 %2094 }
0x12d7   :  { %v2097_v11 = vsel %vm861_vm0, %v2091_v44, %v2095_v3 }
0x12d8   :  { %v2114_v10 = vrot.slane %v2097_v11, 2 }
0x1321   :  { %v2046_v50 = vpop.permute.xlu1 %2045 }
0x1322   :  { %v2048_v45 = vsel %vm861_vm0, %v2042_v5, %v2046_v50 }
0x1323   :  { %v2117_v39 = vsel %vm2116_vm13, %v2048_v45, %v2099_v57 }
0x1324   :  { %v2119_v7 = vsel %vm2118_vm9, %v2117_v39, %v2102_v4 }
0x1325   :  { %v2121_v59 = vsel %vm2120_vm14, %v2119_v7, %v2105_v48 }
0x1326   :  { %3825 = vmatmul.msk.f32.vlgmr.msrb.gmra.mxu0 %vm2147_vm15, %v2121_v59  ;;  %3827 = vmatmul.msk.f32.vlgmr.msrb.gmra.mxu1 %vm2147_vm15, %v2121_v59 }
0x1327   :  { %2919 = vmatpush.msrb.mxu0 %v4805_v16  ;;  %2949 = vmatpush.msrb.mxu1 %v4827_v20 }
0x1329   :  { %v2088_v13 = vpop.permute.xlu1 %2087  ;;  %2920 = vmatpush.msrb.mxu0 %v4810_v49  ;;  %2950 = vmatpush.msrb.mxu1 %v4870_v31 }
0x132a   :  { %v2090_v6 = vsel %vm861_vm0, %v2084_v12, %v2088_v13  ;;  %v2331_v13 = vpop.permute.xlu0 %2330 }
0x132b   :  { %v2111_v63 = vrot.slane %v2090_v6, 4  ;;  %2921 = vmatpush.msrb.mxu0 %v4822_v19  ;;  %2951 = vmatpush.msrb.mxu1 %v4881_v34 }
0x132d   :  { %v2123_v14 = vsel %vm2118_vm9, %v2122_v35, %v2111_v63  ;;  %2922 = vmatpush.msrb.mxu0 %v4842_v23  ;;  %2952 = vmatpush.msrb.mxu1 %v4888_v36 }
0x132e   :  { %v2124_v15 = vsel %vm2120_vm14, %v2123_v14, %v2114_v10 }
0x132f   :  { %3826 = vmatmul.msk.f32.gmra.mxu0 %vm2147_vm15, %v2124_v15  ;;  %3828 = vmatmul.msk.f32.gmra.mxu1 %vm2147_vm15, %v2124_v15 }
0x13a3   :  { %v2171_v17 = vpop.f32.mrf.mxu0  ;;  %v2194_v1 = vpop.f32.mrf.mxu1 }
0x13a4   :  { %v4955_v18 = vadd.f32 %v2171_v17, %v2143_v62  ;;  %v4957_v21 = vadd.f32 %v2194_v1, %v2144_v0 }
0x13a6   :  { %v2239_v22 = vadd.f32 %v2236_v29, %v4955_v18 }
0x13a8   :  { %4104 = vtanh.f32 %v2239_v22  ;;  %v3835_v33 = vmul.f32 -1.442695, %v2239_v22 }
0x13ac   :  { %v2197_v25 = vpop.f32.mrf.mxu1 }
0x13ad   :  { %v4960_v26 = vadd.f32 %v2197_v25, %v2144_v0 }
0x13ae   :  { %v4105_v27 = vpop.eup %4104 }
0x13af   :  { %v2266_v28 = vadd.f32 %v2264_v24, %v4960_v26  ;;  %2293 = vrot.lane.b32.xlu2 %v4105_v27, %s4287_s21 }
0x13b1   :  { %4106 = vtanh.f32 %v2266_v28  ;;  %v3836_v46 = vmul.f32 -1.442695, %v2266_v28 }
0x13b2   :  { %4108 = vpow2.f32 %v3835_v33 }
0x13b7   :  { %v4107_v30 = vpop.eup %4106 }
0x13b8   :  { %2335 = vrot.lane.b32.xlu1 %v4107_v30, %s4287_s21  ;;  %v4109_v37 = vpop.eup %4108 }
0x13b9   :  { %v2270_v38 = vadd.f32 1.0, %v4109_v37 }
0x13bb   :  { %4110 = vrcp.f32 %v2270_v38  ;;  %v2282_v51 = vand.u32 2147483648, %v2270_v38  ;;  %vm2276_vm2 = vweird.f32 %v2270_v38  ;;  %v2280_v8 = vand.u32 2147483647, %v2270_v38 }
0x13bc   :  { %4112 = vpow2.f32 %v3836_v46 }
0x13bd   :  { %v2283_v57 = vor.u32 1.1754944e-38, %v2282_v51  ;;  %vm2281_vm4 = vcmp.eq.f32.partialorder %v2280_v8, 8.507059e+37 }
0x13c0   :  { %2288 = vrot.lane.b32.xlu1 %v3830_v32, %s4287_s21 }
0x13c1   :  { %v4111_v40 = vpop.eup %4110 }
0x13c2   :  { %v2272_v41 = vmul.f32 %v4111_v40, %v2270_v38  ;;  %vm2277_vm1 = vweird.f32 %v4111_v40  ;;  %v4113_v52 = vpop.eup %4112 }
0x13c3   :  { %vm2278_vm3 = vmor %vm2276_vm2, %vm2277_vm1  ;;  %v2311_v45 = vadd.f32 1.0, %v4113_v52 }
0x13c4   :  { %v2273_v42 = vsub.f32 1.0, %v2272_v41 }
0x13c5   :  { %4114 = vrcp.f32 %v2311_v45  ;;  %v2323_v59 = vand.u32 2147483648, %v2311_v45  ;;  %vm2317_vm6 = vweird.f32 %v2311_v45  ;;  %v2321_v3 = vand.u32 2147483647, %v2311_v45 }
0x13c6   :  { %v2274_v54 = vmul.f32 %v4111_v40, %v2273_v42 }
0x13c7   :  { %v2324_v9 = vor.u32 1.1754944e-38, %v2323_v59  ;;  %vm2322_vm8 = vcmp.eq.f32.partialorder %v2321_v3, 8.507059e+37 }
0x13c8   :  { %v2275_v55 = vadd.f32 %v4111_v40, %v2274_v54 }
0x13ca   :  { %v2279_v56 = vsel %vm2278_vm3, %v4111_v40, %v2275_v55 }
0x13cb   :  { %v2284_v5 = vsel %vm2281_vm4, %v2283_v57, %v2279_v56  ;;  %v4115_v48 = vpop.eup %4114 }
0x13cc   :  { %v2313_v39 = vmul.f32 %v4115_v48, %v2311_v45  ;;  %vm2318_vm5 = vweird.f32 %v4115_v48 }
0x13cd   :  { %vm2319_vm7 = vmor %vm2317_vm6, %vm2318_vm5 }
0x13ce   :  { %v2314_v2 = vsub.f32 1.0, %v2313_v39 }
0x13d0   :  { %v2315_v7 = vmul.f32 %v4115_v48, %v2314_v2 }
0x13d2   :  { %v2316_v43 = vadd.f32 %v4115_v48, %v2315_v7 }
0x13d4   :  { %v2320_v47 = vsel %vm2319_vm7, %v4115_v48, %v2316_v43 }
0x13d5   :  { %v2325_v44 = vsel %vm2322_vm8, %v2324_v9, %v2320_v47 }
0x13d6   :  { %v2333_v10 = vmul.f32 %v2331_v13, %v2325_v44 }
0x1409   :  { %v2294_v50 = vpop.permute.xlu2 %2293 }
0x140a   :  { %v2296_v4 = vmul.f32 %v2294_v50, %v2284_v5 }
0x140c   :  { %2298 = vrot.lane.b32.xlu0 %v2296_v4, %s4287_s21 }
0x142a   :  { %v2336_v11 = vpop.permute.xlu1 %2335 }
0x142b   :  { %v2338_v12 = vmul.f32 %v2336_v11, %v2325_v44 }
0x142d   :  { %2340 = vrot.lane.b32.xlu2 %v2338_v12, %s4287_s21 }
0x1432   :  { %v2289_v58 = vpop.permute.xlu1 %2288 }
0x1433   :  { %v2291_v6 = vmul.f32 %v2289_v58, %v2284_v5 }
0x147e   :  { %v2299_v61 = vpop.permute.xlu0 %2298 }
0x147f   :  { %v4971_v63 = vadd.f32 %v2299_v61, %v2291_v6 }
0x1481   :  { %4116 = vtanh.f32 %v4971_v63 }
0x1487   :  { %v4117_v35 = vpop.eup %4116  ;;  %v2341_v14 = vpop.permute.xlu2 %2340 }
0x1488   :  { %v4974_v15 = vadd.f32 %v2341_v14, %v2333_v10  ;;  %2304 = vrot.lane.b32.xlu2 %v4117_v35, %s4287_s21  ;;  %v2430_v10 = vrot.slane %v4971_v63, 6 }
0x148a   :  { %4118 = vtanh.f32 %v4974_v15 }
0x1490   :  { %v4119_v0 = vpop.eup %4118 }
0x1491   :  { %2346 = vrot.lane.b32.xlu1 %v4119_v0, %s4287_s21 }
0x14e2   :  { %v2305_v29 = vpop.permute.xlu2 %2304 }
0x14e3   :  { %v2307_v17 = vmul.f32 %v2305_v29, %v2284_v5 }
0x14e5   :  { %2351 = vrot.lane.b32.xlu0 %v2307_v17, %s4288_s4  ;;  %v2470_v17 = vrot.slane %v4974_v15, 2 }
0x1503   :  { %v2347_v1 = vpop.permute.xlu1 %2346 }
0x1504   :  { %v2349_v22 = vmul.f32 %v2347_v1, %v2325_v44 }
0x1506   :  { %v2380_v53 = vrot.slane %v2349_v22, 6 }
0x1508   :  { %2381 = vrot.lane.b32.xlu1 %v2380_v53, %s4288_s4 }
0x1557   :  { %v2352_v24 = vpop.permute.xlu0 %2351 }
0x1558   :  { %3837 = vmatmul.msk.f32.vlgmr.msrb.gmra.mxu2 %vm861_vm0, %v2352_v24 }
0x1559   :  { %2784 = vmatpush.msrb.mxu2 %v4805_v16 }
0x155b   :  { %2785 = vmatpush.msrb.mxu2 %v4810_v49 }
0x155d   :  { %2786 = vmatpush.msrb.mxu2 %v4822_v19 }
0x155f   :  { %2787 = vmatpush.msrb.mxu2 %v4842_v23 }
0x157a   :  { %v2382_v25 = vpop.permute.xlu1 %2381 }
0x157b   :  { %3838 = vmatmul.msk.f32.vlgmr.msrb.gmra.mxu3 %vm861_vm0, %v2382_v25 }
0x157c   :  { %2810 = vmatpush.msrb.mxu3 %v4827_v20 }
0x157e   :  { %2811 = vmatpush.msrb.mxu3 %v4870_v31 }
0x1580   :  { %2812 = vmatpush.msrb.mxu3 %v4881_v34 }
0x1582   :  { %2813 = vmatpush.msrb.mxu3 %v4888_v36 }
0x15db   :  { %v2372_v27 = vpop.f32.mrf.mxu2 }
0x15dc   :  { %v2376_v28 = vrot.slane %v2372_v27, 6 }
0x15de   :  { %v2378_v30 = vadd.f32 %v2376_v28, %v4955_v18 }
0x15e0   :  { %4120 = vtanh.f32 %v2378_v30  ;;  %v3839_v41 = vmul.f32 -1.442695, %v2378_v30 }
0x15e6   :  { %v4121_v32 = vpop.eup %4120 }
0x15e7   :  { %2434 = vrot.lane.b32.xlu2 %v4121_v32, %s4287_s21 }
0x15fe   :  { %v2402_v33 = vpop.f32.mrf.mxu3 }
0x15ff   :  { %v2406_v37 = vrot.slane %v2402_v33, 4 }
0x1601   :  { %v2408_v38 = vadd.f32 %v2406_v37, %v4960_v26 }
0x1603   :  { %4122 = vtanh.f32 %v2408_v38  ;;  %v3840_v39 = vmul.f32 -1.442695, %v2408_v38 }
0x1604   :  { %4124 = vpow2.f32 %v3839_v41 }
0x1609   :  { %v4123_v40 = vpop.eup %4122 }
0x160a   :  { %2474 = vrot.lane.b32.xlu0 %v4123_v40, %s4287_s21  ;;  %v4125_v42 = vpop.eup %4124 }
0x160b   :  { %v2412_v46 = vadd.f32 1.0, %v4125_v42 }
0x160d   :  { %4126 = vrcp.f32 %v2412_v46  ;;  %v2424_v52 = vand.u32 2147483648, %v2412_v46  ;;  %vm2418_vm11 = vweird.f32 %v2412_v46  ;;  %v2422_v57 = vand.u32 2147483647, %v2412_v46 }
0x160e   :  { %4128 = vpow2.f32 %v3840_v39 }
0x160f   :  { %v2425_v50 = vor.u32 1.1754944e-38, %v2424_v52  ;;  %vm2423_vm9 = vcmp.eq.f32.partialorder %v2422_v57, 8.507059e+37 }
0x1613   :  { %v4127_v54 = vpop.eup %4126 }
0x1614   :  { %v2414_v55 = vmul.f32 %v4127_v54, %v2412_v46  ;;  %vm2419_vm10 = vweird.f32 %v4127_v54  ;;  %v4129_v2 = vpop.eup %4128 }
0x1615   :  { %vm2420_vm12 = vmor %vm2418_vm11, %vm2419_vm10  ;;  %v2452_v7 = vadd.f32 1.0, %v4129_v2 }
0x1616   :  { %v2415_v51 = vsub.f32 1.0, %v2414_v55 }
0x1617   :  { %4130 = vrcp.f32 %v2452_v7  ;;  %v2464_v44 = vand.u32 2147483648, %v2452_v7  ;;  %vm2458_vm14 = vweird.f32 %v2452_v7  ;;  %v2462_v11 = vand.u32 2147483647, %v2452_v7 }
0x1618   :  { %v2416_v8 = vmul.f32 %v4127_v54, %v2415_v51 }
0x1619   :  { %v2465_v13 = vor.u32 1.1754944e-38, %v2464_v44  ;;  %vm2463_vm2 = vcmp.eq.f32.partialorder %v2462_v11, 8.507059e+37 }
0x161a   :  { %v2417_v56 = vadd.f32 %v4127_v54, %v2416_v8 }
0x161c   :  { %v2421_v5 = vsel %vm2420_vm12, %v4127_v54, %v2417_v56 }
0x161d   :  { %v2426_v4 = vsel %vm2423_vm9, %v2425_v50, %v2421_v5  ;;  %v4131_v43 = vpop.eup %4130 }
0x161e   :  { %v2454_v59 = vmul.f32 %v4131_v43, %v2452_v7  ;;  %vm2459_vm13 = vweird.f32 %v4131_v43  ;;  %v2432_v35 = vmul.f32 %v2430_v10, %v2426_v4 }
0x161f   :  { %vm2460_vm1 = vmor %vm2458_vm14, %vm2459_vm13 }
0x1620   :  { %v2455_v3 = vsub.f32 1.0, %v2454_v59 }
0x1622   :  { %v2456_v47 = vmul.f32 %v4131_v43, %v2455_v3 }
0x1624   :  { %v2457_v9 = vadd.f32 %v4131_v43, %v2456_v47 }
0x1626   :  { %v2461_v12 = vsel %vm2460_vm1, %v4131_v43, %v2457_v9 }
0x1627   :  { %v2466_v6 = vsel %vm2463_vm2, %v2465_v13, %v2461_v12 }
0x1628   :  { %v2472_v1 = vmul.f32 %v2470_v17, %v2466_v6 }
0x1641   :  { %v2435_v45 = vpop.permute.xlu2 %2434 }
0x1642   :  { %v2437_v48 = vmul.f32 %v2435_v45, %v2426_v4 }
0x1644   :  { %2439 = vrot.lane.b32.xlu1 %v2437_v48, %s4287_s21 }
0x167c   :  { %v2475_v58 = vpop.permute.xlu0 %2474 }
0x167d   :  { %v2477_v61 = vmul.f32 %v2475_v58, %v2466_v6 }
0x167f   :  { %2479 = vrot.lane.b32.xlu2 %v2477_v61, %s4287_s21 }
0x16b6   :  { %v2440_v14 = vpop.permute.xlu1 %2439 }
0x16b7   :  { %v4998_v0 = vadd.f32 %v2440_v14, %v2432_v35 }
0x16b9   :  { %4132 = vtanh.f32 %v4998_v0 }
0x16bf   :  { %v4133_v29 = vpop.eup %4132 }
0x16c0   :  { %2445 = vrot.lane.b32.xlu0 %v4133_v29, %s4287_s21 }
0x16d9   :  { %v2480_v22 = vpop.permute.xlu2 %2479 }
0x16da   :  { %v5003_v53 = vadd.f32 %v2480_v22, %v2472_v1  ;;  %v2570_v1 = vrot.slane %v4998_v0, 6 }
0x16dc   :  { %4134 = vtanh.f32 %v5003_v53 }
0x16e2   :  { %v4135_v24 = vpop.eup %4134 }
0x16e3   :  { %2485 = vrot.lane.b32.xlu1 %v4135_v24, %s4287_s21 }
0x1732   :  { %v2446_v63 = vpop.permute.xlu0 %2445 }
0x1733   :  { %v2448_v25 = vmul.f32 %v2446_v63, %v2426_v4 }
0x1735   :  { %v2490_v27 = vrot.slane %v2448_v25, 2 }
0x1737   :  { %2491 = vrot.lane.b32.xlu2 %v2490_v27, %s4288_s4  ;;  %v2610_v27 = vrot.slane %v5003_v53, 2 }
0x1755   :  { %v2486_v28 = vpop.permute.xlu1 %2485 }
0x1756   :  { %v2488_v30 = vmul.f32 %v2486_v28, %v2466_v6 }
0x1758   :  { %v2520_v32 = vrot.slane %v2488_v30, 4 }
0x175a   :  { %2521 = vrot.lane.b32.xlu0 %v2520_v32, %s4288_s4 }
0x1791   :  { %v2492_v15 = vpop.permute.xlu2 %2491 }
0x1792   :  { %3841 = vmatmul.msk.f32.vlgmr.msra.gmra.mxu2 %vm861_vm0, %v2492_v15 }
0x1793   :  { %3059 = vmatpush.msra.mxu2 %v4805_v16 }
0x1795   :  { %3060 = vmatpush.msra.mxu2 %v4810_v49 }
0x1797   :  { %3061 = vmatpush.msra.mxu2 %v4822_v19 }
0x1799   :  { %3062 = vmatpush.msra.mxu2 %v4842_v23 }
0x17cc   :  { %v2522_v33 = vpop.permute.xlu0 %2521 }
0x17cd   :  { %3842 = vmatmul.msk.f32.vlgmr.msra.gmra.mxu3 %vm861_vm0, %v2522_v33 }
0x17ce   :  { %3089 = vmatpush.msra.mxu3 %v4827_v20 }
0x17d0   :  { %3090 = vmatpush.msra.mxu3 %v4870_v31 }
0x17d2   :  { %3091 = vmatpush.msra.mxu3 %v4881_v34 }
0x17d4   :  { %3092 = vmatpush.msra.mxu3 %v4888_v36 }
0x1815   :  { %v2512_v37 = vpop.f32.mrf.mxu2 }
0x1816   :  { %v2516_v38 = vrot.slane %v2512_v37, 4 }
0x1818   :  { %v2518_v40 = vadd.f32 %v2516_v38, %v4955_v18 }
0x181a   :  { %4136 = vtanh.f32 %v2518_v40  ;;  %v3843_v51 = vmul.f32 -1.442695, %v2518_v40 }
0x1820   :  { %v4137_v41 = vpop.eup %4136 }
0x1821   :  { %2574 = vrot.lane.b32.xlu1 %v4137_v41, %s4287_s21 }
0x1850   :  { %v2542_v42 = vpop.f32.mrf.mxu3 }
0x1851   :  { %v2546_v46 = vrot.slane %v2542_v42, 6 }
0x1853   :  { %v2548_v54 = vadd.f32 %v2546_v46, %v4960_v26  ;;  %v5047_v46 = vpop.f32.mrf.mxu0 }
0x1855   :  { %4138 = vtanh.f32 %v2548_v54  ;;  %v3844_v45 = vmul.f32 -1.442695, %v2548_v54 }
0x1856   :  { %4140 = vpow2.f32 %v3843_v51 }
0x185b   :  { %v4139_v55 = vpop.eup %4138 }
0x185c   :  { %2614 = vrot.lane.b32.xlu2 %v4139_v55, %s4287_s21  ;;  %v4141_v8 = vpop.eup %4140 }
0x185d   :  { %v2552_v56 = vadd.f32 1.0, %v4141_v8 }
0x185f   :  { %4142 = vrcp.f32 %v2552_v56  ;;  %v2564_v48 = vand.u32 2147483648, %v2552_v56  ;;  %vm2558_vm4 = vweird.f32 %v2552_v56  ;;  %v2562_v39 = vand.u32 2147483647, %v2552_v56 }
0x1860   :  { %4144 = vpow2.f32 %v3844_v45 }
0x1861   :  { %v2565_v7 = vor.u32 1.1754944e-38, %v2564_v48  ;;  %vm2563_vm6 = vcmp.eq.f32.partialorder %v2562_v39, 8.507059e+37 }
0x1865   :  { %v4143_v52 = vpop.eup %4142 }
0x1866   :  { %v2554_v57 = vmul.f32 %v4143_v52, %v2552_v56  ;;  %vm2559_vm3 = vweird.f32 %v4143_v52  ;;  %v4145_v43 = vpop.eup %4144 }
0x1867   :  { %vm2560_vm5 = vmor %vm2558_vm4, %vm2559_vm3  ;;  %v2592_v9 = vadd.f32 1.0, %v4145_v43 }
0x1868   :  { %v2555_v5 = vsub.f32 1.0, %v2554_v57 }
0x1869   :  { %4146 = vrcp.f32 %v2592_v9  ;;  %v2604_v6 = vand.u32 2147483648, %v2592_v9  ;;  %vm2598_vm8 = vweird.f32 %v2592_v9  ;;  %v2602_v61 = vand.u32 2147483647, %v2592_v9 }
0x186a   :  { %v2556_v50 = vmul.f32 %v4143_v52, %v2555_v5 }
0x186b   :  { %v2605_v35 = vor.u32 1.1754944e-38, %v2604_v6  ;;  %vm2603_vm11 = vcmp.eq.f32.partialorder %v2602_v61, 8.507059e+37 }
0x186c   :  { %v2557_v4 = vadd.f32 %v4143_v52, %v2556_v50 }
0x186e   :  { %v2561_v2 = vsel %vm2560_vm5, %v4143_v52, %v2557_v4 }
0x186f   :  { %v2566_v59 = vsel %vm2563_vm6, %v2565_v7, %v2561_v2  ;;  %v4147_v44 = vpop.eup %4146 }
0x1870   :  { %v2594_v11 = vmul.f32 %v4147_v44, %v2592_v9  ;;  %vm2599_vm7 = vweird.f32 %v4147_v44  ;;  %v2572_v22 = vmul.f32 %v2570_v1, %v2566_v59 }
0x1871   :  { %vm2600_vm10 = vmor %vm2598_vm8, %vm2599_vm7 }
0x1872   :  { %v2595_v12 = vsub.f32 1.0, %v2594_v11 }
0x1874   :  { %v2596_v13 = vmul.f32 %v4147_v44, %v2595_v12 }
0x1876   :  { %v2597_v58 = vadd.f32 %v4147_v44, %v2596_v13 }
0x1878   :  { %v2601_v10 = vsel %vm2600_vm10, %v4147_v44, %v2597_v58 }
0x1879   :  { %v2606_v29 = vsel %vm2603_vm11, %v2605_v35, %v2601_v10 }
0x187a   :  { %v2612_v28 = vmul.f32 %v2610_v27, %v2606_v29 }
0x1893   :  { %v2575_v3 = vpop.permute.xlu1 %2574 }
0x1894   :  { %v2577_v47 = vmul.f32 %v2575_v3, %v2566_v59 }
0x1896   :  { %2579 = vrot.lane.b32.xlu0 %v2577_v47, %s4287_s21 }
0x18b6   :  { %v2615_v14 = vpop.permute.xlu2 %2614 }
0x18b7   :  { %v2617_v17 = vmul.f32 %v2615_v14, %v2606_v29 }
0x18b9   :  { %2619 = vrot.lane.b32.xlu1 %v2617_v17, %s4287_s21 }
0x1908   :  { %v2580_v24 = vpop.permute.xlu0 %2579 }
0x1909   :  { %v5026_v63 = vadd.f32 %v2580_v24, %v2572_v22 }
0x190b   :  { %4148 = vtanh.f32 %v5026_v63  ;;  %v2707_v10 = vrot.slane %v5026_v63, 6 }
0x1911   :  { %v4149_v25 = vpop.eup %4148 }
0x1912   :  { %2585 = vrot.lane.b32.xlu2 %v4149_v25, %s4287_s21 }
0x192b   :  { %v2620_v30 = vpop.permute.xlu1 %2619 }
0x192c   :  { %v5031_v32 = vadd.f32 %v2620_v30, %v2612_v28 }
0x192e   :  { %4150 = vtanh.f32 %v5031_v32  ;;  %v2747_v17 = vrot.slane %v5031_v32, 2 }
0x1934   :  { %v4151_v15 = vpop.eup %4150 }
0x1935   :  { %2625 = vrot.lane.b32.xlu0 %v4151_v15, %s4287_s21 }
0x196c   :  { %v2586_v0 = vpop.permute.xlu2 %2585 }
0x196d   :  { %v2588_v33 = vmul.f32 %v2586_v0, %v2566_v59 }
0x196f   :  { %v2630_v37 = vrot.slane %v2588_v33, 4 }
0x1971   :  { %2631 = vrot.lane.b32.xlu1 %v2630_v37, %s4288_s4  ;;  %v5072_v37 = vadd.f32 %v5047_v46, %v2143_v62 }
0x19a7   :  { %v2626_v38 = vpop.permute.xlu0 %2625 }
0x19a8   :  { %v2628_v40 = vmul.f32 %v2626_v38, %v2606_v29 }
0x19aa   :  { %v2660_v41 = vrot.slane %v2628_v40, 2 }
0x19ac   :  { %2661 = vrot.lane.b32.xlu2 %v2660_v41, %s4288_s4 }
0x19e3   :  { %v2632_v53 = vpop.permute.xlu1 %2631 }
0x19e4   :  { %3845 = vmatmul.msk.f32.vlgmr.msra.gmra.mxu0 %vm861_vm0, %v2632_v53 }
0x19e5   :  { %3199 = vmatpush.msra.mxu0 %v4805_v16 }
0x19e7   :  { %3200 = vmatpush.msra.mxu0 %v4810_v49 }
0x19e9   :  { %3201 = vmatpush.msra.mxu0 %v4822_v19 }
0x19eb   :  { %3202 = vmatpush.msra.mxu0 %v4842_v23 }
0x1a06   :  { %v2662_v42 = vpop.permute.xlu2 %2661 }
0x1a07   :  { %3846 = vmatmul.msk.f32.vlgmr.msra.gmra.mxu1 %vm861_vm0, %v2662_v42 }
0x1a08   :  { %3229 = vmatpush.msra.mxu1 %v4827_v20 }
0x1a0a   :  { %3230 = vmatpush.msra.mxu1 %v4870_v31 }
0x1a0c   :  { %3231 = vmatpush.msra.mxu1 %v4881_v34 }
0x1a0e   :  { %3232 = vmatpush.msra.mxu1 %v4888_v36 }
0x1a61   :  { %v2652_v16 = vpop.f32.mrf.mxu0 }
0x1a62   :  { %v2656_v54 = vrot.slane %v2652_v16, 2 }
0x1a64   :  { %v2658_v49 = vadd.f32 %v2656_v54, %v4955_v18 }
0x1a66   :  { %4152 = vtanh.f32 %v2658_v49  ;;  %v3847_v31 = vmul.f32 -1.442695, %v2658_v49 }
0x1a6c   :  { %v4153_v19 = vpop.eup %4152 }
0x1a6d   :  { %2711 = vrot.lane.b32.xlu1 %v4153_v19, %s4287_s21 }
0x1a84   :  { %v2682_v23 = vpop.f32.mrf.mxu1 }
0x1a85   :  { %v2685_v55 = vadd.f32 %v2682_v23, %v4960_v26 }
0x1a87   :  { %4154 = vtanh.f32 %v2685_v55  ;;  %v3848_v18 = vmul.f32 -1.442695, %v2685_v55 }
0x1a88   :  { %4156 = vpow2.f32 %v3847_v31 }
0x1a8d   :  { %v4155_v20 = vpop.eup %4154 }
0x1a8e   :  { %2751 = vrot.lane.b32.xlu0 %v4155_v20, %s4287_s21  ;;  %v4157_v34 = vpop.eup %4156 }
0x1a8f   :  { %v2689_v36 = vadd.f32 1.0, %v4157_v34 }
0x1a91   :  { %4158 = vrcp.f32 %v2689_v36  ;;  %v2701_v5 = vand.u32 2147483648, %v2689_v36  ;;  %vm2695_vm9 = vweird.f32 %v2689_v36  ;;  %v2699_v26 = vand.u32 2147483647, %v2689_v36 }
0x1a92   :  { %4160 = vpow2.f32 %v3848_v18 }
0x1a93   :  { %v2702_v4 = vor.u32 1.1754944e-38, %v2701_v5  ;;  %vm2700_vm14 = vcmp.eq.f32.partialorder %v2699_v26, 8.507059e+37 }
0x1a97   :  { %v4159_v51 = vpop.eup %4158 }
0x1a98   :  { %v2691_v8 = vmul.f32 %v4159_v51, %v2689_v36  ;;  %vm2696_vm12 = vweird.f32 %v4159_v51  ;;  %v4161_v45 = vpop.eup %4160 }
0x1a99   :  { %vm2697_vm13 = vmor %vm2695_vm9, %vm2696_vm12  ;;  %v2729_v2 = vadd.f32 1.0, %v4161_v45 }
0x1a9a   :  { %v2692_v56 = vsub.f32 1.0, %v2691_v8 }
0x1a9b   :  { %4162 = vrcp.f32 %v2729_v2  ;;  %v2741_v44 = vand.u32 2147483648, %v2729_v2  ;;  %vm2735_vm2 = vweird.f32 %v2729_v2  ;;  %v2739_v11 = vand.u32 2147483647, %v2729_v2 }
0x1a9c   :  { %v2693_v52 = vmul.f32 %v4159_v51, %v2692_v56 }
0x1a9d   :  { %v2742_v13 = vor.u32 1.1754944e-38, %v2741_v44  ;;  %vm2740_vm4 = vcmp.eq.f32.partialorder %v2739_v11, 8.507059e+37 }
0x1a9e   :  { %v2694_v57 = vadd.f32 %v4159_v51, %v2693_v52 }
0x1aa0   :  { %v2698_v50 = vsel %vm2697_vm13, %v4159_v51, %v2694_v57 }
0x1aa1   :  { %v2703_v39 = vsel %vm2700_vm14, %v2702_v4, %v2698_v50  ;;  %v4163_v43 = vpop.eup %4162 }
0x1aa2   :  { %v2731_v59 = vmul.f32 %v4163_v43, %v2729_v2  ;;  %vm2736_vm1 = vweird.f32 %v4163_v43  ;;  %v2709_v35 = vmul.f32 %v2707_v10, %v2703_v39 }
0x1aa3   :  { %vm2737_vm3 = vmor %vm2735_vm2, %vm2736_vm1 }
0x1aa4   :  { %v2732_v3 = vsub.f32 1.0, %v2731_v59 }
0x1aa6   :  { %v2733_v47 = vmul.f32 %v4163_v43, %v2732_v3 }
0x1aa8   :  { %v2734_v9 = vadd.f32 %v4163_v43, %v2733_v47 }
0x1aaa   :  { %v2738_v12 = vsel %vm2737_vm3, %v4163_v43, %v2734_v9 }
0x1aab   :  { %v2743_v6 = vsel %vm2740_vm4, %v2742_v13, %v2738_v12 }
0x1aac   :  { %v2749_v1 = vmul.f32 %v2747_v17, %v2743_v6 }
0x1adf   :  { %v2712_v48 = vpop.permute.xlu1 %2711 }
0x1ae0   :  { %v2714_v7 = vmul.f32 %v2712_v48, %v2703_v39 }
0x1ae2   :  { %2716 = vrot.lane.b32.xlu0 %v2714_v7, %s4287_s21 }
0x1b00   :  { %v2752_v58 = vpop.permute.xlu0 %2751 }
0x1b01   :  { %v2754_v61 = vmul.f32 %v2752_v58, %v2743_v6 }
0x1b03   :  { %2756 = vrot.lane.b32.xlu2 %v2754_v61, %s4287_s21 }
0x1b54   :  { %v2717_v14 = vpop.permute.xlu0 %2716 }
0x1b55   :  { %v5056_v29 = vadd.f32 %v2717_v14, %v2709_v35 }
0x1b57   :  { %4164 = vtanh.f32 %v5056_v29  ;;  %v2843_v9 = vrot.slane %v5056_v29, 6 }
0x1b5d   :  { %v4165_v22 = vpop.eup %4164  ;;  %v2757_v24 = vpop.permute.xlu2 %2756 }
0x1b5e   :  { %v5060_v25 = vadd.f32 %v2757_v24, %v2749_v1  ;;  %2722 = vrot.lane.b32.xlu2 %v4165_v22, %s4287_s21 }
0x1b60   :  { %4166 = vtanh.f32 %v5060_v25  ;;  %v2883_v58 = vrot.slane %v5060_v25, 2 }
0x1b66   :  { %v4167_v27 = vpop.eup %4166 }
0x1b67   :  { %2762 = vrot.lane.b32.xlu1 %v4167_v27, %s4287_s21 }
0x1bb8   :  { %v2723_v63 = vpop.permute.xlu2 %2722 }
0x1bb9   :  { %v2725_v28 = vmul.f32 %v2723_v63, %v2703_v39 }
0x1bbb   :  { %v2767_v30 = vrot.slane %v2725_v28, 6 }
0x1bbd   :  { %2768 = vrot.lane.b32.xlu1 %v2767_v30, %s4288_s4 }
0x1bd9   :  { %v2763_v15 = vpop.permute.xlu1 %2762 }
0x1bda   :  { %v2765_v0 = vmul.f32 %v2763_v15, %v2743_v6 }
0x1bdc   :  { %2794 = vrot.lane.b32.xlu0 %v2765_v0, %s4288_s4 }
0x1c2f   :  { %v2769_v32 = vpop.permute.xlu1 %2768 }
0x1c30   :  { %3849 = vmatmul.msk.f32.vlgmr.msrb.gmra.mxu2 %vm861_vm0, %v2769_v32 }
0x1c4e   :  { %v2795_v33 = vpop.permute.xlu0 %2794 }
0x1c4f   :  { %3850 = vmatmul.msk.f32.vlgmr.msrb.gmra.mxu3 %vm861_vm0, %v2795_v33 }
0x1cb3   :  { %v2789_v38 = vpop.f32.mrf.mxu2 }
0x1cb4   :  { %v2792_v40 = vadd.f32 %v2789_v38, %v5072_v37 }
0x1cb6   :  { %4168 = vtanh.f32 %v2792_v40  ;;  %v3851_v49 = vmul.f32 -1.442695, %v2792_v40 }
0x1cbc   :  { %v4169_v41 = vpop.eup %4168 }
0x1cbd   :  { %2847 = vrot.lane.b32.xlu0 %v4169_v41, %s4287_s21 }
0x1cd2   :  { %v2815_v53 = vpop.f32.mrf.mxu3 }
0x1cd3   :  { %v2819_v42 = vrot.slane %v2815_v53, 2 }
0x1cd5   :  { %v2821_v16 = vadd.f32 %v2819_v42, %v4957_v21 }
0x1cd7   :  { %4170 = vtanh.f32 %v2821_v16  ;;  %v3852_v60 = vmul.f32 -1.442695, %v2821_v16 }
0x1cd8   :  { %4172 = vpow2.f32 %v3851_v49 }
0x1cd9   :  { %4174 = vpow2.f32 %v3852_v60 }
0x1cdd   :  { %v4171_v54 = vpop.eup %4170 }
0x1cde   :  { %2887 = vrot.lane.b32.xlu2 %v4171_v54, %s4287_s21  ;;  %v4173_v62 = vpop.eup %4172 }
0x1cdf   :  { %v2825_v46 = vadd.f32 1.0, %v4173_v62  ;;  %v4175_v19 = vpop.eup %4174 }
0x1ce0   :  { %v2865_v23 = vadd.f32 1.0, %v4175_v19 }
0x1ce1   :  { %4176 = vrcp.f32 %v2825_v46  ;;  %v2837_v56 = vand.u32 2147483648, %v2825_v46  ;;  %vm2831_vm6 = vweird.f32 %v2825_v46  ;;  %v2835_v52 = vand.u32 2147483647, %v2825_v46 }
0x1ce2   :  { %4178 = vrcp.f32 %v2865_v23  ;;  %v2877_v39 = vand.u32 2147483648, %v2865_v23  ;;  %vm2871_vm11 = vweird.f32 %v2865_v23  ;;  %v2875_v2 = vand.u32 2147483647, %v2865_v23 }
0x1ce3   :  { %v2838_v5 = vor.u32 1.1754944e-38, %v2837_v56  ;;  %vm2836_vm8 = vcmp.eq.f32.partialorder %v2835_v52, 8.507059e+37 }
0x1ce4   :  { %v2878_v43 = vor.u32 1.1754944e-38, %v2877_v39  ;;  %vm2876_vm9 = vcmp.eq.f32.partialorder %v2875_v2, 8.507059e+37 }
0x1ce7   :  { %v4177_v55 = vpop.eup %4176 }
0x1ce8   :  { %v2827_v20 = vmul.f32 %v4177_v55, %v2825_v46  ;;  %v4179_v34 = vpop.eup %4178  ;;  %vm2832_vm5 = vweird.f32 %v4177_v55 }
0x1ce9   :  { %v2867_v51 = vmul.f32 %v4179_v34, %v2865_v23  ;;  %vm2833_vm7 = vmor %vm2831_vm6, %vm2832_vm5  ;;  %vm2872_vm10 = vweird.f32 %v4179_v34 }
0x1cea   :  { %v2828_v31 = vsub.f32 1.0, %v2827_v20  ;;  %vm2873_vm12 = vmor %vm2871_vm11, %vm2872_vm10 }
0x1ceb   :  { %v2868_v18 = vsub.f32 1.0, %v2867_v51 }
0x1cec   :  { %v2829_v36 = vmul.f32 %v4177_v55, %v2828_v31 }
0x1ced   :  { %v2869_v26 = vmul.f32 %v4179_v34, %v2868_v18 }
0x1cee   :  { %v2830_v8 = vadd.f32 %v4177_v55, %v2829_v36 }
0x1cef   :  { %v2870_v48 = vadd.f32 %v4179_v34, %v2869_v26 }
0x1cf0   :  { %v2834_v57 = vsel %vm2833_vm7, %v4177_v55, %v2830_v8 }
0x1cf1   :  { %v2839_v45 = vsel %vm2836_vm8, %v2838_v5, %v2834_v57  ;;  %v2874_v7 = vsel %vm2873_vm12, %v4179_v34, %v2870_v48 }
0x1cf2   :  { %v2879_v59 = vsel %vm2876_vm9, %v2878_v43, %v2874_v7  ;;  %v2845_v44 = vmul.f32 %v2843_v9, %v2839_v45 }
0x1cf3   :  { %v2885_v6 = vmul.f32 %v2883_v58, %v2879_v59 }
0x1d2f   :  { %v2848_v50 = vpop.permute.xlu0 %2847 }
0x1d30   :  { %v2850_v4 = vmul.f32 %v2848_v50, %v2839_v45 }
0x1d32   :  { %2852 = vrot.lane.b32.xlu2 %v2850_v4, %s4287_s21 }
0x1d38   :  { %v2888_v3 = vpop.permute.xlu2 %2887 }
0x1d39   :  { %v2890_v47 = vmul.f32 %v2888_v3, %v2879_v59 }
0x1d3b   :  { %2892 = vrot.lane.b32.xlu1 %v2890_v47, %s4287_s21 }
0x1d8c   :  { %v2853_v11 = vpop.permute.xlu2 %2852 }
0x1d8d   :  { %v5081_v12 = vadd.f32 %v2853_v11, %v2845_v44 }
0x1d8f   :  { %4180 = vtanh.f32 %v5081_v12  ;;  %v2982_v39 = vrot.slane %v5081_v12, 6 }
0x1d95   :  { %v4181_v13 = vpop.eup %4180 }
0x1d96   :  { %2858 = vrot.lane.b32.xlu1 %v4181_v13, %s4287_s21 }
0x1dad   :  { %v2893_v61 = vpop.permute.xlu1 %2892 }
0x1dae   :  { %v5086_v10 = vadd.f32 %v2893_v61, %v2885_v6 }
0x1db0   :  { %4182 = vtanh.f32 %v5086_v10  ;;  %v3022_v3 = vrot.slane %v5086_v10, 2 }
0x1db6   :  { %v4183_v35 = vpop.eup %4182 }
0x1db7   :  { %2898 = vrot.lane.b32.xlu0 %v4183_v35, %s4287_s21 }
0x1e08   :  { %v2859_v14 = vpop.permute.xlu1 %2858 }
0x1e09   :  { %v2861_v29 = vmul.f32 %v2859_v14, %v2839_v45 }
0x1e0b   :  { %2903 = vrot.lane.b32.xlu2 %v2861_v29, %s4288_s4 }
0x1e29   :  { %v2899_v17 = vpop.permute.xlu0 %2898 }
0x1e2a   :  { %v2901_v1 = vmul.f32 %v2899_v17, %v2879_v59 }
0x1e2c   :  { %v2932_v22 = vrot.slane %v2901_v1, 6 }
0x1e2e   :  { %2933 = vrot.lane.b32.xlu0 %v2932_v22, %s4288_s4 }
0x1e65   :  { %v2904_v24 = vpop.permute.xlu2 %2903 }
0x1e66   :  { %3853 = vmatmul.msk.f32.vlgmr.msrb.gmra.mxu0 %vm861_vm0, %v2904_v24 }
0x1ea0   :  { %v2934_v25 = vpop.permute.xlu0 %2933 }
0x1ea1   :  { %3854 = vmatmul.msk.f32.vlgmr.msrb.gmra.mxu1 %vm861_vm0, %v2934_v25 }
0x1ee3   :  { %v2924_v27 = vpop.f32.mrf.mxu0 }
0x1ee4   :  { %v2928_v63 = vrot.slane %v2924_v27, 6 }
0x1ee6   :  { %v2930_v28 = vadd.f32 %v2928_v63, %v5072_v37 }
0x1ee8   :  { %4184 = vtanh.f32 %v2930_v28  ;;  %v3855_v38 = vmul.f32 -1.442695, %v2930_v28 }
0x1eee   :  { %v4185_v30 = vpop.eup %4184 }
0x1eef   :  { %2986 = vrot.lane.b32.xlu1 %v4185_v30, %s4287_s21 }
0x1f1e   :  { %v2954_v15 = vpop.f32.mrf.mxu1 }
0x1f1f   :  { %v2958_v0 = vrot.slane %v2954_v15, 4 }
0x1f21   :  { %v2960_v32 = vadd.f32 %v2958_v0, %v4957_v21 }
0x1f23   :  { %4186 = vtanh.f32 %v2960_v32  ;;  %v3856_v49 = vmul.f32 -1.442695, %v2960_v32 }
0x1f24   :  { %4188 = vpow2.f32 %v3855_v38 }
0x1f29   :  { %v4187_v33 = vpop.eup %4186 }
0x1f2a   :  { %3026 = vrot.lane.b32.xlu2 %v4187_v33, %s4287_s21  ;;  %v4189_v40 = vpop.eup %4188 }
0x1f2b   :  { %v2964_v41 = vadd.f32 1.0, %v4189_v40 }
0x1f2d   :  { %4190 = vrcp.f32 %v2964_v41  ;;  %v2976_v62 = vand.u32 2147483648, %v2964_v41  ;;  %vm2970_vm14 = vweird.f32 %v2964_v41  ;;  %v2974_v46 = vand.u32 2147483647, %v2964_v41 }
0x1f2e   :  { %4192 = vpow2.f32 %v3856_v49 }
0x1f2f   :  { %v2977_v23 = vor.u32 1.1754944e-38, %v2976_v62  ;;  %vm2975_vm2 = vcmp.eq.f32.partialorder %v2974_v46, 8.507059e+37 }
0x1f33   :  { %v4191_v53 = vpop.eup %4190 }
0x1f34   :  { %v2966_v42 = vmul.f32 %v4191_v53, %v2964_v41  ;;  %vm2971_vm13 = vweird.f32 %v4191_v53  ;;  %v4193_v55 = vpop.eup %4192 }
0x1f35   :  { %vm2972_vm1 = vmor %vm2970_vm14, %vm2971_vm13  ;;  %v3004_v36 = vadd.f32 1.0, %v4193_v55 }
0x1f36   :  { %v2967_v16 = vsub.f32 1.0, %v2966_v42 }
0x1f37   :  { %4194 = vrcp.f32 %v3004_v36  ;;  %v3016_v57 = vand.u32 2147483648, %v3004_v36  ;;  %vm3010_vm4 = vweird.f32 %v3004_v36  ;;  %v3014_v5 = vand.u32 2147483647, %v3004_v36 }
0x1f38   :  { %v2968_v54 = vmul.f32 %v4191_v53, %v2967_v16 }
0x1f39   :  { %v3017_v50 = vor.u32 1.1754944e-38, %v3016_v57  ;;  %vm3015_vm6 = vcmp.eq.f32.partialorder %v3014_v5, 8.507059e+37 }
0x1f3a   :  { %v2969_v60 = vadd.f32 %v4191_v53, %v2968_v54 }
0x1f3c   :  { %v2973_v19 = vsel %vm2972_vm1, %v4191_v53, %v2969_v60 }
0x1f3d   :  { %v2978_v31 = vsel %vm2975_vm2, %v2977_v23, %v2973_v19  ;;  %v4195_v51 = vpop.eup %4194 }
0x1f3e   :  { %v3006_v8 = vmul.f32 %v4195_v51, %v3004_v36  ;;  %vm3011_vm3 = vweird.f32 %v4195_v51  ;;  %v2984_v2 = vmul.f32 %v2982_v39, %v2978_v31 }
0x1f3f   :  { %vm3012_vm5 = vmor %vm3010_vm4, %vm3011_vm3 }
0x1f40   :  { %v3007_v56 = vsub.f32 1.0, %v3006_v8 }
0x1f42   :  { %v3008_v18 = vmul.f32 %v4195_v51, %v3007_v56 }
0x1f44   :  { %v3009_v52 = vadd.f32 %v4195_v51, %v3008_v18 }
0x1f46   :  { %v3013_v26 = vsel %vm3012_vm5, %v4195_v51, %v3009_v52 }
0x1f47   :  { %v3018_v45 = vsel %vm3015_vm6, %v3017_v50, %v3013_v26 }
0x1f48   :  { %v3024_v47 = vmul.f32 %v3022_v3, %v3018_v45 }
0x1f61   :  { %v2987_v20 = vpop.permute.xlu1 %2986 }
0x1f62   :  { %v2989_v34 = vmul.f32 %v2987_v20, %v2978_v31 }
0x1f64   :  { %2991 = vrot.lane.b32.xlu0 %v2989_v34, %s4287_s21 }
0x1f84   :  { %v3027_v4 = vpop.permute.xlu2 %3026 }
0x1f85   :  { %v3029_v48 = vmul.f32 %v3027_v4, %v3018_v45 }
0x1f87   :  { %3031 = vrot.lane.b32.xlu1 %v3029_v48, %s4287_s21 }
0x1fd6   :  { %v2992_v7 = vpop.permute.xlu0 %2991 }
0x1fd7   :  { %v5101_v43 = vadd.f32 %v2992_v7, %v2984_v2 }
0x1fd9   :  { %4196 = vtanh.f32 %v5101_v43  ;;  %v3122_v5 = vrot.slane %v5101_v43, 6 }
0x1fdf   :  { %v4197_v59 = vpop.eup %4196 }
0x1fe0   :  { %2997 = vrot.lane.b32.xlu2 %v4197_v59, %s4287_s21 }
0x1ff9   :  { %v3032_v9 = vpop.permute.xlu1 %3031 }
0x1ffa   :  { %v5106_v44 = vadd.f32 %v3032_v9, %v3024_v47 }
0x1ffc   :  { %4198 = vtanh.f32 %v5106_v44  ;;  %v3162_v48 = vrot.slane %v5106_v44, 2 }
0x2002   :  { %v4199_v11 = vpop.eup %4198 }
0x2003   :  { %3037 = vrot.lane.b32.xlu0 %v4199_v11, %s4287_s21 }
0x203a   :  { %v2998_v12 = vpop.permute.xlu2 %2997 }
0x203b   :  { %v3000_v13 = vmul.f32 %v2998_v12, %v2978_v31 }
0x203d   :  { %v3042_v58 = vrot.slane %v3000_v13, 2 }
0x203f   :  { %3043 = vrot.lane.b32.xlu1 %v3042_v58, %s4288_s4 }
0x2075   :  { %v3038_v6 = vpop.permute.xlu0 %3037 }
0x2076   :  { %v3040_v61 = vmul.f32 %v3038_v6, %v3018_v45 }
0x2078   :  { %v3072_v35 = vrot.slane %v3040_v61, 4 }
0x207a   :  { %3073 = vrot.lane.b32.xlu2 %v3072_v35, %s4288_s4 }
0x20b1   :  { %v3044_v10 = vpop.permute.xlu1 %3043 }
0x20b2   :  { %3857 = vmatmul.msk.f32.vlgmr.msra.gmra.mxu2 %vm861_vm0, %v3044_v10 }
0x20d4   :  { %v3074_v14 = vpop.permute.xlu2 %3073 }
0x20d5   :  { %3858 = vmatmul.msk.f32.vlgmr.msra.gmra.mxu3 %vm861_vm0, %v3074_v14 }
0x2135   :  { %v3064_v29 = vpop.f32.mrf.mxu2 }
0x2136   :  { %v3068_v17 = vrot.slane %v3064_v29, 4 }
0x2138   :  { %v3070_v1 = vadd.f32 %v3068_v17, %v5072_v37 }
0x213a   :  { %4200 = vtanh.f32 %v3070_v1  ;;  %v3859_v28 = vmul.f32 -1.442695, %v3070_v1 }
0x2140   :  { %v4201_v22 = vpop.eup %4200 }
0x2141   :  { %3126 = vrot.lane.b32.xlu0 %v4201_v22, %s4287_s21 }
0x2158   :  { %v3094_v24 = vpop.f32.mrf.mxu3 }
0x2159   :  { %v3098_v25 = vrot.slane %v3094_v24, 6 }
0x215b   :  { %v3100_v27 = vadd.f32 %v3098_v25, %v4957_v21 }
0x215d   :  { %4202 = vtanh.f32 %v3100_v27  ;;  %v3860_v40 = vmul.f32 -1.442695, %v3100_v27 }
0x215e   :  { %4204 = vpow2.f32 %v3859_v28 }
0x2163   :  { %v4203_v63 = vpop.eup %4202 }
0x2164   :  { %3166 = vrot.lane.b32.xlu1 %v4203_v63, %s4287_s21  ;;  %v4205_v30 = vpop.eup %4204 }
0x2165   :  { %v3104_v15 = vadd.f32 1.0, %v4205_v30 }
0x2167   :  { %4206 = vrcp.f32 %v3104_v15  ;;  %v3116_v53 = vand.u32 2147483648, %v3104_v15  ;;  %vm3110_vm8 = vweird.f32 %v3104_v15  ;;  %v3114_v42 = vand.u32 2147483647, %v3104_v15 }
0x2168   :  { %4208 = vpow2.f32 %v3860_v40 }
0x2169   :  { %v3117_v54 = vor.u32 1.1754944e-38, %v3116_v53  ;;  %vm3115_vm11 = vcmp.eq.f32.partialorder %v3114_v42, 8.507059e+37 }
0x216d   :  { %v4207_v0 = vpop.eup %4206 }
0x216e   :  { %v3106_v32 = vmul.f32 %v4207_v0, %v3104_v15  ;;  %vm3111_vm7 = vweird.f32 %v4207_v0  ;;  %v4209_v49 = vpop.eup %4208 }
0x216f   :  { %vm3112_vm10 = vmor %vm3110_vm8, %vm3111_vm7  ;;  %v3144_v19 = vadd.f32 1.0, %v4209_v49 }
0x2170   :  { %v3107_v33 = vsub.f32 1.0, %v3106_v32 }
0x2171   :  { %4210 = vrcp.f32 %v3144_v19  ;;  %v3156_v36 = vand.u32 2147483648, %v3144_v19  ;;  %vm3150_vm9 = vweird.f32 %v3144_v19  ;;  %v3154_v51 = vand.u32 2147483647, %v3144_v19 }
0x2172   :  { %v3108_v38 = vmul.f32 %v4207_v0, %v3107_v33 }
0x2173   :  { %v3157_v56 = vor.u32 1.1754944e-38, %v3156_v36  ;;  %vm3155_vm14 = vcmp.eq.f32.partialorder %v3154_v51, 8.507059e+37 }
0x2174   :  { %v3109_v41 = vadd.f32 %v4207_v0, %v3108_v38 }
0x2176   :  { %v3113_v16 = vsel %vm3112_vm10, %v4207_v0, %v3109_v41  ;;  %vm3364_vm10 = vcmask 25600  }
0x2177   :  { %v3118_v62 = vsel %vm3115_vm11, %v3117_v54, %v3113_v16  ;;  %v4211_v23 = vpop.eup %4210 }
0x2178   :  { %v3146_v55 = vmul.f32 %v4211_v23, %v3144_v19  ;;  %vm3151_vm12 = vweird.f32 %v4211_v23  ;;  %v3124_v26 = vmul.f32 %v3122_v5, %v3118_v62 }
0x2179   :  { %vm3152_vm13 = vmor %vm3150_vm9, %vm3151_vm12 }
0x217a   :  { %v3147_v20 = vsub.f32 1.0, %v3146_v55 }
0x217c   :  { %v3148_v31 = vmul.f32 %v4211_v23, %v3147_v20 }
0x217e   :  { %v3149_v34 = vadd.f32 %v4211_v23, %v3148_v31 }
0x2180   :  { %v3153_v8 = vsel %vm3152_vm13, %v4211_v23, %v3149_v34 }
0x2181   :  { %v3158_v52 = vsel %vm3155_vm14, %v3157_v56, %v3153_v8 }
0x2182   :  { %v3164_v39 = vmul.f32 %v3162_v48, %v3158_v52 }
0x21b3   :  { %v3127_v60 = vpop.permute.xlu0 %3126 }
0x21b4   :  { %v3129_v46 = vmul.f32 %v3127_v60, %v3118_v62 }
0x21b6   :  { %3131 = vrot.lane.b32.xlu2 %v3129_v46, %s4287_s21 }
0x21d6   :  { %v3167_v18 = vpop.permute.xlu1 %3166 }
0x21d7   :  { %v3169_v57 = vmul.f32 %v3167_v18, %v3158_v52 }
0x21d9   :  { %3171 = vrot.lane.b32.xlu0 %v3169_v57, %s4287_s21 }
0x2210   :  { %v3132_v50 = vpop.permute.xlu2 %3131 }
0x2211   :  { %v5121_v45 = vadd.f32 %v3132_v50, %v3124_v26 }
0x2213   :  { %4212 = vtanh.f32 %v5121_v45  ;;  %v3259_v31 = vrot.slane %v5121_v45, 6 }
0x2219   :  { %v4213_v4 = vpop.eup %4212 }
0x221a   :  { %3137 = vrot.lane.b32.xlu1 %v4213_v4, %s4287_s21 }
0x224b   :  { %v3172_v2 = vpop.permute.xlu0 %3171 }
0x224c   :  { %v5126_v7 = vadd.f32 %v3172_v2, %v3164_v39  ;;  %v3335_v39 = vld [vmem:[%s5188_s11 + $0x38] sm:$0xff]  ;;  %v3334_v2 = vld [vmem:[%s5188_s11 + $0x30] sm:$0xff] }
0x224d   :  { %3352 = vmatpush.msrb.mxu2 %v3335_v39 }
0x224e   :  { %4214 = vtanh.f32 %v5126_v7  ;;  %v3299_v56 = vrot.slane %v5126_v7, 2  ;;  %v3333_v7 = vld [vmem:[%s5188_s11 + $0x28] sm:$0xff] }
0x224f   :  { %3353 = vmatpush.msrb.mxu2 %v3334_v2 }
0x2251   :  { %3354 = vmatpush.msrb.mxu2 %v3333_v7 }
0x2254   :  { %v4215_v59 = vpop.eup %4214 }
0x2255   :  { %3177 = vrot.lane.b32.xlu2 %v4215_v59, %s4287_s21  ;;  %v3332_v59 = vld [vmem:[%s5188_s11 + $0x20] sm:$0xff] }
0x2256   :  { %3355 = vmatpush.msrb.mxu2 %v3332_v59 }
0x228c   :  { %v3138_v43 = vpop.permute.xlu1 %3137 }
0x228d   :  { %v3140_v3 = vmul.f32 %v3138_v43, %v3118_v62  ;;  %v3331_v43 = vld [vmem:[%s5188_s11 + $0x18] sm:$0xff] }
0x228e   :  { %3356 = vmatpush.msrb.mxu2 %v3331_v43 }
0x228f   :  { %v3182_v47 = vrot.slane %v3140_v3, 4  ;;  %v3330_v3 = vld [vmem:[%s5188_s11 + $0x10] sm:$0xff] }
0x2290   :  { %3357 = vmatpush.msrb.mxu2 %v3330_v3 }
0x2291   :  { %3183 = vrot.lane.b32.xlu0 %v3182_v47, %s4288_s4  ;;  %v3329_v47 = vld [vmem:[%s5188_s11 + $0x8] sm:$0xff] }
0x2292   :  { %3358 = vmatpush.msrb.mxu2 %v3329_v47 }
0x22af   :  { %v3178_v9 = vpop.permute.xlu2 %3177 }
0x22b0   :  { %v3180_v11 = vmul.f32 %v3178_v9, %v3158_v52  ;;  %v3328_v9 = vld [vmem:[%s5188_s11] sm:$0xff] }
0x22b1   :  { %3359 = vmatpush.msrb.mxu2 %v3328_v9 }
0x22b2   :  { %v3212_v12 = vrot.slane %v3180_v11, 2 }
0x22b4   :  { %3213 = vrot.lane.b32.xlu1 %v3212_v12, %s4288_s4 }
0x2303   :  { %v3184_v44 = vpop.permute.xlu0 %3183 }
0x2304   :  { %3861 = vmatmul.msk.f32.vlgmr.msra.gmra.mxu0 %vm861_vm0, %v3184_v44 }
0x2326   :  { %v3214_v13 = vpop.permute.xlu1 %3213 }
0x2327   :  { %3862 = vmatmul.msk.f32.vlgmr.msra.gmra.mxu1 %vm861_vm0, %v3214_v13 }
0x2381   :  { %v3204_v58 = vpop.f32.mrf.mxu0 }
0x2382   :  { %v3208_v6 = vrot.slane %v3204_v58, 2  ;;  %v3975_v58 = vld [vmem:[%s5189_s12] ss:$0 sm:$0xff] }
0x2384   :  { %v3210_v61 = vadd.f32 %v3208_v6, %v5072_v37 }
0x2386   :  { %4216 = vtanh.f32 %v3210_v61  ;;  %v3863_v17 = vmul.f32 -1.442695, %v3210_v61 }
0x238c   :  { %v4217_v35 = vpop.eup %4216 }
0x238d   :  { %3263 = vrot.lane.b32.xlu0 %v4217_v35, %s4287_s21 }
0x23a4   :  { %v3234_v10 = vpop.f32.mrf.mxu1 }
0x23a5   :  { %v3237_v14 = vadd.f32 %v3234_v10, %v4957_v21 }
0x23a7   :  { %4218 = vtanh.f32 %v3237_v14  ;;  %v3864_v1 = vmul.f32 -1.442695, %v3237_v14 }
0x23a8   :  { %4220 = vpow2.f32 %v3863_v17 }
0x23a9   :  { %4222 = vpow2.f32 %v3864_v1 }
0x23ad   :  { %v4219_v29 = vpop.eup %4218 }
0x23ae   :  { %3303 = vrot.lane.b32.xlu2 %v4219_v29, %s4287_s21  ;;  %v4221_v22 = vpop.eup %4220 }
0x23af   :  { %v3241_v24 = vadd.f32 1.0, %v4221_v22  ;;  %v4223_v25 = vpop.eup %4222 }
0x23b0   :  { %v3281_v37 = vadd.f32 1.0, %v4223_v25 }
0x23b1   :  { %4224 = vrcp.f32 %v3241_v24  ;;  %v3253_v32 = vand.u32 2147483648, %v3241_v24  ;;  %vm3247_vm2 = vweird.f32 %v3241_v24  ;;  %v3251_v38 = vand.u32 2147483647, %v3241_v24 }
0x23b2   :  { %4226 = vrcp.f32 %v3281_v37  ;;  %v3293_v60 = vand.u32 2147483648, %v3281_v37  ;;  %vm3287_vm6 = vweird.f32 %v3281_v37  ;;  %v3291_v62 = vand.u32 2147483647, %v3281_v37 }
0x23b3   :  { %v3254_v41 = vor.u32 1.1754944e-38, %v3253_v32  ;;  %vm3252_vm4 = vcmp.eq.f32.partialorder %v3251_v38, 8.507059e+37 }
0x23b4   :  { %v3294_v19 = vor.u32 1.1754944e-38, %v3293_v60  ;;  %vm3292_vm8 = vcmp.eq.f32.partialorder %v3291_v62, 8.507059e+37 }
0x23b7   :  { %v4225_v27 = vpop.eup %4224 }
0x23b8   :  { %v3243_v63 = vmul.f32 %v4225_v27, %v3241_v24  ;;  %v4227_v30 = vpop.eup %4226  ;;  %vm3248_vm1 = vweird.f32 %v4225_v27 }
0x23b9   :  { %v3283_v21 = vmul.f32 %v4227_v30, %v3281_v37  ;;  %vm3249_vm3 = vmor %vm3247_vm2, %vm3248_vm1  ;;  %vm3288_vm5 = vweird.f32 %v4227_v30 }
0x23ba   :  { %v3244_v28 = vsub.f32 1.0, %v3243_v63  ;;  %vm3289_vm7 = vmor %vm3287_vm6, %vm3288_vm5 }
0x23bb   :  { %v3284_v33 = vsub.f32 1.0, %v3283_v21 }
0x23bc   :  { %v3245_v15 = vmul.f32 %v4225_v27, %v3244_v28 }
0x23bd   :  { %v3285_v53 = vmul.f32 %v4227_v30, %v3284_v33 }
0x23be   :  { %v3246_v0 = vadd.f32 %v4225_v27, %v3245_v15 }
0x23bf   :  { %v3286_v49 = vadd.f32 %v4227_v30, %v3285_v53 }
0x23c0   :  { %v3250_v40 = vsel %vm3249_vm3, %v4225_v27, %v3246_v0 }
0x23c1   :  { %v3255_v16 = vsel %vm3252_vm4, %v3254_v41, %v3250_v40  ;;  %v3290_v46 = vsel %vm3289_vm7, %v4227_v30, %v3286_v49 }
0x23c2   :  { %v3295_v55 = vsel %vm3292_vm8, %v3294_v19, %v3290_v46  ;;  %v3261_v34 = vmul.f32 %v3259_v31, %v3255_v16 }
0x23c3   :  { %v3301_v18 = vmul.f32 %v3299_v56, %v3295_v55 }
0x23ff   :  { %v3264_v42 = vpop.permute.xlu0 %3263 }
0x2400   :  { %v3266_v54 = vmul.f32 %v3264_v42, %v3255_v16 }
0x2402   :  { %3268 = vrot.lane.b32.xlu2 %v3266_v54, %s4287_s21 }
0x2408   :  { %v3304_v23 = vpop.permute.xlu2 %3303 }
0x2409   :  { %v3306_v20 = vmul.f32 %v3304_v23, %v3295_v55 }
0x240b   :  { %3308 = vrot.lane.b32.xlu1 %v3306_v20, %s4287_s21 }
0x245c   :  { %v3269_v36 = vpop.permute.xlu2 %3268 }
0x245d   :  { %v3271_v51 = vadd.f32 %v3269_v36, %v3261_v34 }
0x245f   :  { %4228 = vtanh.f32 %v3271_v51 }
0x2465   :  { %v4229_v8 = vpop.eup %4228 }
0x2466   :  { %3274 = vrot.lane.b32.xlu1 %v4229_v8, %s4287_s21 }
0x247d   :  { %v3309_v52 = vpop.permute.xlu1 %3308 }
0x247e   :  { %v3311_v57 = vadd.f32 %v3309_v52, %v3301_v18 }
0x2480   :  { %4230 = vtanh.f32 %v3311_v57 }
0x2486   :  { %v4231_v5 = vpop.eup %4230 }
0x2487   :  { %3314 = vrot.lane.b32.xlu0 %v4231_v5, %s4287_s21 }
0x24d8   :  { %v3275_v26 = vpop.permute.xlu1 %3274 }
0x24d9   :  { %v3277_v50 = vmul.f32 %v3275_v26, %v3255_v16 }
0x24db   :  { %3319 = vrot.lane.b32.xlu2 %v3277_v50, %s4288_s4 }
0x24f9   :  { %v3315_v45 = vpop.permute.xlu0 %3314 }
0x24fa   :  { %v3317_v4 = vmul.f32 %v3315_v45, %v3295_v55 }
0x24fc   :  { %v3323_v48 = vrot.slane %v3317_v4, 2 }
0x24fe   :  { %3324 = vrot.lane.b32.xlu0 %v3323_v48, %s4289_s2 }
0x2535   :  { %v3320_v11 = vpop.permute.xlu2 %3319 }
0x2570   :  { %v3325_v12 = vpop.permute.xlu0 %3324 }
0x2571   :  { %v3327_v44 = vsel %vm861_vm0, %v3320_v11, %v3325_v12 }
0x2572   :  { %v3341_v13 = vrot.slane %v3327_v44, 6 }
0x2574   :  { %3865 = vmatmul.msk.f32.vlgmr.msrb.gmra.mxu2 %vm2147_vm15, %v3341_v13 }
0x25f7   :  { %v3361_v6 = vpop.f32.mrf.mxu2 }
0x25f8   :  { %v3362_v61 = vadd.f32 %v3975_v58, %v3361_v6 }
0x25fa   :  { %3365 = vst.msk [vmem:[#allocation7] sm:$0x3] %vm3364_vm10, %v3362_v61 }
0x25fb   :  { %3376 = dma.vmem_to_hbm [thread:$0]  %s3372_s17, 32, %s3374_s10, [#allocation6]  }
0x25fc   :  { %4282 = dma.done.wait [#allocation6], 32  }
0x25fd   :  { %4283 = vsyncadd [#allocation6], 4294967264 }
0x25fe   :  { %3381 = vsyncpa [#allocation5], 1 }
0x25ff   :  { %3382 = vsyncpa [#allocation6], 1 }

</bundles_post_ra>
